<compile_context>
chip_gen: v7x
topology: tpu7x:2x2x1
jax: 0.10.0
libtpu: 0.0.40
codegen_flags: <defaults>
</compile_context>

<pallas_src>
import jax
import jax.numpy as jnp
from jax.experimental import pallas as pl
from jax.experimental.pallas import tpu as pltpu

# Flip to jnp.bfloat16 on v6e/v7x for ~2x MXU throughput (accumulation stays f32
# via preferred_element_type); kept at f32 so the strict reference check holds.
MATMUL_DTYPE = jnp.float32


def _make_fused_kernel(*, T, H, W, Cin, Cout, KH, KW, KT, SH, SW, ST, PH, PW, PT):
    Hp, Wp, Tp = H + 2 * PH, W + 2 * PW, T + 2 * PT
    H_out = (Hp - KH) // SH + 1
    W_out = (Wp - KW) // SW + 1
    T_out = (Tp - KT) // ST + 1
    HWo = H_out * W_out
    M1 = T * HWo          # rows of the spatial im2col matmul (all frames at once)
    M2 = T_out * HWo      # rows of the temporal matmul == lane-dense output width

    def kernel(x_ref, w1_ref, s1_ref, b1_ref, w2_ref, s2_ref, b2_ref, o_ref,
               xpad_ref, ypad_ref):
        # ---- zero-padded copy of this batch element into VMEM (replaces jnp.pad)
        xpad_ref[...] = jnp.zeros_like(xpad_ref)
        xpad_ref[:, PH:PH + H, PW:PW + W, :] = x_ref[0]

        # ---- spatial (1,KH,KW) conv: single im2col matmul over all frames -----
        taps = []
        for kh in range(KH):
            for kw in range(KW):
                if SH == 1 and SW == 1:
                    tap = xpad_ref[:, kh:kh + H_out, kw:kw + W_out, :]
                else:
                    tap = jax.lax.slice(
                        xpad_ref[...], (0, kh, kw, 0),
                        (T, kh + (H_out - 1) * SH + 1,
                         kw + (W_out - 1) * SW + 1, Cin),
                        (1, SH, SW, 1))
                taps.append(tap.reshape(M1, Cin))
        patches = jnp.concatenate(taps, axis=-1)                    # (M1, KH*KW*Cin)
        acc1 = jnp.dot(patches.astype(MATMUL_DTYPE),
                       w1_ref[...].astype(MATMUL_DTYPE),
                       preferred_element_type=jnp.float32)          # (M1, Cout)
        y1 = jnp.maximum(acc1 * s1_ref[...] + b1_ref[...], 0.0)     # BN1 + ReLU

        # ---- intermediate stays in VMEM, temporally zero-padded ---------------
        ypad_ref[...] = jnp.zeros_like(ypad_ref)
        ypad_ref[PT:PT + T] = y1.reshape(T, HWo, Cout)

        # ---- temporal (KT,1,1) conv: KT whole-slab matmuls --------------------
        acc2 = jnp.zeros((M2, Cout), jnp.float32)
        for kt in range(KT):
            if ST == 1:
                slab = ypad_ref[kt:kt + T_out]
            else:
                slab = jax.lax.slice(
                    ypad_ref[...], (kt, 0, 0),
                    (kt + (T_out - 1) * ST + 1, HWo, Cout), (ST, 1, 1))
            acc2 = acc2 + jnp.dot(slab.reshape(M2, Cout).astype(MATMUL_DTYPE),
                                  w2_ref[kt].astype(MATMUL_DTYPE),
                                  preferred_element_type=jnp.float32)

        # ---- BN2 + ReLU + store on a lane-dense (Cout, M2) layout -------------
        y2 = jnp.maximum(acc2.T * s2_ref[...] + b2_ref[...], 0.0)   # (Cout, M2)
        o_ref[0] = y2.astype(o_ref.dtype)

    dims = dict(Hp=Hp, Wp=Wp, Tp=Tp, H_out=H_out, W_out=W_out, T_out=T_out,
                HWo=HWo, M2=M2)
    return kernel, dims


def stconv3d_forward(x_ncdhw, params, *, kernel_size=(3, 3, 3), stride=1, padding=1):
    """Fused separable STConv3D forward.  x: (N, C, T, H, W) like PyTorch."""
    KT, KH, KW = kernel_size
    st, sh, sw = (stride if isinstance(stride, (list, tuple)) else (stride,) * 3)
    pt, ph, pw = (padding if isinstance(padding, (list, tuple)) else (padding,) * 3)

    N, Cin, T, H, W = x_ncdhw.shape
    Cout = params["w1"].shape[-1]

    # NCDHW -> NTHWC: the only HBM-side layout pass (the output needs none).
    x = jnp.transpose(x_ncdhw, (0, 2, 3, 4, 1))

    kernel, d = _make_fused_kernel(T=T, H=H, W=W, Cin=Cin, Cout=Cout,
                                   KH=KH, KW=KW, KT=KT, SH=sh, SW=sw, ST=st,
                                   PH=ph, PW=pw, PT=pt)

    out = pl.pallas_call(
        kernel,
        out_shape=jax.ShapeDtypeStruct((N, Cout, d["M2"]), jnp.float32),
        grid=(N,),
        in_specs=[
            pl.BlockSpec((1, T, H, W, Cin), lambda n: (n, 0, 0, 0, 0)),
            pl.BlockSpec((KH * KW * Cin, Cout), lambda n: (0, 0)),
            pl.BlockSpec((1, Cout), lambda n: (0, 0)),
            pl.BlockSpec((1, Cout), lambda n: (0, 0)),
            pl.BlockSpec((KT, Cout, Cout), lambda n: (0, 0, 0)),
            pl.BlockSpec((Cout, 1), lambda n: (0, 0)),
            pl.BlockSpec((Cout, 1), lambda n: (0, 0)),
        ],
        out_specs=pl.BlockSpec((1, Cout, d["M2"]), lambda n: (n, 0, 0)),
        scratch_shapes=[
            pltpu.VMEM((T, d["Hp"], d["Wp"], Cin), jnp.float32),   # padded input
            pltpu.VMEM((d["Tp"], d["HWo"], Cout), jnp.float32),    # padded intermediate
        ],
        compiler_params=pltpu.CompilerParams(dimension_semantics=("parallel",)),
    )(x, params["w1"],
      params["scale1"].reshape(1, Cout), params["shift1"].reshape(1, Cout),
      params["w2"],
      params["scale2"].reshape(Cout, 1), params["shift2"].reshape(Cout, 1))

    # (N, Cout, T_out*H_out*W_out) -> NCDHW: free metadata reshape, no transpose.
    return out.reshape(N, Cout, d["T_out"], d["H_out"], d["W_out"])


# Pure-JAX reference (lax 3-D conv) for the correctness check.
def ref_forward(x_ncdhw, params, cin, cout):
    x = jnp.transpose(x_ncdhw, (0, 2, 3, 4, 1))
    dn = ('NDHWC', 'DHWIO', 'NDHWC')
    w1 = params["w1"].reshape(1, 3, 3, cin, cout)
    y = jax.lax.conv_general_dilated(x, w1, (1, 1, 1),
                                     ((0, 0), (1, 1), (1, 1)),
                                     dimension_numbers=dn)
    y = jnp.maximum(y * params["scale1"] + params["shift1"], 0.0)
    w2 = params["w2"].reshape(3, 1, 1, cout, cout)
    y = jax.lax.conv_general_dilated(y, w2, (1, 1, 1),
                                     ((1, 1), (0, 0), (0, 0)),
                                     dimension_numbers=dn)
    y = jnp.maximum(y * params["scale2"] + params["shift2"], 0.0)
    return jnp.transpose(y, (0, 4, 1, 2, 3))


def _bn_fold(cout, base, eps=1e-5):
    gamma = 1.0 + 0.10 * (jnp.arange(cout, dtype=jnp.float32) + base)
    beta = 0.05 * (jnp.arange(cout, dtype=jnp.float32) - base)
    mean = 0.01 * jnp.arange(cout, dtype=jnp.float32)
    var = 1.0 + 0.02 * jnp.arange(cout, dtype=jnp.float32)
    scale = gamma / jnp.sqrt(var + eps)
    shift = beta - mean * scale
    return scale, shift


if __name__ == "__main__":
    # STConv3D(input_dim=4, output_dim=8, kernel_size=[3,3,3], stride=1,
    #          padding=1, separable=True)
    Cin, Cout = 4, 8
    N, T, H, W = 2, 4, 8, 8

    key = jax.random.PRNGKey(0)
    k1, k2, kx = jax.random.split(key, 3)
    params = {
        # spatial weight stored im2col-ready: (KH*KW*Cin, Cout), K ordered (kh, kw, cin)
        "w1": 0.1 * jax.random.normal(k1, (3 * 3 * Cin, Cout), jnp.float32),
        # temporal weight: (KT, Cin=Cout, Cout)
        "w2": 0.1 * jax.random.normal(k2, (3, Cout, Cout), jnp.float32),
    }
    params["scale1"], params["shift1"] = _bn_fold(Cout, base=0.0)
    params["scale2"], params["shift2"] = _bn_fold(Cout, base=1.0)

    x = jax.random.normal(kx, (N, Cin, T, H, W), jnp.float32)   # NCDHW like PyTorch

    out = jax.block_until_ready(stconv3d_forward(x, params))
    ref = jax.block_until_ready(ref_forward(x, params, Cin, Cout))

    assert out.shape == (N, Cout, T, H, W), out.shape
    if not jnp.allclose(out, ref, rtol=1e-4, atol=1e-4):
        raise AssertionError("Pallas STConv3D output does not match reference")
    print("KERNEL_OK")
</pallas_src>

<mosaic_0001>
module attributes {stable_mosaic.version = 11 : i64} {
  func.func @kernel(%arg0: i32, %arg1: memref<1x4x8x8x4xf32, #tpu.memory_space<vmem>>, %arg2: memref<36x8xf32, #tpu.memory_space<vmem>>, %arg3: memref<1x8xf32, #tpu.memory_space<vmem>>, %arg4: memref<1x8xf32, #tpu.memory_space<vmem>>, %arg5: memref<3x8x8xf32, #tpu.memory_space<vmem>>, %arg6: memref<8x1xf32, #tpu.memory_space<vmem>>, %arg7: memref<8x1xf32, #tpu.memory_space<vmem>>, %arg8: memref<1x8x256xf32, #tpu.memory_space<vmem>>, %arg9: memref<4x10x10x4xf32, #tpu.memory_space<vmem>>, %arg10: memref<6x64x8xf32, #tpu.memory_space<vmem>>) attributes {dimension_semantics = [#tpu.dimension_semantics<parallel>], iteration_bounds = array<i64: 2>, scalar_prefetch = 0 : i64, scratch_operands = 2 : i64, tpu.core_type = #tpu.core_type<tc>, window_params = [{transform_indices = @transform_0, window_bounds = array<i64: 1, 4, 8, 8, 4>}, {pipeline_mode = #tpu.pipeline_mode<synchronous>, transform_indices = @transform_1, window_bounds = array<i64: 36, 8>}, {pipeline_mode = #tpu.pipeline_mode<synchronous>, transform_indices = @transform_2, window_bounds = array<i64: 1, 8>}, {pipeline_mode = #tpu.pipeline_mode<synchronous>, transform_indices = @transform_3, window_bounds = array<i64: 1, 8>}, {pipeline_mode = #tpu.pipeline_mode<synchronous>, transform_indices = @transform_4, window_bounds = array<i64: 3, 8, 8>}, {pipeline_mode = #tpu.pipeline_mode<synchronous>, transform_indices = @transform_5, window_bounds = array<i64: 8, 1>}, {pipeline_mode = #tpu.pipeline_mode<synchronous>, transform_indices = @transform_6, window_bounds = array<i64: 8, 1>}, {transform_indices = @transform_7, window_bounds = array<i64: 1, 8, 256>}]} {
    %cst = arith.constant 0.000000e+00 : f32
    %0 = vector.broadcast %cst : f32 to vector<4x10x10x4xf32>
    %c0 = arith.constant 0 : index
    %c0_0 = arith.constant 0 : index
    %c0_1 = arith.constant 0 : index
    %c0_2 = arith.constant 0 : index
    %1 = vector.load %arg9[%c0, %c0_0, %c0_1, %c0_2] : memref<4x10x10x4xf32, #tpu.memory_space<vmem>>, vector<4x10x10x4xf32>
    tpu.vector_store %arg9[%c0, %c0_0, %c0_1, %c0_2], %0 {strides = array<i32>} : memref<4x10x10x4xf32, #tpu.memory_space<vmem>>, vector<4x10x10x4xf32>,
    %c0_3 = arith.constant 0 : index
    %c0_4 = arith.constant 0 : index
    %c0_5 = arith.constant 0 : index
    %c0_6 = arith.constant 0 : index
    %c0_7 = arith.constant 0 : index
    %2 = vector.load %arg1[%c0_3, %c0_4, %c0_5, %c0_6, %c0_7] : memref<1x4x8x8x4xf32, #tpu.memory_space<vmem>>, vector<1x4x8x8x4xf32>
    %3 = vector.shape_cast %2 : vector<1x4x8x8x4xf32> to vector<4x8x8x4xf32>
    %c0_8 = arith.constant 0 : index
    %c1 = arith.constant 1 : index
    %c1_9 = arith.constant 1 : index
    %c0_10 = arith.constant 0 : index
    %4 = vector.load %arg9[%c0_8, %c1, %c1_9, %c0_10] : memref<4x10x10x4xf32, #tpu.memory_space<vmem>>, vector<4x8x8x4xf32>
    tpu.vector_store %arg9[%c0_8, %c1, %c1_9, %c0_10], %3 {strides = array<i32>} : memref<4x10x10x4xf32, #tpu.memory_space<vmem>>, vector<4x8x8x4xf32>,
    %c0_11 = arith.constant 0 : index
    %c0_12 = arith.constant 0 : index
    %c0_13 = arith.constant 0 : index
    %c0_14 = arith.constant 0 : index
    %5 = vector.load %arg9[%c0_11, %c0_12, %c0_13, %c0_14] : memref<4x10x10x4xf32, #tpu.memory_space<vmem>>, vector<4x8x8x4xf32>
    %6 = vector.shape_cast %5 : vector<4x8x8x4xf32> to vector<256x4xf32>
    %c0_15 = arith.constant 0 : index
    %c0_16 = arith.constant 0 : index
    %c1_17 = arith.constant 1 : index
    %c0_18 = arith.constant 0 : index
    %7 = vector.load %arg9[%c0_15, %c0_16, %c1_17, %c0_18] : memref<4x10x10x4xf32, #tpu.memory_space<vmem>>, vector<4x8x8x4xf32>
    %8 = vector.shape_cast %7 : vector<4x8x8x4xf32> to vector<256x4xf32>
    %c0_19 = arith.constant 0 : index
    %c0_20 = arith.constant 0 : index
    %c2 = arith.constant 2 : index
    %c0_21 = arith.constant 0 : index
    %9 = vector.load %arg9[%c0_19, %c0_20, %c2, %c0_21] : memref<4x10x10x4xf32, #tpu.memory_space<vmem>>, vector<4x8x8x4xf32>
    %10 = vector.shape_cast %9 : vector<4x8x8x4xf32> to vector<256x4xf32>
    %c0_22 = arith.constant 0 : index
    %c1_23 = arith.constant 1 : index
    %c0_24 = arith.constant 0 : index
    %c0_25 = arith.constant 0 : index
    %11 = vector.load %arg9[%c0_22, %c1_23, %c0_24, %c0_25] : memref<4x10x10x4xf32, #tpu.memory_space<vmem>>, vector<4x8x8x4xf32>
    %12 = vector.shape_cast %11 : vector<4x8x8x4xf32> to vector<256x4xf32>
    %c0_26 = arith.constant 0 : index
    %c1_27 = arith.constant 1 : index
    %c1_28 = arith.constant 1 : index
    %c0_29 = arith.constant 0 : index
    %13 = vector.load %arg9[%c0_26, %c1_27, %c1_28, %c0_29] : memref<4x10x10x4xf32, #tpu.memory_space<vmem>>, vector<4x8x8x4xf32>
    %14 = vector.shape_cast %13 : vector<4x8x8x4xf32> to vector<256x4xf32>
    %c0_30 = arith.constant 0 : index
    %c1_31 = arith.constant 1 : index
    %c2_32 = arith.constant 2 : index
    %c0_33 = arith.constant 0 : index
    %15 = vector.load %arg9[%c0_30, %c1_31, %c2_32, %c0_33] : memref<4x10x10x4xf32, #tpu.memory_space<vmem>>, vector<4x8x8x4xf32>
    %16 = vector.shape_cast %15 : vector<4x8x8x4xf32> to vector<256x4xf32>
    %c0_34 = arith.constant 0 : index
    %c2_35 = arith.constant 2 : index
    %c0_36 = arith.constant 0 : index
    %c0_37 = arith.constant 0 : index
    %17 = vector.load %arg9[%c0_34, %c2_35, %c0_36, %c0_37] : memref<4x10x10x4xf32, #tpu.memory_space<vmem>>, vector<4x8x8x4xf32>
    %18 = vector.shape_cast %17 : vector<4x8x8x4xf32> to vector<256x4xf32>
    %c0_38 = arith.constant 0 : index
    %c2_39 = arith.constant 2 : index
    %c1_40 = arith.constant 1 : index
    %c0_41 = arith.constant 0 : index
    %19 = vector.load %arg9[%c0_38, %c2_39, %c1_40, %c0_41] : memref<4x10x10x4xf32, #tpu.memory_space<vmem>>, vector<4x8x8x4xf32>
    %20 = vector.shape_cast %19 : vector<4x8x8x4xf32> to vector<256x4xf32>
    %c0_42 = arith.constant 0 : index
    %c2_43 = arith.constant 2 : index
    %c2_44 = arith.constant 2 : index
    %c0_45 = arith.constant 0 : index
    %21 = vector.load %arg9[%c0_42, %c2_43, %c2_44, %c0_45] : memref<4x10x10x4xf32, #tpu.memory_space<vmem>>, vector<4x8x8x4xf32>
    %22 = vector.shape_cast %21 : vector<4x8x8x4xf32> to vector<256x4xf32>
    %23 = tpu.concatenate %6, %8, %10, %12, %14, %16, %18, %20, %22 in 1 : vector<256x4xf32>, vector<256x4xf32>, vector<256x4xf32>, vector<256x4xf32>, vector<256x4xf32>, vector<256x4xf32>, vector<256x4xf32>, vector<256x4xf32>, vector<256x4xf32> -> vector<256x36xf32>
    %c0_46 = arith.constant 0 : index
    %c0_47 = arith.constant 0 : index
    %24 = vector.load %arg2[%c0_46, %c0_47] : memref<36x8xf32, #tpu.memory_space<vmem>>, vector<36x8xf32>
    %cst_48 = arith.constant dense<0.000000e+00> : vector<256x8xf32>
    %25 = tpu.matmul %23, %24, %cst_48 {dimension_numbers = #tpu.dot_dimension_numbers<[1], [0], [0], [1], [0, 0, 1, 1], [], []>} : vector<256x36xf32>, vector<36x8xf32>, vector<256x8xf32> -> vector<256x8xf32>
    %c0_49 = arith.constant 0 : index
    %c0_50 = arith.constant 0 : index
    %26 = vector.load %arg3[%c0_49, %c0_50] : memref<1x8xf32, #tpu.memory_space<vmem>>, vector<1x8xf32>
    %27 = vector.broadcast %26 : vector<1x8xf32> to vector<256x8xf32>
    %28 = arith.mulf %25, %27 : vector<256x8xf32>
    %c0_51 = arith.constant 0 : index
    %c0_52 = arith.constant 0 : index
    %29 = vector.load %arg4[%c0_51, %c0_52] : memref<1x8xf32, #tpu.memory_space<vmem>>, vector<1x8xf32>
    %30 = vector.broadcast %29 : vector<1x8xf32> to vector<256x8xf32>
    %31 = arith.addf %28, %30 : vector<256x8xf32>
    %cst_53 = arith.constant 0.000000e+00 : f32
    %32 = vector.broadcast %cst_53 : f32 to vector<256x8xf32>
    %33 = arith.maximumf %31, %32 : vector<256x8xf32>
    %cst_54 = arith.constant 0.000000e+00 : f32
    %34 = vector.broadcast %cst_54 : f32 to vector<6x64x8xf32>
    %c0_55 = arith.constant 0 : index
    %c0_56 = arith.constant 0 : index
    %c0_57 = arith.constant 0 : index
    %35 = vector.load %arg10[%c0_55, %c0_56, %c0_57] : memref<6x64x8xf32, #tpu.memory_space<vmem>>, vector<6x64x8xf32>
    tpu.vector_store %arg10[%c0_55, %c0_56, %c0_57], %34 {strides = array<i32>} : memref<6x64x8xf32, #tpu.memory_space<vmem>>, vector<6x64x8xf32>,
    %36 = vector.shape_cast %33 : vector<256x8xf32> to vector<4x64x8xf32>
    %c1_58 = arith.constant 1 : index
    %c0_59 = arith.constant 0 : index
    %c0_60 = arith.constant 0 : index
    %37 = vector.load %arg10[%c1_58, %c0_59, %c0_60] : memref<6x64x8xf32, #tpu.memory_space<vmem>>, vector<4x64x8xf32>
    tpu.vector_store %arg10[%c1_58, %c0_59, %c0_60], %36 {strides = array<i32>} : memref<6x64x8xf32, #tpu.memory_space<vmem>>, vector<4x64x8xf32>,
    %cst_61 = arith.constant 0.000000e+00 : f32
    %38 = vector.broadcast %cst_61 : f32 to vector<256x8xf32>
    %c0_62 = arith.constant 0 : index
    %c0_63 = arith.constant 0 : index
    %c0_64 = arith.constant 0 : index
    %39 = vector.load %arg10[%c0_62, %c0_63, %c0_64] : memref<6x64x8xf32, #tpu.memory_space<vmem>>, vector<4x64x8xf32>
    %40 = vector.shape_cast %39 : vector<4x64x8xf32> to vector<256x8xf32>
    %c0_65 = arith.constant 0 : index
    %c0_66 = arith.constant 0 : index
    %c0_67 = arith.constant 0 : index
    %41 = vector.load %arg5[%c0_65, %c0_66, %c0_67] : memref<3x8x8xf32, #tpu.memory_space<vmem>>, vector<1x8x8xf32>
    %42 = vector.shape_cast %41 : vector<1x8x8xf32> to vector<8x8xf32>
    %cst_68 = arith.constant dense<0.000000e+00> : vector<256x8xf32>
    %43 = tpu.matmul %40, %42, %cst_68 {dimension_numbers = #tpu.dot_dimension_numbers<[1], [0], [0], [1], [0, 0, 1, 1], [], []>} : vector<256x8xf32>, vector<8x8xf32>, vector<256x8xf32> -> vector<256x8xf32>
    %44 = arith.addf %38, %43 : vector<256x8xf32>
    %c1_69 = arith.constant 1 : index
    %c0_70 = arith.constant 0 : index
    %c0_71 = arith.constant 0 : index
    %45 = vector.load %arg10[%c1_69, %c0_70, %c0_71] : memref<6x64x8xf32, #tpu.memory_space<vmem>>, vector<4x64x8xf32>
    %46 = vector.shape_cast %45 : vector<4x64x8xf32> to vector<256x8xf32>
    %c1_72 = arith.constant 1 : index
    %c0_73 = arith.constant 0 : index
    %c0_74 = arith.constant 0 : index
    %47 = vector.load %arg5[%c1_72, %c0_73, %c0_74] : memref<3x8x8xf32, #tpu.memory_space<vmem>>, vector<1x8x8xf32>
    %48 = vector.shape_cast %47 : vector<1x8x8xf32> to vector<8x8xf32>
    %cst_75 = arith.constant dense<0.000000e+00> : vector<256x8xf32>
    %49 = tpu.matmul %46, %48, %cst_75 {dimension_numbers = #tpu.dot_dimension_numbers<[1], [0], [0], [1], [0, 0, 1, 1], [], []>} : vector<256x8xf32>, vector<8x8xf32>, vector<256x8xf32> -> vector<256x8xf32>
    %50 = arith.addf %44, %49 : vector<256x8xf32>
    %c2_76 = arith.constant 2 : index
    %c0_77 = arith.constant 0 : index
    %c0_78 = arith.constant 0 : index
    %51 = vector.load %arg10[%c2_76, %c0_77, %c0_78] : memref<6x64x8xf32, #tpu.memory_space<vmem>>, vector<4x64x8xf32>
    %52 = vector.shape_cast %51 : vector<4x64x8xf32> to vector<256x8xf32>
    %c2_79 = arith.constant 2 : index
    %c0_80 = arith.constant 0 : index
    %c0_81 = arith.constant 0 : index
    %53 = vector.load %arg5[%c2_79, %c0_80, %c0_81] : memref<3x8x8xf32, #tpu.memory_space<vmem>>, vector<1x8x8xf32>
    %54 = vector.shape_cast %53 : vector<1x8x8xf32> to vector<8x8xf32>
    %cst_82 = arith.constant dense<0.000000e+00> : vector<256x8xf32>
    %55 = tpu.matmul %52, %54, %cst_82 {dimension_numbers = #tpu.dot_dimension_numbers<[1], [0], [0], [1], [0, 0, 1, 1], [], []>} : vector<256x8xf32>, vector<8x8xf32>, vector<256x8xf32> -> vector<256x8xf32>
    %56 = arith.addf %50, %55 : vector<256x8xf32>
    %57 = tpu.transpose %56, [1, 0] : vector<256x8xf32> -> vector<8x256xf32>
    %c0_83 = arith.constant 0 : index
    %c0_84 = arith.constant 0 : index
    %58 = vector.load %arg6[%c0_83, %c0_84] : memref<8x1xf32, #tpu.memory_space<vmem>>, vector<8x1xf32>
    %59 = vector.broadcast %58 : vector<8x1xf32> to vector<8x256xf32>
    %60 = arith.mulf %57, %59 : vector<8x256xf32>
    %c0_85 = arith.constant 0 : index
    %c0_86 = arith.constant 0 : index
    %61 = vector.load %arg7[%c0_85, %c0_86] : memref<8x1xf32, #tpu.memory_space<vmem>>, vector<8x1xf32>
    %62 = vector.broadcast %61 : vector<8x1xf32> to vector<8x256xf32>
    %63 = arith.addf %60, %62 : vector<8x256xf32>
    %cst_87 = arith.constant 0.000000e+00 : f32
    %64 = vector.broadcast %cst_87 : f32 to vector<8x256xf32>
    %65 = arith.maximumf %63, %64 : vector<8x256xf32>
    %c0_88 = arith.constant 0 : index
    %c0_89 = arith.constant 0 : index
    %c0_90 = arith.constant 0 : index
    %66 = vector.load %arg8[%c0_88, %c0_89, %c0_90] : memref<1x8x256xf32, #tpu.memory_space<vmem>>, vector<1x8x256xf32>
    %67 = vector.shape_cast %66 : vector<1x8x256xf32> to vector<8x256xf32>
    %68 = vector.shape_cast %65 : vector<8x256xf32> to vector<1x8x256xf32>
    tpu.vector_store %arg8[%c0_88, %c0_89, %c0_90], %68 {strides = array<i32>} : memref<1x8x256xf32, #tpu.memory_space<vmem>>, vector<1x8x256xf32>,
    return
  }
  func.func @transform_0(%arg0: i32) -> (i32, i32, i32, i32, i32) {
    %c0_i32 = arith.constant 0 : i32
    %c0_i32_0 = arith.constant 0 : i32
    %c0_i32_1 = arith.constant 0 : i32
    %c0_i32_2 = arith.constant 0 : i32
    %c0_i32_3 = arith.constant 0 : i32
    return %arg0, %c0_i32, %c0_i32_0, %c0_i32_1, %c0_i32_2 : i32, i32, i32, i32, i32
  }
  func.func @transform_1(%arg0: i32) -> (i32, i32) {
    %c0_i32 = arith.constant 0 : i32
    %c0_i32_0 = arith.constant 0 : i32
    %c0_i32_1 = arith.constant 0 : i32
    return %c0_i32, %c0_i32_0 : i32, i32
  }
  func.func @transform_2(%arg0: i32) -> (i32, i32) {
    %c0_i32 = arith.constant 0 : i32
    %c0_i32_0 = arith.constant 0 : i32
    %c0_i32_1 = arith.constant 0 : i32
    return %c0_i32, %c0_i32_0 : i32, i32
  }
  func.func @transform_3(%arg0: i32) -> (i32, i32) {
    %c0_i32 = arith.constant 0 : i32
    %c0_i32_0 = arith.constant 0 : i32
    %c0_i32_1 = arith.constant 0 : i32
    return %c0_i32, %c0_i32_0 : i32, i32
  }
  func.func @transform_4(%arg0: i32) -> (i32, i32, i32) {
    %c0_i32 = arith.constant 0 : i32
    %c0_i32_0 = arith.constant 0 : i32
    %c0_i32_1 = arith.constant 0 : i32
    %c0_i32_2 = arith.constant 0 : i32
    return %c0_i32, %c0_i32_0, %c0_i32_1 : i32, i32, i32
  }
  func.func @transform_5(%arg0: i32) -> (i32, i32) {
    %c0_i32 = arith.constant 0 : i32
    %c0_i32_0 = arith.constant 0 : i32
    %c0_i32_1 = arith.constant 0 : i32
    return %c0_i32, %c0_i32_0 : i32, i32
  }
  func.func @transform_6(%arg0: i32) -> (i32, i32) {
    %c0_i32 = arith.constant 0 : i32
    %c0_i32_0 = arith.constant 0 : i32
    %c0_i32_1 = arith.constant 0 : i32
    return %c0_i32, %c0_i32_0 : i32, i32
  }
  func.func @transform_7(%arg0: i32) -> (i32, i32, i32) {
    %c0_i32 = arith.constant 0 : i32
    %c0_i32_0 = arith.constant 0 : i32
    %c0_i32_1 = arith.constant 0 : i32
    return %arg0, %c0_i32, %c0_i32_0 : i32, i32, i32
  }
}

</mosaic_0001>

<bundles_post_ra>
// kernel: tpu_custom_call.1
= control target key start
LH: loop header
LB: loop body
LE: loop exit
PB: predicated region body
PF: predicated region fallthrough
CT: control target
= control target key end

     0   :  { %12 = vsyncpa [#allocation5], 0  ;;  %s6411_s0 = inlined_call_operand.vmem [shape: f32[2,4,8,8,4], index: 0, kind: input, shape index: {}]   ;;  %s6412_s1 = inlined_call_operand.vmem [shape: f32[36,8], index: 1, kind: input, shape index: {}]   ;;  %s6413_s2 = inlined_call_operand.vmem [shape: f32[1,8], index: 2, kind: input, shape index: {}]   ;;  %s6414_s3 = inlined_call_operand.vmem [shape: f32[1,8], index: 3, kind: input, shape index: {}]   ;;  %s6415_s4 = inlined_call_operand.vmem [shape: f32[3,8,8], index: 4, kind: input, shape index: {}]   ;;  %s6416_s5 = inlined_call_operand.vmem [shape: f32[8,1], index: 5, kind: input, shape index: {}]   ;;  %s6417_s6 = inlined_call_operand.vmem [shape: f32[8,1], index: 6, kind: input, shape index: {}]   ;;  %s6418_s7 = inlined_call_operand.hbm [shape: f32[2,8,256], index: 7, kind: output, shape index: {}]  }
   0x1   :  { %14 = vsyncpa [#allocation5 + $0x1], 0  ;;  %s4510_s24 = smov 0   ;;  %s4512_s25 = smov 0  }
   0x2   :  { %s4514_s26 = smov 0   ;;  %s4516_s27 = smov 0  }
   0x3 LB: > { %s4531_s28 = sadd.s32 4294967295, %s4457_s27   ;;  %s3777_s29 = sadd.s32 4294967294, %s4457_s27   ;;  %s4457_s27 = sphi %s4516_s27, %s6424_s27   ;;  %s4453_s26 = sphi %s4514_s26, %s6423_s26   ;;  %s4449_s25 = sphi %s4512_s25, %s6422_s25   ;;  %s4445_s24 = sphi %s4510_s24, %s6421_s24  }
   0x4   : > { %s4535_s30 = sadd.s32 1, %s4457_s27   ;;  %s179_s8 = sadd.s32 1, %s4453_s26 }
   0x5   : > { %s176_s9 = ssub.s32 %s4457_s27, %s4535_s30  ;;  %p189_p0 = scmp.ne.s32.totalorder %s4453_s26, %s4449_s25 }
   0x6   : > { %p177_p1 = scmp.eq.s32.totalorder %s176_s9, 0  ;;  %p190_p2 = scmp.eq.s32.totalorder %s4531_s28, 1 }
   0x7   : > { %p195_p3 = scmp.ne.s32.totalorder %s4449_s25, %s4445_s24  ;;  %p196_p4 = scmp.eq.s32.totalorder %s3777_s29, 1 }
   0x8   : > { %s4546_s10 = scalar_select %p177_p1, %s4453_s26, %s179_s8  }
   0x9   : > { %p4548_p5 = por %p190_p2, %p189_p0  ;;  %p4552_p6 = por %p196_p4, %p195_p3 }
   0xa   : > { %p3780_p7 = scmp.ge.s32.totalorder %s4457_s27, 1  ;;  %p240_p8 = scmp.lt.s32.totalorder %s4457_s27, 3 }
   0xc   : > { %p241_p9 = pnand %p3780_p7, %p240_p8 }
   0xd   : > { %vm277_vm0 = vcmask (!%p241_p9), 31744   ;;  %vm279_vm1 = vcmask (!%p241_p9), 25600   ;;  %vm1769_vm2 = vcmask (!%p241_p9), 64512   ;;  %v4459_v0 = vmov (!%p241_p9), 0.0   ;;  %p272_p10 = scmp.lt.s32.totalorder (!%p241_p9), %s4531_s28, 1  ;;  %s4460_s18 = smov (!%p241_p9), 8  }
   0xe   : > { %244 = sbr.rel (%p241_p9) target bundleno = 1400 (0x578), region = 48  ;;  %278 = vst.msk [vmem:[#allocation2] sm:$0xff] (!%p241_p9), %vm277_vm0, %v4459_v0  ;;  %281 = vst.msk [vmem:[#allocation2 + $0x10] sm:$0xff] (!%p241_p9), %vm277_vm0, %v4459_v0  ;;  %s4461_s19 = smov (!%p241_p9), 4   ;;  %v2000_v21 = vld [vmem:[%s6412_s1] sm:$0xff] (!%p241_p9)  ;;  %v2001_v22 = vld [vmem:[%s6412_s1 + $0x8] sm:$0xff] (!%p241_p9) }
   0xf   : > { %280 = vst.msk [vmem:[#allocation2 + $0x8] sm:$0x3] (!%p241_p9), %vm279_vm1, %v4459_v0  ;;  %282 = vst.msk [vmem:[#allocation2 + $0x18] sm:$0x3] (!%p241_p9), %vm279_vm1, %v4459_v0  ;;  %s4462_s20 = smov (!%p241_p9), 12   ;;  %s4463_s21 = smov (!%p241_p9), 16   ;;  %v4268_v23 = vpack.c.bf16 (!%p241_p9), %v2001_v22, %v2000_v21 }
  0x10   : > { %283 = vst.msk [vmem:[#allocation2 + $0x20] sm:$0xff] (!%p241_p9), %vm277_vm0, %v4459_v0  ;;  %285 = vst.msk [vmem:[#allocation2 + $0x30] sm:$0xff] (!%p241_p9), %vm277_vm0, %v4459_v0  ;;  %s4464_s22 = smov (!%p241_p9), 20   ;;  %v2002_v26 = vld [vmem:[%s6412_s1 + $0x10] sm:$0xff] (!%p241_p9)  ;;  %v2003_v27 = vld [vmem:[%s6412_s1 + $0x18] sm:$0xff] (!%p241_p9)  ;;  %s4466_s29 = smov (!%p241_p9), 28  }
  0x11   : > { %284 = vst.msk [vmem:[#allocation2 + $0x28] sm:$0x3] (!%p241_p9), %vm279_vm1, %v4459_v0  ;;  %286 = vst.msk [vmem:[#allocation2 + $0x38] sm:$0x3] (!%p241_p9), %vm279_vm1, %v4459_v0  ;;  %4269 = vmatprep.subr.bf16.mxu0 (!%p241_p9), %v4268_v23  ;;  %v4272_v28 = vpack.c.bf16 (!%p241_p9), %v2003_v27, %v2002_v26  ;;  %v2004_v30 = vld [vmem:[%s6412_s1 + $0x20] sm:$0xf] (!%p241_p9) }
  0x12   : > { %287 = vst.msk [vmem:[#allocation2 + $0x40] sm:$0xff] (!%p241_p9), %vm277_vm0, %v4459_v0  ;;  %289 = vst.msk [vmem:[#allocation2 + $0x50] sm:$0xff] (!%p241_p9), %vm277_vm0, %v4459_v0  ;;  %4271 = vmatpush3.bf16.msra.mxu0 (!%p241_p9), %v4268_v23  ;;  %vm2102_vm3 = vcmask (!%p241_p9), 1043456   ;;  %vm1802_vm4 = vcmask (!%p241_p9), 97280   ;;  %vm1835_vm5 = vcmask (!%p241_p9), 130048   ;;  %vm1868_vm6 = vcmask (!%p241_p9), 162816  }
  0x13   : > { %288 = vst.msk [vmem:[#allocation2 + $0x48] sm:$0x3] (!%p241_p9), %vm279_vm1, %v4459_v0  ;;  %290 = vst.msk [vmem:[#allocation2 + $0x58] sm:$0x3] (!%p241_p9), %vm279_vm1, %v4459_v0  ;;  %4273 = vmatprep.subr.bf16.mxu0 (!%p241_p9), %v4272_v28  ;;  %vm1901_vm7 = vcmask (!%p241_p9), 195584   ;;  %vm1934_vm8 = vcmask (!%p241_p9), 228352  }
  0x14   : > { %291 = vst.msk [vmem:[#allocation2 + $0x60] sm:$0xff] (!%p241_p9), %vm277_vm0, %v4459_v0  ;;  %293 = vst.msk [vmem:[#allocation2 + $0x70] sm:$0xff] (!%p241_p9), %vm277_vm0, %v4459_v0  ;;  %vm1967_vm9 = vcmask (!%p241_p9), 261120   ;;  %vm2005_vm10 = vcmask (!%p241_p9), 293888  }
  0x15   : > { %292 = vst.msk [vmem:[#allocation2 + $0x68] sm:$0x3] %vm279_vm1, %v4459_v0  ;;  %294 = vst.msk [vmem:[#allocation2 + $0x78] sm:$0x3] %vm279_vm1, %v4459_v0  ;;  %s273_s13 = scalar_select %p272_p10, %s4531_s28, 1 }
  0x16   : > { %295 = vst.msk [vmem:[#allocation2 + $0x80] sm:$0xff] %vm277_vm0, %v4459_v0  ;;  %297 = vst.msk [vmem:[#allocation2 + $0x90] sm:$0xff] %vm277_vm0, %v4459_v0  ;;  %v488_v4 = vld [vmem:[#allocation2 + $0x2] sm:$0xff]  ;;  %4275 = vmatpush3.bf16.msra.mxu0 %v4272_v28 }
  0x17   : > { %296 = vst.msk [vmem:[#allocation2 + $0x88] sm:$0x3] %vm279_vm1, %v4459_v0  ;;  %298 = vst.msk [vmem:[#allocation2 + $0x98] sm:$0x3] %vm279_vm1, %v4459_v0  ;;  %s3922_s14 = sshll.u32 %s273_s13, 8  ;;  %v456_v5 = vld [vmem:[#allocation2 + $0x1] sm:$0xff]  ;;  %873 = vrot.lane.b32.xlu1 %v488_v4, %s4460_s18  ;;  %4068 = vmatprep.subr.msk.mxu0 %vm2102_vm3, %v2004_v30 }
  0x18   : > { %299 = vst.msk [vmem:[#allocation2 + $0xa0] sm:$0xff] %vm277_vm0, %v4459_v0  ;;  %301 = vst.msk [vmem:[#allocation2 + $0xb0] sm:$0xff] %vm277_vm0, %v4459_v0  ;;  %s4821_s17 = scalar_lea.vmem %s6411_s0, %s3922_s14  ;;  %745 = vrot.lane.b32.xlu0 %v456_v5, %s4461_s19  ;;  %s4465_s13 = smov 24  }
  0x19   : > { %300 = vst.msk [vmem:[#allocation2 + $0xa8] sm:$0x3] %vm279_vm1, %v4459_v0  ;;  %302 = vst.msk [vmem:[#allocation2 + $0xb8] sm:$0x3] %vm279_vm1, %v4459_v0  ;;  %v359_v1 = vld [vmem:[%s4821_s17] sm:$0xff]  ;;  %v360_v2 = vld [vmem:[%s4821_s17 + $0x8] sm:$0xff] }
  0x1a   : > { %303 = vst.msk [vmem:[#allocation2 + $0xc0] sm:$0xff] %vm277_vm0, %v4459_v0  ;;  %305 = vst.msk [vmem:[#allocation2 + $0xd0] sm:$0xff] %vm277_vm0, %v4459_v0  ;;  %v361_v3 = vld [vmem:[%s4821_s17 + $0x10] sm:$0xff]  ;;  %v362_v6 = vld [vmem:[%s4821_s17 + $0x18] sm:$0xff]  ;;  %4069 = vmatpush3.msk.msra.mxu0 %vm2102_vm3, %v2004_v30  ;;  %s4467_s14 = smov 32  }
  0x1b   : > { %304 = vst.msk [vmem:[#allocation2 + $0xc8] sm:$0x3] %vm279_vm1, %v4459_v0  ;;  %306 = vst.msk [vmem:[#allocation2 + $0xd8] sm:$0x3] %vm279_vm1, %v4459_v0  ;;  %v363_v7 = vld [vmem:[%s4821_s17 + $0x20] sm:$0xff]  ;;  %v364_v8 = vld [vmem:[%s4821_s17 + $0x28] sm:$0xff] }
  0x1c   : > { %307 = vst.msk [vmem:[#allocation2 + $0xe0] sm:$0xff] %vm277_vm0, %v4459_v0  ;;  %309 = vst.msk [vmem:[#allocation2 + $0xf0] sm:$0xff] %vm277_vm0, %v4459_v0  ;;  %v365_v9 = vld [vmem:[%s4821_s17 + $0x30] sm:$0xff]  ;;  %v366_v10 = vld [vmem:[%s4821_s17 + $0x38] sm:$0xff] }
  0x1d   : > { %308 = vst.msk [vmem:[#allocation2 + $0xe8] sm:$0x3] %vm279_vm1, %v4459_v0  ;;  %310 = vst.msk [vmem:[#allocation2 + $0xf8] sm:$0x3] %vm279_vm1, %v4459_v0  ;;  %v367_v11 = vld [vmem:[%s4821_s17 + $0x40] sm:$0xff]  ;;  %v368_v12 = vld [vmem:[%s4821_s17 + $0x48] sm:$0xff] }
  0x1e   : > { %311 = vst.msk [vmem:[#allocation2 + $0x100] sm:$0xff] %vm277_vm0, %v4459_v0  ;;  %313 = vst.msk [vmem:[#allocation2 + $0x110] sm:$0xff] %vm277_vm0, %v4459_v0  ;;  %v369_v18 = vld [vmem:[%s4821_s17 + $0x50] sm:$0xff]  ;;  %v370_v29 = vld [vmem:[%s4821_s17 + $0x58] sm:$0xff] }
  0x1f   : > { %312 = vst.msk [vmem:[#allocation2 + $0x108] sm:$0x3] %vm279_vm1, %v4459_v0  ;;  %314 = vst.msk [vmem:[#allocation2 + $0x118] sm:$0x3] %vm279_vm1, %v4459_v0  ;;  %v371_v33 = vld [vmem:[%s4821_s17 + $0x60] sm:$0xff]  ;;  %v372_v38 = vld [vmem:[%s4821_s17 + $0x68] sm:$0xff] }
  0x20   : > { %315 = vst.msk [vmem:[#allocation2 + $0x120] sm:$0xff] %vm277_vm0, %v4459_v0  ;;  %317 = vst.msk [vmem:[#allocation2 + $0x130] sm:$0xff] %vm277_vm0, %v4459_v0  ;;  %v373_v41 = vld [vmem:[%s4821_s17 + $0x70] sm:$0xff]  ;;  %v374_v46 = vld [vmem:[%s4821_s17 + $0x78] sm:$0xff] }
  0x21   : > { %316 = vst.msk [vmem:[#allocation2 + $0x128] sm:$0x3] %vm279_vm1, %v4459_v0  ;;  %318 = vst.msk [vmem:[#allocation2 + $0x138] sm:$0x3] %vm279_vm1, %v4459_v0  ;;  %v464_v49 = vld [vmem:[#allocation2 + $0xa1] sm:$0xff]  ;;  %v624_v63 = vld [vmem:[#allocation2 + $0x90] sm:$0xff] }
  0x22   : > { %319 = vst.msk [vmem:[#allocation2 + $0x140] sm:$0xff] %vm277_vm0, %v4459_v0  ;;  %321 = vst.msk [vmem:[#allocation2 + $0x150] sm:$0xff] %vm277_vm0, %v4459_v0  ;;  %v375_v50 = vld [vmem:[%s4821_s17 + $0x80] sm:$0xff]  ;;  %v376_v62 = vld [vmem:[%s4821_s17 + $0x88] sm:$0xff] }
  0x23   : > { %320 = vst.msk [vmem:[#allocation2 + $0x148] sm:$0x3] %vm279_vm1, %v4459_v0  ;;  %322 = vst.msk [vmem:[#allocation2 + $0x158] sm:$0x3] %vm279_vm1, %v4459_v0  ;;  %v496_v53 = vld [vmem:[#allocation2 + $0xa2] sm:$0xff]  ;;  %v656_v5 = vld [vmem:[#allocation2 + $0x91] sm:$0xff] }
  0x24   : > { %323 = vst.msk [vmem:[#allocation2 + $0x160] sm:$0xff] %vm277_vm0, %v4459_v0  ;;  %325 = vst.msk [vmem:[#allocation2 + $0x170] sm:$0xff] %vm277_vm0, %v4459_v0 }
  0x25   : > { %324 = vst.msk [vmem:[#allocation2 + $0x168] sm:$0x3] %vm279_vm1, %v4459_v0  ;;  %326 = vst.msk [vmem:[#allocation2 + $0x178] sm:$0x3] %vm279_vm1, %v4459_v0 }
  0x26   : > { %327 = vst.msk [vmem:[#allocation2 + $0x180] sm:$0xff] %vm277_vm0, %v4459_v0  ;;  %329 = vst.msk [vmem:[#allocation2 + $0x190] sm:$0xff] %vm277_vm0, %v4459_v0 }
  0x27   : > { %328 = vst.msk [vmem:[#allocation2 + $0x188] sm:$0x3] %vm279_vm1, %v4459_v0  ;;  %330 = vst.msk [vmem:[#allocation2 + $0x198] sm:$0x3] %vm279_vm1, %v4459_v0 }
  0x28   : > { %331 = vst.msk [vmem:[#allocation2 + $0x1a0] sm:$0xff] %vm277_vm0, %v4459_v0  ;;  %333 = vst.msk [vmem:[#allocation2 + $0x1b0] sm:$0xff] %vm277_vm0, %v4459_v0 }
  0x29   : > { %332 = vst.msk [vmem:[#allocation2 + $0x1a8] sm:$0x3] %vm279_vm1, %v4459_v0  ;;  %334 = vst.msk [vmem:[#allocation2 + $0x1b8] sm:$0x3] %vm279_vm1, %v4459_v0 }
  0x2a   : > { %335 = vst.msk [vmem:[#allocation2 + $0x1c0] sm:$0xff] %vm277_vm0, %v4459_v0  ;;  %337 = vst.msk [vmem:[#allocation2 + $0x1d0] sm:$0xff] %vm277_vm0, %v4459_v0 }
  0x2b   : > { %336 = vst.msk [vmem:[#allocation2 + $0x1c8] sm:$0x3] %vm279_vm1, %v4459_v0  ;;  %338 = vst.msk [vmem:[#allocation2 + $0x1d8] sm:$0x3] %vm279_vm1, %v4459_v0 }
  0x2c   : > { %339 = vst.msk [vmem:[#allocation2 + $0x1e0] sm:$0xff] %vm277_vm0, %v4459_v0  ;;  %341 = vst.msk [vmem:[#allocation2 + $0x1f0] sm:$0xff] %vm277_vm0, %v4459_v0 }
  0x2d   : > { %340 = vst.msk [vmem:[#allocation2 + $0x1e8] sm:$0x3] %vm279_vm1, %v4459_v0  ;;  %342 = vst.msk [vmem:[#allocation2 + $0x1f8] sm:$0x3] %vm279_vm1, %v4459_v0 }
  0x2e   : > { %343 = vst.msk [vmem:[#allocation2 + $0x200] sm:$0xff] %vm277_vm0, %v4459_v0  ;;  %345 = vst.msk [vmem:[#allocation2 + $0x210] sm:$0xff] %vm277_vm0, %v4459_v0 }
  0x2f   : > { %344 = vst.msk [vmem:[#allocation2 + $0x208] sm:$0x3] %vm279_vm1, %v4459_v0  ;;  %346 = vst.msk [vmem:[#allocation2 + $0x218] sm:$0x3] %vm279_vm1, %v4459_v0 }
  0x30   : > { %347 = vst.msk [vmem:[#allocation2 + $0x220] sm:$0xff] %vm277_vm0, %v4459_v0  ;;  %349 = vst.msk [vmem:[#allocation2 + $0x230] sm:$0xff] %vm277_vm0, %v4459_v0 }
  0x31   : > { %348 = vst.msk [vmem:[#allocation2 + $0x228] sm:$0x3] %vm279_vm1, %v4459_v0  ;;  %350 = vst.msk [vmem:[#allocation2 + $0x238] sm:$0x3] %vm279_vm1, %v4459_v0 }
  0x32   : > { %351 = vst.msk [vmem:[#allocation2 + $0x240] sm:$0xff] %vm277_vm0, %v4459_v0  ;;  %353 = vst.msk [vmem:[#allocation2 + $0x250] sm:$0xff] %vm277_vm0, %v4459_v0 }
  0x33   : > { %352 = vst.msk [vmem:[#allocation2 + $0x248] sm:$0x3] %vm279_vm1, %v4459_v0  ;;  %354 = vst.msk [vmem:[#allocation2 + $0x258] sm:$0x3] %vm279_vm1, %v4459_v0 }
  0x34   : > { %355 = vst.msk [vmem:[#allocation2 + $0x260] sm:$0xff] %vm277_vm0, %v4459_v0  ;;  %357 = vst.msk [vmem:[#allocation2 + $0x270] sm:$0xff] %vm277_vm0, %v4459_v0 }
  0x35   : > { %356 = vst.msk [vmem:[#allocation2 + $0x268] sm:$0x3] %vm279_vm1, %v4459_v0  ;;  %358 = vst.msk [vmem:[#allocation2 + $0x278] sm:$0x3] %vm279_vm1, %v4459_v0 }
  0x36   : > { %2441 = vst.msk [vmem:[#allocation3] sm:$0xff] %vm1769_vm2, %v4459_v0  ;;  %2442 = vst.msk [vmem:[#allocation3 + $0x8] sm:$0xff] %vm1769_vm2, %v4459_v0 }
  0x37   : > { %2443 = vst.msk [vmem:[#allocation3 + $0x10] sm:$0xff] %vm1769_vm2, %v4459_v0  ;;  %2444 = vst.msk [vmem:[#allocation3 + $0x18] sm:$0xff] %vm1769_vm2, %v4459_v0 }
  0x38   : > { %2445 = vst.msk [vmem:[#allocation3 + $0x20] sm:$0xff] %vm1769_vm2, %v4459_v0  ;;  %2446 = vst.msk [vmem:[#allocation3 + $0x28] sm:$0xff] %vm1769_vm2, %v4459_v0 }
  0x39   : > { %2447 = vst.msk [vmem:[#allocation3 + $0x30] sm:$0xff] %vm1769_vm2, %v4459_v0  ;;  %2448 = vst.msk [vmem:[#allocation3 + $0x38] sm:$0xff] %vm1769_vm2, %v4459_v0 }
  0x3a   : > { %2449 = vst.msk [vmem:[#allocation3 + $0x40] sm:$0xff] %vm1769_vm2, %v4459_v0  ;;  %2450 = vst.msk [vmem:[#allocation3 + $0x48] sm:$0xff] %vm1769_vm2, %v4459_v0 }
  0x3b   : > { %2451 = vst.msk [vmem:[#allocation3 + $0x50] sm:$0xff] %vm1769_vm2, %v4459_v0  ;;  %2452 = vst.msk [vmem:[#allocation3 + $0x58] sm:$0xff] %vm1769_vm2, %v4459_v0 }
  0x3c   : > { %2453 = vst.msk [vmem:[#allocation3 + $0x60] sm:$0xff] %vm1769_vm2, %v4459_v0  ;;  %2454 = vst.msk [vmem:[#allocation3 + $0x68] sm:$0xff] %vm1769_vm2, %v4459_v0 }
  0x3d   : > { %2455 = vst.msk [vmem:[#allocation3 + $0x70] sm:$0xff] %vm1769_vm2, %v4459_v0  ;;  %2456 = vst.msk [vmem:[#allocation3 + $0x78] sm:$0xff] %vm1769_vm2, %v4459_v0 }
  0x3e   : > { %2457 = vst.msk [vmem:[#allocation3 + $0x80] sm:$0xff] %vm1769_vm2, %v4459_v0  ;;  %2458 = vst.msk [vmem:[#allocation3 + $0x88] sm:$0xff] %vm1769_vm2, %v4459_v0 }
  0x3f   : > { %2459 = vst.msk [vmem:[#allocation3 + $0x90] sm:$0xff] %vm1769_vm2, %v4459_v0  ;;  %2460 = vst.msk [vmem:[#allocation3 + $0x98] sm:$0xff] %vm1769_vm2, %v4459_v0 }
  0x40   : > { %2461 = vst.msk [vmem:[#allocation3 + $0xa0] sm:$0xff] %vm1769_vm2, %v4459_v0  ;;  %2462 = vst.msk [vmem:[#allocation3 + $0xa8] sm:$0xff] %vm1769_vm2, %v4459_v0 }
  0x41   : > { %2463 = vst.msk [vmem:[#allocation3 + $0xb0] sm:$0xff] %vm1769_vm2, %v4459_v0  ;;  %2464 = vst.msk [vmem:[#allocation3 + $0xb8] sm:$0xff] %vm1769_vm2, %v4459_v0 }
  0x42   : > { %2465 = vst.msk [vmem:[#allocation3 + $0xc0] sm:$0xff] %vm1769_vm2, %v4459_v0  ;;  %2466 = vst.msk [vmem:[#allocation3 + $0xc8] sm:$0xff] %vm1769_vm2, %v4459_v0 }
  0x43   : > { %2467 = vst.msk [vmem:[#allocation3 + $0xd0] sm:$0xff] %vm1769_vm2, %v4459_v0  ;;  %2468 = vst.msk [vmem:[#allocation3 + $0xd8] sm:$0xff] %vm1769_vm2, %v4459_v0 }
  0x44   : > { %2469 = vst.msk [vmem:[#allocation3 + $0xe0] sm:$0xff] %vm1769_vm2, %v4459_v0  ;;  %2470 = vst.msk [vmem:[#allocation3 + $0xe8] sm:$0xff] %vm1769_vm2, %v4459_v0 }
  0x45   : > { %2471 = vst.msk [vmem:[#allocation3 + $0xf0] sm:$0xff] %vm1769_vm2, %v4459_v0  ;;  %2472 = vst.msk [vmem:[#allocation3 + $0xf8] sm:$0xff] %vm1769_vm2, %v4459_v0 }
  0x46   : > { %2473 = vst.msk [vmem:[#allocation3 + $0x100] sm:$0xff] %vm1769_vm2, %v4459_v0  ;;  %2474 = vst.msk [vmem:[#allocation3 + $0x108] sm:$0xff] %vm1769_vm2, %v4459_v0 }
  0x47   : > { %2475 = vst.msk [vmem:[#allocation3 + $0x110] sm:$0xff] %vm1769_vm2, %v4459_v0  ;;  %2476 = vst.msk [vmem:[#allocation3 + $0x118] sm:$0xff] %vm1769_vm2, %v4459_v0 }
  0x48   : > { %2477 = vst.msk [vmem:[#allocation3 + $0x120] sm:$0xff] %vm1769_vm2, %v4459_v0  ;;  %2478 = vst.msk [vmem:[#allocation3 + $0x128] sm:$0xff] %vm1769_vm2, %v4459_v0 }
  0x49   : > { %2479 = vst.msk [vmem:[#allocation3 + $0x130] sm:$0xff] %vm1769_vm2, %v4459_v0  ;;  %2480 = vst.msk [vmem:[#allocation3 + $0x138] sm:$0xff] %vm1769_vm2, %v4459_v0 }
  0x4a   : > { %2481 = vst.msk [vmem:[#allocation3 + $0x140] sm:$0xff] %vm1769_vm2, %v4459_v0  ;;  %2482 = vst.msk [vmem:[#allocation3 + $0x148] sm:$0xff] %vm1769_vm2, %v4459_v0 }
  0x4b   : > { %2483 = vst.msk [vmem:[#allocation3 + $0x150] sm:$0xff] %vm1769_vm2, %v4459_v0  ;;  %2484 = vst.msk [vmem:[#allocation3 + $0x158] sm:$0xff] %vm1769_vm2, %v4459_v0 }
  0x4c   : > { %2485 = vst.msk [vmem:[#allocation3 + $0x160] sm:$0xff] %vm1769_vm2, %v4459_v0  ;;  %2486 = vst.msk [vmem:[#allocation3 + $0x168] sm:$0xff] %vm1769_vm2, %v4459_v0 }
  0x4d   : > { %2487 = vst.msk [vmem:[#allocation3 + $0x170] sm:$0xff] %vm1769_vm2, %v4459_v0  ;;  %2488 = vst.msk [vmem:[#allocation3 + $0x178] sm:$0xff] %vm1769_vm2, %v4459_v0 }
  0x4e   : > { %392 = vst.msk [vmem:[#allocation2 + $0x11] sm:$0xff] %vm277_vm0, %v359_v1  ;;  %393 = vst.msk [vmem:[#allocation2 + $0x21] sm:$0xff] %vm277_vm0, %v360_v2 }
  0x4f   : > { %394 = vst.msk [vmem:[#allocation2 + $0x31] sm:$0xff] %vm277_vm0, %v361_v3  ;;  %395 = vst.msk [vmem:[#allocation2 + $0x41] sm:$0xff] %vm277_vm0, %v362_v6 }
  0x50   : > { %396 = vst.msk [vmem:[#allocation2 + $0x51] sm:$0xff] %vm277_vm0, %v363_v7  ;;  %397 = vst.msk [vmem:[#allocation2 + $0x61] sm:$0xff] %vm277_vm0, %v364_v8 }
  0x51   : > { %398 = vst.msk [vmem:[#allocation2 + $0x71] sm:$0xff] %vm277_vm0, %v365_v9  ;;  %399 = vst.msk [vmem:[#allocation2 + $0x81] sm:$0xff] %vm277_vm0, %v366_v10 }
  0x52   : > { %400 = vst.msk [vmem:[#allocation2 + $0xb1] sm:$0xff] %vm277_vm0, %v367_v11  ;;  %401 = vst.msk [vmem:[#allocation2 + $0xc1] sm:$0xff] %vm277_vm0, %v368_v12  ;;  %v377_v11 = vld [vmem:[%s4821_s17 + $0x90] sm:$0xff] }
  0x53   : > { %402 = vst.msk [vmem:[#allocation2 + $0xd1] sm:$0xff] %vm277_vm0, %v369_v18  ;;  %403 = vst.msk [vmem:[#allocation2 + $0xe1] sm:$0xff] %vm277_vm0, %v370_v29  ;;  %v688_v12 = vld [vmem:[#allocation2 + $0x92] sm:$0xff] }
  0x54   : > { %404 = vst.msk [vmem:[#allocation2 + $0xf1] sm:$0xff] %vm277_vm0, %v371_v33  ;;  %405 = vst.msk [vmem:[#allocation2 + $0x101] sm:$0xff] %vm277_vm0, %v372_v38 }
  0x55   : > { %v489_v13 = vld [vmem:[#allocation2 + $0x12] sm:$0xff]  ;;  %v4847_v15 = vld [vmem:[#allocation2 + $0x20] sm:$0xff]  ;;  %406 = vst.msk [vmem:[#allocation2 + $0x111] sm:$0xff] %vm277_vm0, %v373_v41  ;;  %407 = vst.msk [vmem:[#allocation2 + $0x121] sm:$0xff] %vm277_vm0, %v374_v46 }
  0x56   : > { %v457_v14 = vld [vmem:[#allocation2 + $0x11] sm:$0xff]  ;;  %875 = vrot.lane.b32.xlu1 %v489_v13, %s4460_s18  ;;  %v458_v17 = vld [vmem:[#allocation2 + $0x21] sm:$0xff]  ;;  %408 = vst.msk [vmem:[#allocation2 + $0x151] sm:$0xff] %vm277_vm0, %v375_v50  ;;  %409 = vst.msk [vmem:[#allocation2 + $0x161] sm:$0xff] %vm277_vm0, %v376_v62 }
  0x57   : > { %747 = vrot.lane.b32.xlu0 %v457_v14, %s4461_s19  ;;  %v4849_v16 = vld [vmem:[#allocation2 + $0x10] sm:$0xff]  ;;  %v490_v19 = vld [vmem:[#allocation2 + $0x22] sm:$0xff]  ;;  %410 = vst.msk [vmem:[#allocation2 + $0x171] sm:$0xff] %vm277_vm0, %v377_v11  ;;  %v378_v41 = vld [vmem:[%s4821_s17 + $0x98] sm:$0xff] }
  0x58   : > { %v459_v20 = vld [vmem:[#allocation2 + $0x31] sm:$0xff]  ;;  %v4891_v31 = vld [vmem:[#allocation2 + $0x40] sm:$0xff]  ;;  %411 = vst.msk [vmem:[#allocation2 + $0x181] sm:$0xff] %vm277_vm0, %v378_v41 }
  0x59   : > { %v4872_v24 = vld [vmem:[#allocation2 + $0x30] sm:$0xff]  ;;  %v555_v32 = vld [vmem:[#allocation2 + $0x41] sm:$0xff] }
  0x5a   : > { %1003 = vrot.lane.b32.xlu1 %v4847_v15, %s4462_s20  ;;  %v491_v25 = vld [vmem:[#allocation2 + $0x32] sm:$0xff]  ;;  %v492_v34 = vld [vmem:[#allocation2 + $0x42] sm:$0xff] }
  0x5b   : > { %1001 = vrot.lane.b32.xlu0 %v4849_v16, %s4462_s20  ;;  %v461_v35 = vld [vmem:[#allocation2 + $0x51] sm:$0xff]  ;;  %v4919_v39 = vld [vmem:[#allocation2 + $0x60] sm:$0xff] }
  0x5c   : > { %v4909_v36 = vld [vmem:[#allocation2 + $0x50] sm:$0xff]  ;;  %v557_v40 = vld [vmem:[#allocation2 + $0x61] sm:$0xff] }
  0x5d   : > { %v493_v37 = vld [vmem:[#allocation2 + $0x52] sm:$0xff]  ;;  %v494_v42 = vld [vmem:[#allocation2 + $0x62] sm:$0xff] }
  0x5e   : > { %749 = vrot.lane.b32.xlu1 %v458_v17, %s4461_s19  ;;  %v463_v43 = vld [vmem:[#allocation2 + $0x71] sm:$0xff]  ;;  %v527_v47 = vld [vmem:[#allocation2 + $0x80] sm:$0xff] }
  0x5f   : > { %1129 = vrot.lane.b32.xlu0 %v457_v14, %s4463_s21  ;;  %v4937_v44 = vld [vmem:[#allocation2 + $0x70] sm:$0xff]  ;;  %v559_v48 = vld [vmem:[#allocation2 + $0x81] sm:$0xff] }
  0x60   : > { %v495_v45 = vld [vmem:[#allocation2 + $0x72] sm:$0xff]  ;;  %v591_v55 = vld [vmem:[#allocation2 + $0x82] sm:$0xff] }
  0x61   : > { %v465_v54 = vld [vmem:[#allocation2 + $0xb1] sm:$0xff]  ;;  %v4978_v2 = vld [vmem:[#allocation2 + $0xc0] sm:$0xff] }
  0x62   : > { %1257 = vrot.lane.b32.xlu1 %v489_v13, %s4464_s22  ;;  %v4965_v58 = vld [vmem:[#allocation2 + $0xb0] sm:$0xff]  ;;  %v561_v8 = vld [vmem:[#allocation2 + $0xc1] sm:$0xff] }
  0x63   : > { %1131 = vrot.lane.b32.xlu0 %v458_v17, %s4463_s21  ;;  %v497_v59 = vld [vmem:[#allocation2 + $0xb2] sm:$0xff]  ;;  %v498_v18 = vld [vmem:[#allocation2 + $0xc2] sm:$0xff] }
  0x64   : > { %v499_v33 = vld [vmem:[#allocation2 + $0xd2] sm:$0xff] }
  0x66   : > { %877 = vrot.lane.b32.xlu1 %v490_v19, %s4460_s18 }
  0x67   : > { %751 = vrot.lane.b32.xlu0 %v459_v20, %s4461_s19 }
  0x6a   : > { %1385 = vrot.lane.b32.xlu1 %v4847_v15, %s4465_s13 }
  0x6b   : > { %1259 = vrot.lane.b32.xlu0 %v490_v19, %s4464_s22 }
  0x6e   : > { %1005 = vrot.lane.b32.xlu1 %v4872_v24, %s4462_s20 }
  0x6f   : > { %879 = vrot.lane.b32.xlu0 %v491_v25, %s4460_s18 }
  0x72   : > { %1513 = vrot.lane.b32.xlu1 %v458_v17, %s4466_s29  ;;  %v424_v17 = vld [vmem:[#allocation2] sm:$0xff] }
  0x73   : > { %1387 = vrot.lane.b32.xlu0 %v4872_v24, %s4465_s13 }
  0x76   : > { %1133 = vrot.lane.b32.xlu1 %v459_v20, %s4463_s21 }
  0x77   : > { %1007 = vrot.lane.b32.xlu0 %v4891_v31, %s4462_s20 }
  0x7a   : > { %1641 = vrot.lane.b32.xlu1 %v490_v19, %s4467_s14  ;;  %v467_v19 = vld [vmem:[#allocation2 + $0xd1] sm:$0xff] }
  0x7b   : > { %1515 = vrot.lane.b32.xlu0 %v459_v20, %s4466_s29 }
  0x7e   : > { %1135 = vrot.lane.b32.xlu1 %v555_v32, %s4463_s21 }
  0x7f   : > { %753 = vrot.lane.b32.xlu0 %v555_v32, %s4461_s19 }
  0x82   : > { %1643 = vrot.lane.b32.xlu1 %v491_v25, %s4467_s14 }
  0x83   : > { %1261 = vrot.lane.b32.xlu0 %v491_v25, %s4464_s22 }
  0x86   : > { %881 = vrot.lane.b32.xlu1 %v492_v34, %s4460_s18 }
  0x87   : > { %755 = vrot.lane.b32.xlu0 %v461_v35, %s4461_s19 }
  0x89   : > { %v874_v51 = vpop.permute.xlu1 %873 }
  0x8a   : > { %1389 = vrot.lane.b32.xlu1 %v4891_v31, %s4465_s13  ;;  %v746_v52 = vpop.permute.xlu0 %745 }
  0x8b   : > { %1263 = vrot.lane.b32.xlu0 %v492_v34, %s4464_s22  ;;  %v1737_v20 = vsel %vm277_vm0, %v424_v17, %v746_v52 }
  0x8c   : > { %v1770_v23 = vsel %vm1769_vm2, %v1737_v20, %v874_v51 }
  0x8e   : > { %1009 = vrot.lane.b32.xlu1 %v4909_v36, %s4462_s20 }
  0x8f   : > { %883 = vrot.lane.b32.xlu0 %v493_v37, %s4460_s18 }
  0x92   : > { %1517 = vrot.lane.b32.xlu1 %v555_v32, %s4466_s29  ;;  %v5014_v32 = vld [vmem:[#allocation2 + $0xd0] sm:$0xff] }
  0x93   : > { %1391 = vrot.lane.b32.xlu0 %v4909_v36, %s4465_s13 }
  0x96   : > { %1137 = vrot.lane.b32.xlu1 %v461_v35, %s4463_s21 }
  0x97   : > { %1011 = vrot.lane.b32.xlu0 %v4919_v39, %s4462_s20 }
  0x9a   : > { %1645 = vrot.lane.b32.xlu1 %v492_v34, %s4467_s14 }
  0x9b   : > { %1519 = vrot.lane.b32.xlu0 %v461_v35, %s4466_s29 }
  0x9e   : > { %1139 = vrot.lane.b32.xlu1 %v557_v40, %s4463_s21 }
  0x9f   : > { %757 = vrot.lane.b32.xlu0 %v557_v40, %s4461_s19 }
  0xa2   : > { %1647 = vrot.lane.b32.xlu1 %v493_v37, %s4467_s14 }
  0xa3   : > { %1265 = vrot.lane.b32.xlu0 %v493_v37, %s4464_s22 }
  0xa6   : > { %885 = vrot.lane.b32.xlu1 %v494_v42, %s4460_s18 }
  0xa7   : > { %759 = vrot.lane.b32.xlu0 %v463_v43, %s4461_s19 }
  0xaa   : > { %1393 = vrot.lane.b32.xlu1 %v4919_v39, %s4465_s13 }
  0xab   : > { %1267 = vrot.lane.b32.xlu0 %v494_v42, %s4464_s22 }
  0xae   : > { %1013 = vrot.lane.b32.xlu1 %v4937_v44, %s4462_s20 }
  0xaf   : > { %887 = vrot.lane.b32.xlu0 %v495_v45, %s4460_s18 }
  0xb2   : > { %1521 = vrot.lane.b32.xlu1 %v557_v40, %s4466_s29 }
  0xb3   : > { %1395 = vrot.lane.b32.xlu0 %v4937_v44, %s4465_s13 }
  0xb6   : > { %1141 = vrot.lane.b32.xlu1 %v463_v43, %s4463_s21 }
  0xb7   : > { %1015 = vrot.lane.b32.xlu0 %v527_v47, %s4462_s20 }
  0xba   : > { %1649 = vrot.lane.b32.xlu1 %v494_v42, %s4467_s14 }
  0xbb   : > { %1523 = vrot.lane.b32.xlu0 %v463_v43, %s4466_s29 }
  0xbe   : > { %1143 = vrot.lane.b32.xlu1 %v559_v48, %s4463_s21 }
  0xbf   : > { %761 = vrot.lane.b32.xlu0 %v464_v49, %s4461_s19  ;;  %v5041_v49 = vld [vmem:[#allocation2 + $0xe0] sm:$0xff] }
  0xc2   : > { %1651 = vrot.lane.b32.xlu1 %v495_v45, %s4467_s14 }
  0xc3   : > { %1269 = vrot.lane.b32.xlu0 %v495_v45, %s4464_s22 }
  0xc6   : > { %889 = vrot.lane.b32.xlu1 %v496_v53, %s4460_s18 }
  0xc7   : > { %763 = vrot.lane.b32.xlu0 %v465_v54, %s4461_s19 }
  0xc8   : > { %v4959_v56 = vpop.permute.xlu1 %875 }
  0xc9   : > { %v4961_v57 = vpop.permute.xlu0 %747 }
  0xca   : > { %1397 = vrot.lane.b32.xlu1 %v527_v47, %s4465_s13  ;;  %v1738_v34 = vsel %vm277_vm0, %v4849_v16, %v4961_v57 }
  0xcb   : > { %1271 = vrot.lane.b32.xlu0 %v591_v55, %s4464_s22  ;;  %v1771_v42 = vsel %vm1769_vm2, %v1738_v34, %v4959_v56  ;;  %v563_v56 = vld [vmem:[#allocation2 + $0xe1] sm:$0xff] }
  0xcc   : > { %v4967_v60 = vpop.permute.xlu1 %1003 }
  0xcd   : > { %v1002_v61 = vpop.permute.xlu0 %1001  ;;  %v1804_v16 = vsel %vm1802_vm4, %v1771_v42, %v4967_v60  ;;  %v379_v60 = vld [vmem:[%s4821_s17 + $0xa0] sm:$0xff]  ;;  %v381_v42 = vld [vmem:[%s4821_s17 + $0xb0] sm:$0xff] }
  0xce   : > { %1017 = vrot.lane.b32.xlu1 %v4965_v58, %s4462_s20  ;;  %v1803_v25 = vsel %vm1802_vm4, %v1770_v23, %v1002_v61  ;;  %412 = vst.msk [vmem:[#allocation2 + $0x191] sm:$0xff] %vm277_vm0, %v379_v60  ;;  %414 = vst.msk [vmem:[#allocation2 + $0x1b1] sm:$0xff] %vm277_vm0, %v381_v42  ;;  %v503_v60 = vld [vmem:[#allocation2 + $0x112] sm:$0xff] }
  0xcf   : > { %891 = vrot.lane.b32.xlu0 %v497_v59, %s4460_s18 }
  0xd0   : > { %v4974_v0 = vpop.permute.xlu1 %749 }
  0xd1   : > { %v1130_v1 = vpop.permute.xlu0 %1129 }
  0xd2   : > { %1525 = vrot.lane.b32.xlu1 %v559_v48, %s4466_s29  ;;  %v1836_v28 = vsel %vm1835_vm5, %v1803_v25, %v1130_v1  ;;  %v469_v1 = vld [vmem:[#allocation2 + $0xf1] sm:$0xff] }
  0xd3   : > { %1399 = vrot.lane.b32.xlu0 %v624_v63, %s4465_s13  ;;  %v500_v63 = vld [vmem:[#allocation2 + $0xe2] sm:$0xff] }
  0xd4   : > { %v1258_v3 = vpop.permute.xlu1 %1257 }
  0xd5   : > { %v1132_v4 = vpop.permute.xlu0 %1131  ;;  %v1869_v29 = vsel %vm1868_vm6, %v1836_v28, %v1258_v3 }
  0xd6   : > { %1145 = vrot.lane.b32.xlu1 %v465_v54, %s4463_s21  ;;  %v1837_v46 = vsel %vm1835_vm5, %v1804_v16, %v1132_v4 }
  0xd7   : > { %1019 = vrot.lane.b32.xlu0 %v4978_v2, %s4462_s20 }
  0xd8   : > { %v4983_v6 = vpop.permute.xlu1 %877 }
  0xd9   : > { %v4985_v7 = vpop.permute.xlu0 %751 }
  0xda   : > { %1653 = vrot.lane.b32.xlu1 %v591_v55, %s4467_s14 }
  0xdb   : > { %1527 = vrot.lane.b32.xlu0 %v656_v5, %s4466_s29  ;;  %v1739_v5 = vsel %vm277_vm0, %v4847_v15, %v4974_v0 }
  0xdc   : > { %v1386_v9 = vpop.permute.xlu1 %1385 }
  0xdd   : > { %v1260_v10 = vpop.permute.xlu0 %1259  ;;  %v1902_v30 = vsel %vm1901_vm7, %v1869_v29, %v1386_v9  ;;  %v5113_v29 = vld [vmem:[#allocation2 + $0x100] sm:$0xff] }
  0xde   : > { %1147 = vrot.lane.b32.xlu1 %v561_v8, %s4463_s21  ;;  %v1870_v47 = vsel %vm1868_vm6, %v1837_v46, %v1260_v10  ;;  %v502_v46 = vld [vmem:[#allocation2 + $0x102] sm:$0xff] }
  0xdf   : > { %765 = vrot.lane.b32.xlu0 %v561_v8, %s4461_s19 }
  0xe0   : > { %v4993_v13 = vpop.permute.xlu1 %1005 }
  0xe1   : > { %v4995_v14 = vpop.permute.xlu0 %879 }
  0xe2   : > { %1655 = vrot.lane.b32.xlu1 %v688_v12, %s4467_s14 }
  0xe3   : > { %1273 = vrot.lane.b32.xlu0 %v497_v59, %s4464_s22 }
  0xe4   : > { %v1514_v21 = vpop.permute.xlu1 %1513 }
  0xe5   : > { %v1388_v22 = vpop.permute.xlu0 %1387  ;;  %v1935_v35 = vsel %vm1934_vm8, %v1902_v30, %v1514_v21  ;;  %v1740_v21 = vsel %vm277_vm0, %v4872_v24, %v4985_v7 }
  0xe6   : > { %893 = vrot.lane.b32.xlu1 %v498_v18, %s4460_s18  ;;  %v1903_v48 = vsel %vm1901_vm7, %v1870_v47, %v1388_v22  ;;  %v380_v22 = vld [vmem:[%s4821_s17 + $0xa8] sm:$0xff]  ;;  %v1773_v23 = vsel %vm1769_vm2, %v1740_v21, %v4995_v14  ;;  %v471_v47 = vld [vmem:[#allocation2 + $0x111] sm:$0xff] }
  0xe7   : > { %767 = vrot.lane.b32.xlu0 %v467_v19, %s4461_s19  ;;  %413 = vst.msk [vmem:[#allocation2 + $0x1a1] sm:$0xff] %vm277_vm0, %v380_v22  ;;  %v472_v21 = vld [vmem:[#allocation2 + $0x141] sm:$0xff] }
  0xe8   : > { %v5004_v26 = vpop.permute.xlu1 %1133 }
  0xe9   : > { %v5006_v27 = vpop.permute.xlu0 %1007 }
  0xea   : > { %1401 = vrot.lane.b32.xlu1 %v4978_v2, %s4465_s13  ;;  %v1806_v25 = vsel %vm1802_vm4, %v1773_v23, %v5006_v27 }
  0xeb   : > { %1275 = vrot.lane.b32.xlu0 %v498_v18, %s4464_s22 }
  0xec   : > { %v1642_v37 = vpop.permute.xlu1 %1641 }
  0xed   : > { %v1516_v38 = vpop.permute.xlu0 %1515  ;;  %v1968_v40 = vsel %vm1967_vm9, %v1935_v35, %v1642_v37 }
  0xee   : > { %1021 = vrot.lane.b32.xlu1 %v5014_v32, %s4462_s20  ;;  %4070 = vmatprep.mubr.msk.f32.mxu0 %vm2005_vm10, %v1968_v40  ;;  %v1936_v50 = vsel %vm1934_vm8, %v1903_v48, %v1516_v38  ;;  %v565_v38 = vld [vmem:[#allocation2 + $0x101] sm:$0xff] }
  0xef   : > { %895 = vrot.lane.b32.xlu0 %v499_v33, %s4460_s18 }
  0xf0   : > { %v5031_v43 = vpop.permute.xlu1 %1135 }
  0xf1   : > { %v5033_v45 = vpop.permute.xlu0 %753  ;;  %v1839_v24 = vsel %vm1835_vm5, %v1806_v25, %v5031_v43  ;;  %v383_v25 = vld [vmem:[%s4821_s17 + $0xc0] sm:$0xff] }
  0xf2   : > { %1529 = vrot.lane.b32.xlu1 %v561_v8, %s4466_s29  ;;  %v1772_v8 = vsel %vm1769_vm2, %v1739_v5, %v4983_v6  ;;  %v5085_v6 = vld [vmem:[#allocation2 + $0xf0] sm:$0xff]  ;;  %v382_v5 = vld [vmem:[%s4821_s17 + $0xb8] sm:$0xff]  ;;  %416 = vst.msk [vmem:[#allocation2 + $0x1f1] sm:$0xff] %vm277_vm0, %v383_v25 }
  0xf3   : > { %1403 = vrot.lane.b32.xlu0 %v5014_v32, %s4465_s13  ;;  %v1805_v9 = vsel %vm1802_vm4, %v1772_v8, %v4993_v13  ;;  %v501_v13 = vld [vmem:[#allocation2 + $0xf2] sm:$0xff]  ;;  %415 = vst.msk [vmem:[#allocation2 + $0x1c1] sm:$0xff] %vm277_vm0, %v382_v5 }
  0xf4   : > { %v1644_v51 = vpop.permute.xlu1 %1643  ;;  %v1838_v12 = vsel %vm1835_vm5, %v1805_v9, %v5004_v26 }
  0xf5   : > { %v1262_v52 = vpop.permute.xlu0 %1261  ;;  %v1969_v53 = vsel %vm1967_vm9, %v1936_v50, %v1644_v51  ;;  %v1741_v51 = vsel %vm277_vm0, %v4891_v31, %v5033_v45 }
  0xf6   : > { %1149 = vrot.lane.b32.xlu1 %v467_v19, %s4463_s21  ;;  %4071 = vmatmul.mubr.msk.f32.vlgmr.msra.gmra.mrb[0].mxu0 %vm2005_vm10, %v1969_v53  ;;  %v1871_v15 = vsel %vm1868_vm6, %v1838_v12, %v1262_v52 }
  0xf7   : > { %1023 = vrot.lane.b32.xlu0 %v5041_v49, %s4462_s20 }
  0xf8   : > { %v5049_v54 = vpop.permute.xlu1 %881 }
  0xf9   : > { %v5051_v55 = vpop.permute.xlu0 %755  ;;  %v1774_v52 = vsel %vm1769_vm2, %v1741_v51, %v5049_v54  ;;  %v5157_v54 = vld [vmem:[#allocation2 + $0x110] sm:$0xff] }
  0xfa   : > { %1657 = vrot.lane.b32.xlu1 %v498_v18, %s4467_s14 }
  0xfb   : > { %1531 = vrot.lane.b32.xlu0 %v467_v19, %s4466_s29 }
  0xfc   : > { %v1390_v57 = vpop.permute.xlu1 %1389 }
  0xfd   : > { %v1264_v59 = vpop.permute.xlu0 %1263  ;;  %v1904_v0 = vsel %vm1901_vm7, %v1871_v15, %v1390_v57  ;;  %v535_v15 = vld [vmem:[#allocation2 + $0x120] sm:$0xff] }
  0xfe   : > { %1151 = vrot.lane.b32.xlu1 %v563_v56, %s4463_s21  ;;  %v1872_v7 = vsel %vm1868_vm6, %v1839_v24, %v1264_v59 }
  0xff   : > { %769 = vrot.lane.b32.xlu0 %v563_v56, %s4461_s19 }
 0x100   : > { %v5059_v61 = vpop.permute.xlu1 %1009 }
 0x101   : > { %v5061_v62 = vpop.permute.xlu0 %883  ;;  %v1807_v53 = vsel %vm1802_vm4, %v1774_v52, %v5059_v61 }
 0x102   : > { %1659 = vrot.lane.b32.xlu1 %v499_v33, %s4467_s14 }
 0x103   : > { %1277 = vrot.lane.b32.xlu0 %v499_v33, %s4464_s22 }
 0x104   : > { %v1518_v3 = vpop.permute.xlu1 %1517 }
 0x105   : > { %v1392_v4 = vpop.permute.xlu0 %1391  ;;  %v1937_v17 = vsel %vm1934_vm8, %v1904_v0, %v1518_v3 }
 0x106   : > { %897 = vrot.lane.b32.xlu1 %v500_v63, %s4460_s18  ;;  %v1905_v14 = vsel %vm1901_vm7, %v1872_v7, %v1392_v4  ;;  %v1742_v4 = vsel %vm277_vm0, %v4909_v36, %v5051_v55  ;;  %v504_v7 = vld [vmem:[#allocation2 + $0x142] sm:$0xff] }
 0x107   : > { %771 = vrot.lane.b32.xlu0 %v469_v1, %s4461_s19  ;;  %v1775_v8 = vsel %vm1769_vm2, %v1742_v4, %v5061_v62  ;;  %v664_v4 = vld [vmem:[#allocation2 + $0x131] sm:$0xff] }
 0x108   : > { %v5074_v10 = vpop.permute.xlu1 %1137 }
 0x109   : > { %v5076_v11 = vpop.permute.xlu0 %1011  ;;  %v1840_v59 = vsel %vm1835_vm5, %v1807_v53, %v5074_v10  ;;  %v384_v53 = vld [vmem:[%s4821_s17 + $0xc8] sm:$0xff] }
 0x10a   : > { %1405 = vrot.lane.b32.xlu1 %v5041_v49, %s4465_s13  ;;  %v1808_v9 = vsel %vm1802_vm4, %v1775_v8, %v5076_v11  ;;  %417 = vst.msk [vmem:[#allocation2 + $0x201] sm:$0xff] %vm277_vm0, %v384_v53 }
 0x10b   : > { %1279 = vrot.lane.b32.xlu0 %v500_v63, %s4464_s22 }
 0x10c   : > { %v1646_v18 = vpop.permute.xlu1 %1645 }
 0x10d   : > { %v1520_v19 = vpop.permute.xlu0 %1519  ;;  %v1970_v20 = vsel %vm1967_vm9, %v1937_v17, %v1646_v18 }
 0x10e   : > { %1025 = vrot.lane.b32.xlu1 %v5085_v6, %s4462_s20  ;;  %4073 = vmatprep.mubr.msk.f32.mxu0 %vm2005_vm10, %v1970_v20  ;;  %v1938_v27 = vsel %vm1934_vm8, %v1905_v14, %v1520_v19  ;;  %v567_v20 = vld [vmem:[#allocation2 + $0x121] sm:$0xff]  ;;  %v473_v14 = vld [vmem:[#allocation2 + $0x151] sm:$0xff] }
 0x10f   : > { %899 = vrot.lane.b32.xlu0 %v501_v13, %s4460_s18 }
 0x110   : > { %v5102_v26 = vpop.permute.xlu1 %1139 }
 0x111   : > { %v5104_v28 = vpop.permute.xlu0 %757  ;;  %v1841_v36 = vsel %vm1835_vm5, %v1808_v9, %v5102_v26  ;;  %v569_v9 = vld [vmem:[#allocation2 + $0x161] sm:$0xff] }
 0x112   : > { %1533 = vrot.lane.b32.xlu1 %v563_v56, %s4466_s29 }
 0x113   : > { %1407 = vrot.lane.b32.xlu0 %v5085_v6, %s4465_s13 }
 0x114   : > { %v1648_v30 = vpop.permute.xlu1 %1647 }
 0x115   : > { %v1266_v33 = vpop.permute.xlu0 %1265  ;;  %v1971_v34 = vsel %vm1967_vm9, %v1938_v27, %v1648_v30 }
 0x116   : > { %1153 = vrot.lane.b32.xlu1 %v469_v1, %s4463_s21  ;;  %4074 = vmatmul.mubr.msk.f32.gmra.mrb[2].mxu0 %vm2005_vm10, %v1971_v34  ;;  %v1873_v31 = vsel %vm1868_vm6, %v1840_v59, %v1266_v33  ;;  %v1743_v33 = vsel %vm277_vm0, %v4919_v39, %v5104_v28  ;;  %v632_v59 = vld [vmem:[#allocation2 + $0x130] sm:$0xff] }
 0x117   : > { %1027 = vrot.lane.b32.xlu0 %v5113_v29, %s4462_s20 }
 0x118   : > { %v5121_v35 = vpop.permute.xlu1 %885 }
 0x119   : > { %v5123_v37 = vpop.permute.xlu0 %759  ;;  %v1776_v34 = vsel %vm1769_vm2, %v1743_v33, %v5121_v35  ;;  %v5225_v35 = vld [vmem:[#allocation2 + $0x150] sm:$0xff] }
 0x11a   : > { %1661 = vrot.lane.b32.xlu1 %v500_v63, %s4467_s14  ;;  %v1744_v52 = vsel %vm277_vm0, %v4937_v44, %v5123_v37 }
 0x11b   : > { %1535 = vrot.lane.b32.xlu0 %v469_v1, %s4466_s29 }
 0x11c   : > { %v1394_v40 = vpop.permute.xlu1 %1393 }
 0x11d   : > { %v1268_v41 = vpop.permute.xlu0 %1267  ;;  %v1906_v45 = vsel %vm1901_vm7, %v1873_v31, %v1394_v40 }
 0x11e   : > { %1155 = vrot.lane.b32.xlu1 %v565_v38, %s4463_s21  ;;  %v1874_v55 = vsel %vm1868_vm6, %v1841_v36, %v1268_v41 }
 0x11f   : > { %773 = vrot.lane.b32.xlu0 %v565_v38, %s4461_s19 }
 0x120   : > { %v5131_v16 = vpop.permute.xlu1 %1013 }
 0x121   : > { %v5133_v43 = vpop.permute.xlu0 %887  ;;  %v1809_v40 = vsel %vm1802_vm4, %v1776_v34, %v5131_v16 }
 0x122   : > { %1663 = vrot.lane.b32.xlu1 %v501_v13, %s4467_s14 }
 0x123   : > { %1281 = vrot.lane.b32.xlu0 %v501_v13, %s4464_s22 }
 0x124   : > { %v1522_v48 = vpop.permute.xlu1 %1521 }
 0x125   : > { %v1396_v50 = vpop.permute.xlu0 %1395  ;;  %v1939_v61 = vsel %vm1934_vm8, %v1906_v45, %v1522_v48 }
 0x126   : > { %901 = vrot.lane.b32.xlu1 %v502_v46, %s4460_s18  ;;  %v1907_v62 = vsel %vm1901_vm7, %v1874_v55, %v1396_v50  ;;  %v385_v55 = vld [vmem:[%s4821_s17 + $0xd0] sm:$0xff] }
 0x127   : > { %775 = vrot.lane.b32.xlu0 %v471_v47, %s4461_s19  ;;  %418 = vst.msk [vmem:[#allocation2 + $0x211] sm:$0xff] %vm277_vm0, %v385_v55 }
 0x128   : > { %v5146_v56 = vpop.permute.xlu1 %1141 }
 0x129   : > { %v5148_v57 = vpop.permute.xlu0 %1015 }
 0x12a   : > { %1409 = vrot.lane.b32.xlu1 %v5113_v29, %s4465_s13 }
 0x12b   : > { %1283 = vrot.lane.b32.xlu0 %v502_v46, %s4464_s22 }
 0x12c   : > { %v1650_v63 = vpop.permute.xlu1 %1649 }
 0x12d   : > { %v1524_v1 = vpop.permute.xlu0 %1523  ;;  %v1972_v3 = vsel %vm1967_vm9, %v1939_v61, %v1650_v63  ;;  %v5252_v61 = vld [vmem:[#allocation2 + $0x160] sm:$0xff] }
 0x12e   : > { %1029 = vrot.lane.b32.xlu1 %v5157_v54, %s4462_s20  ;;  %4076 = vmatprep.mubr.msk.f32.mxu0 %vm2005_vm10, %v1972_v3  ;;  %v1940_v0 = vsel %vm1934_vm8, %v1907_v62, %v1524_v1  ;;  %v696_v62 = vld [vmem:[#allocation2 + $0x132] sm:$0xff] }
 0x12f   : > { %903 = vrot.lane.b32.xlu0 %v503_v60, %s4460_s18 }
 0x130   : > { %v5174_v10 = vpop.permute.xlu1 %1143 }
 0x131   : > { %v5176_v12 = vpop.permute.xlu0 %761 }
 0x132   : > { %1537 = vrot.lane.b32.xlu1 %v565_v38, %s4466_s29  ;;  %v599_v38 = vld [vmem:[#allocation2 + $0x122] sm:$0xff] }
 0x133   : > { %1411 = vrot.lane.b32.xlu0 %v5157_v54, %s4465_s13 }
 0x134   : > { %v1652_v11 = vpop.permute.xlu1 %1651 }
 0x135   : > { %v1270_v13 = vpop.permute.xlu0 %1269  ;;  %v1973_v17 = vsel %vm1967_vm9, %v1940_v0, %v1652_v11  ;;  %v432_v11 = vld [vmem:[#allocation2 + $0xa0] sm:$0xff] }
 0x136   : > { %1157 = vrot.lane.b32.xlu1 %v471_v47, %s4463_s21  ;;  %4077 = vmatmul.mubr.msk.f32.gmra.mrb[4].mxu0 %vm2005_vm10, %v1973_v17  ;;  %v475_v17 = vld [vmem:[#allocation2 + $0x171] sm:$0xff] }
 0x137   : > { %1031 = vrot.lane.b32.xlu0 %v535_v15, %s4462_s20 }
 0x138   : > { %v5190_v18 = vpop.permute.xlu1 %889 }
 0x139   : > { %v5192_v19 = vpop.permute.xlu0 %763 }
 0x13a   : > { %1665 = vrot.lane.b32.xlu1 %v502_v46, %s4467_s14  ;;  %v1842_v46 = vsel %vm1835_vm5, %v1809_v40, %v5146_v56  ;;  %v1777_v56 = vsel %vm1769_vm2, %v1744_v52, %v5133_v43 }
 0x13b   : > { %1539 = vrot.lane.b32.xlu0 %v471_v47, %s4466_s29  ;;  %v1875_v39 = vsel %vm1868_vm6, %v1842_v46, %v1270_v13  ;;  %v505_v47 = vld [vmem:[#allocation2 + $0x152] sm:$0xff]  ;;  %v1810_v31 = vsel %vm1802_vm4, %v1777_v56, %v5148_v57  ;;  %v506_v13 = vld [vmem:[#allocation2 + $0x162] sm:$0xff] }
 0x13c   : > { %v1398_v22 = vpop.permute.xlu1 %1397  ;;  %v1843_v37 = vsel %vm1835_vm5, %v1810_v31, %v5174_v10  ;;  %v386_v46 = vld [vmem:[%s4821_s17 + $0xd8] sm:$0xff] }
 0x13d   : > { %v1272_v23 = vpop.permute.xlu0 %1271  ;;  %v1908_v28 = vsel %vm1901_vm7, %v1875_v39, %v1398_v22  ;;  %v1745_v22 = vsel %vm277_vm0, %v432_v11, %v5176_v12  ;;  %419 = vst.msk [vmem:[#allocation2 + $0x221] sm:$0xff] %vm277_vm0, %v386_v46 }
 0x13e   : > { %1159 = vrot.lane.b32.xlu1 %v567_v20, %s4463_s21 }
 0x13f   : > { %777 = vrot.lane.b32.xlu0 %v472_v21, %s4461_s19 }
 0x140   : > { %v5200_v26 = vpop.permute.xlu1 %1017 }
 0x141   : > { %v5202_v24 = vpop.permute.xlu0 %891 }
 0x142   : > { %1667 = vrot.lane.b32.xlu1 %v503_v60, %s4467_s14 }
 0x143   : > { %1285 = vrot.lane.b32.xlu0 %v503_v60, %s4464_s22  ;;  %v1876_v60 = vsel %vm1868_vm6, %v1843_v37, %v1272_v23  ;;  %v1778_v23 = vsel %vm1769_vm2, %v1745_v22, %v5190_v18  ;;  %v387_v37 = vld [vmem:[%s4821_s17 + $0xe0] sm:$0xff]  ;;  %v388_v22 = vld [vmem:[%s4821_s17 + $0xe8] sm:$0xff] }
 0x144   : > { %v1526_v27 = vpop.permute.xlu1 %1525  ;;  %v1811_v25 = vsel %vm1802_vm4, %v1778_v23, %v5200_v26  ;;  %v507_v26 = vld [vmem:[#allocation2 + $0x172] sm:$0xff]  ;;  %420 = vst.msk [vmem:[#allocation2 + $0x231] sm:$0xff] %vm277_vm0, %v387_v37  ;;  %421 = vst.msk [vmem:[#allocation2 + $0x241] sm:$0xff] %vm277_vm0, %v388_v22 }
 0x145   : > { %v1400_v30 = vpop.permute.xlu0 %1399  ;;  %v1941_v16 = vsel %vm1934_vm8, %v1908_v28, %v1526_v27  ;;  %v511_v37 = vld [vmem:[#allocation2 + $0x1b2] sm:$0xff] }
 0x146   : > { %905 = vrot.lane.b32.xlu1 %v504_v7, %s4460_s18  ;;  %v1909_v43 = vsel %vm1901_vm7, %v1876_v60, %v1400_v30  ;;  %v5295_v30 = vld [vmem:[#allocation2 + $0x170] sm:$0xff] }
 0x147   : > { %779 = vrot.lane.b32.xlu0 %v473_v14, %s4461_s19 }
 0x148   : > { %v5215_v41 = vpop.permute.xlu1 %1145 }
 0x149   : > { %v5217_v42 = vpop.permute.xlu0 %1019  ;;  %v1844_v27 = vsel %vm1835_vm5, %v1811_v25, %v5215_v41  ;;  %v1746_v41 = vsel %vm277_vm0, %v4965_v58, %v5192_v19 }
 0x14a   : > { %1413 = vrot.lane.b32.xlu1 %v535_v15, %s4465_s13  ;;  %v1779_v39 = vsel %vm1769_vm2, %v1746_v41, %v5202_v24 }
 0x14b   : > { %1287 = vrot.lane.b32.xlu0 %v599_v38, %s4464_s22  ;;  %v1812_v28 = vsel %vm1802_vm4, %v1779_v39, %v5217_v42  ;;  %v389_v39 = vld [vmem:[%s4821_s17 + $0xf0] sm:$0xff] }
 0x14c   : > { %v1654_v48 = vpop.permute.xlu1 %1653  ;;  %422 = vst.msk [vmem:[#allocation2 + $0x251] sm:$0xff] %vm277_vm0, %v389_v39  ;;  %v5502_v39 = vld [vmem:[%s6413_s2] ss:$0 sm:$0xff] }
 0x14d   : > { %v1528_v50 = vpop.permute.xlu0 %1527  ;;  %v1974_v51 = vsel %vm1967_vm9, %v1941_v16, %v1654_v48  ;;  %v5323_v48 = vld [vmem:[#allocation2 + $0x180] sm:$0xff] }
 0x14e   : > { %1033 = vrot.lane.b32.xlu1 %v5225_v35, %s4462_s20  ;;  %4079 = vmatprep.mubr.msk.f32.mxu0 %vm2005_vm10, %v1974_v51  ;;  %v1942_v63 = vsel %vm1934_vm8, %v1909_v43, %v1528_v50 }
 0x14f   : > { %907 = vrot.lane.b32.xlu0 %v505_v47, %s4460_s18 }
 0x150   : > { %v5242_v45 = vpop.permute.xlu1 %1147 }
 0x151   : > { %v5244_v44 = vpop.permute.xlu0 %765  ;;  %v1845_v58 = vsel %vm1835_vm5, %v1812_v28, %v5242_v45 }
 0x152   : > { %1541 = vrot.lane.b32.xlu1 %v567_v20, %s4466_s29 }
 0x153   : > { %1415 = vrot.lane.b32.xlu0 %v632_v59, %s4465_s13  ;;  %v571_v59 = vld [vmem:[#allocation2 + $0x181] sm:$0xff] }
 0x154   : > { %v1656_v57 = vpop.permute.xlu1 %1655 }
 0x155   : > { %v1274_v1 = vpop.permute.xlu0 %1273  ;;  %v1975_v3 = vsel %vm1967_vm9, %v1942_v63, %v1656_v57  ;;  %v508_v63 = vld [vmem:[#allocation2 + $0x182] sm:$0xff]  ;;  %v477_v57 = vld [vmem:[#allocation2 + $0x191] sm:$0xff] }
 0x156   : > { %1161 = vrot.lane.b32.xlu1 %v473_v14, %s4463_s21  ;;  %4080 = vmatmul.mubr.msk.f32.gmra.mrb[6].mxu0 %vm2005_vm10, %v1975_v3  ;;  %v1877_v12 = vsel %vm1868_vm6, %v1844_v27, %v1274_v1 }
 0x157   : > { %1035 = vrot.lane.b32.xlu0 %v5252_v61, %s4462_s20 }
 0x158   : > { %v5260_v5 = vpop.permute.xlu1 %893 }
 0x159   : > { %v5262_v8 = vpop.permute.xlu0 %767 }
 0x15a   : > { %1669 = vrot.lane.b32.xlu1 %v599_v38, %s4467_s14 }
 0x15b   : > { %1543 = vrot.lane.b32.xlu0 %v664_v4, %s4466_s29  ;;  %v1747_v4 = vsel %vm277_vm0, %v4978_v2, %v5244_v44 }
 0x15c   : > { %v1402_v10 = vpop.permute.xlu1 %1401 }
 0x15d   : > { %v1276_v36 = vpop.permute.xlu0 %1275  ;;  %v1910_v18 = vsel %vm1901_vm7, %v1877_v12, %v1402_v10  ;;  %v5395_v12 = vld [vmem:[#allocation2 + $0x1a0] sm:$0xff] }
 0x15e   : > { %1163 = vrot.lane.b32.xlu1 %v569_v9, %s4463_s21  ;;  %v1878_v19 = vsel %vm1868_vm6, %v1845_v58, %v1276_v36  ;;  %v510_v58 = vld [vmem:[#allocation2 + $0x1a2] sm:$0xff] }
 0x15f   : > { %781 = vrot.lane.b32.xlu0 %v569_v9, %s4461_s19 }
 0x160   : > { %v5270_v15 = vpop.permute.xlu1 %1021 }
 0x161   : > { %v5272_v0 = vpop.permute.xlu0 %895 }
 0x162   : > { %1671 = vrot.lane.b32.xlu1 %v696_v62, %s4467_s14 }
 0x163   : > { %1289 = vrot.lane.b32.xlu0 %v505_v47, %s4464_s22 }
 0x164   : > { %v1530_v20 = vpop.permute.xlu1 %1529 }
 0x165   : > { %v1404_v21 = vpop.permute.xlu0 %1403  ;;  %v1943_v33 = vsel %vm1934_vm8, %v1910_v18, %v1530_v20 }
 0x166   : > { %909 = vrot.lane.b32.xlu1 %v506_v13, %s4460_s18  ;;  %v1911_v24 = vsel %vm1901_vm7, %v1878_v19, %v1404_v21  ;;  %v1748_v21 = vsel %vm277_vm0, %v5014_v32, %v5262_v8  ;;  %v479_v19 = vld [vmem:[#allocation2 + $0x1b1] sm:$0xff] }
 0x167   : > { %783 = vrot.lane.b32.xlu0 %v475_v17, %s4461_s19  ;;  %v1781_v23 = vsel %vm1769_vm2, %v1748_v21, %v5272_v0  ;;  %v480_v21 = vld [vmem:[#allocation2 + $0x1e1] sm:$0xff] }
 0x168   : > { %v5284_v7 = vpop.permute.xlu1 %1149 }
 0x169   : > { %v5286_v14 = vpop.permute.xlu0 %1023 }
 0x16a   : > { %1417 = vrot.lane.b32.xlu1 %v5252_v61, %s4465_s13  ;;  %v1814_v25 = vsel %vm1802_vm4, %v1781_v23, %v5286_v14 }
 0x16b   : > { %1291 = vrot.lane.b32.xlu0 %v506_v13, %s4464_s22 }
 0x16c   : > { %v1658_v34 = vpop.permute.xlu1 %1657 }
 0x16d   : > { %v1532_v38 = vpop.permute.xlu0 %1531  ;;  %v1976_v40 = vsel %vm1967_vm9, %v1943_v33, %v1658_v34 }
 0x16e   : > { %1037 = vrot.lane.b32.xlu1 %v5295_v30, %s4462_s20  ;;  %4082 = vmatprep.mubr.msk.f32.mxu0 %vm2005_vm10, %v1976_v40  ;;  %v1944_v42 = vsel %vm1934_vm8, %v1911_v24, %v1532_v38  ;;  %v573_v40 = vld [vmem:[#allocation2 + $0x1a1] sm:$0xff] }
 0x16f   : > { %911 = vrot.lane.b32.xlu0 %v507_v26, %s4460_s18 }
 0x170   : > { %v5312_v47 = vpop.permute.xlu1 %1151 }
 0x171   : > { %v5314_v16 = vpop.permute.xlu0 %769  ;;  %v1847_v32 = vsel %vm1835_vm5, %v1814_v25, %v5312_v47 }
 0x172   : > { %1545 = vrot.lane.b32.xlu1 %v569_v9, %s4466_s29  ;;  %v1780_v9 = vsel %vm1769_vm2, %v1747_v4, %v5260_v5  ;;  %v5367_v5 = vld [vmem:[#allocation2 + $0x190] sm:$0xff]  ;;  %v390_v4 = vld [vmem:[%s4821_s17 + $0xf8] sm:$0xff] }
 0x173   : > { %1419 = vrot.lane.b32.xlu0 %v5295_v30, %s4465_s13  ;;  %v1813_v10 = vsel %vm1802_vm4, %v1780_v9, %v5270_v15  ;;  %v509_v15 = vld [vmem:[#allocation2 + $0x192] sm:$0xff]  ;;  %423 = vst.msk [vmem:[#allocation2 + $0x261] sm:$0xff] %vm277_vm0, %v390_v4 }
 0x174   : > { %v1660_v50 = vpop.permute.xlu1 %1659  ;;  %v1846_v62 = vsel %vm1835_vm5, %v1813_v10, %v5284_v7 }
 0x175   : > { %v1278_v51 = vpop.permute.xlu0 %1277  ;;  %v1977_v52 = vsel %vm1967_vm9, %v1944_v42, %v1660_v50  ;;  %v1749_v50 = vsel %vm277_vm0, %v5041_v49, %v5314_v16 }
 0x176   : > { %1165 = vrot.lane.b32.xlu1 %v475_v17, %s4463_s21  ;;  %4083 = vmatmul.mubr.msk.f32.gmra.mrb[8].mxu0 %vm2005_vm10, %v1977_v52  ;;  %v1879_v2 = vsel %vm1868_vm6, %v1846_v62, %v1278_v51 }
 0x177   : > { %1039 = vrot.lane.b32.xlu0 %v5323_v48, %s4462_s20 }
 0x178   : > { %v5331_v53 = vpop.permute.xlu1 %897 }
 0x179   : > { %v5333_v56 = vpop.permute.xlu0 %771  ;;  %v1782_v51 = vsel %vm1769_vm2, %v1749_v50, %v5331_v53  ;;  %v5439_v53 = vld [vmem:[#allocation2 + $0x1b0] sm:$0xff] }
 0x17a   : > { %1673 = vrot.lane.b32.xlu1 %v506_v13, %s4467_s14  ;;  %v513_v50 = vld [vmem:[#allocation2 + $0x1f2] sm:$0xff] }
 0x17b   : > { %1547 = vrot.lane.b32.xlu0 %v475_v17, %s4466_s29 }
 0x17c   : > { %v1406_v31 = vpop.permute.xlu1 %1405 }
 0x17d   : > { %v1280_v45 = vpop.permute.xlu0 %1279  ;;  %v1912_v44 = vsel %vm1901_vm7, %v1879_v2, %v1406_v31  ;;  %v543_v2 = vld [vmem:[#allocation2 + $0x1c0] sm:$0xff] }
 0x17e   : > { %1167 = vrot.lane.b32.xlu1 %v571_v59, %s4463_s21  ;;  %v1880_v8 = vsel %vm1868_vm6, %v1847_v32, %v1280_v45  ;;  %v512_v32 = vld [vmem:[#allocation2 + $0x1e2] sm:$0xff] }
 0x17f   : > { %785 = vrot.lane.b32.xlu0 %v571_v59, %s4461_s19 }
 0x180   : > { %v5341_v60 = vpop.permute.xlu1 %1025 }
 0x181   : > { %v5343_v43 = vpop.permute.xlu0 %899  ;;  %v1815_v52 = vsel %vm1802_vm4, %v1782_v51, %v5341_v60 }
 0x182   : > { %1675 = vrot.lane.b32.xlu1 %v507_v26, %s4467_s14 }
 0x183   : > { %1293 = vrot.lane.b32.xlu0 %v507_v26, %s4464_s22 }
 0x184   : > { %v1534_v1 = vpop.permute.xlu1 %1533 }
 0x185   : > { %v1408_v3 = vpop.permute.xlu0 %1407  ;;  %v1945_v11 = vsel %vm1934_vm8, %v1912_v44, %v1534_v1 }
 0x186   : > { %913 = vrot.lane.b32.xlu1 %v508_v63, %s4460_s18  ;;  %v1913_v0 = vsel %vm1901_vm7, %v1880_v8, %v1408_v3  ;;  %v1750_v3 = vsel %vm277_vm0, %v5085_v6, %v5333_v56  ;;  %v481_v8 = vld [vmem:[#allocation2 + $0x1f1] sm:$0xff] }
 0x187   : > { %787 = vrot.lane.b32.xlu0 %v477_v57, %s4461_s19  ;;  %v1783_v9 = vsel %vm1769_vm2, %v1750_v3, %v5343_v43 }
 0x188   : > { %v5356_v36 = vpop.permute.xlu1 %1153 }
 0x189   : > { %v5358_v55 = vpop.permute.xlu0 %1027  ;;  %v1848_v45 = vsel %vm1835_vm5, %v1815_v52, %v5356_v36 }
 0x18a   : > { %1421 = vrot.lane.b32.xlu1 %v5323_v48, %s4465_s13  ;;  %v1816_v10 = vsel %vm1802_vm4, %v1783_v9, %v5358_v55 }
 0x18b   : > { %1295 = vrot.lane.b32.xlu0 %v508_v63, %s4464_s22 }
 0x18c   : > { %v1662_v13 = vpop.permute.xlu1 %1661 }
 0x18d   : > { %v1536_v17 = vpop.permute.xlu0 %1535  ;;  %v1978_v20 = vsel %vm1967_vm9, %v1945_v11, %v1662_v13 }
 0x18e   : > { %1041 = vrot.lane.b32.xlu1 %v5367_v5, %s4462_s20  ;;  %4085 = vmatprep.mubr.msk.f32.mxu0 %vm2005_vm10, %v1978_v20  ;;  %v1946_v14 = vsel %vm1934_vm8, %v1913_v0, %v1536_v17  ;;  %v575_v20 = vld [vmem:[#allocation2 + $0x1c1] sm:$0xff] }
 0x18f   : > { %915 = vrot.lane.b32.xlu0 %v509_v15, %s4460_s18 }
 0x190   : > { %v5384_v7 = vpop.permute.xlu1 %1155 }
 0x191   : > { %v5386_v27 = vpop.permute.xlu0 %773  ;;  %v1849_v6 = vsel %vm1835_vm5, %v1816_v10, %v5384_v7 }
 0x192   : > { %1549 = vrot.lane.b32.xlu1 %v571_v59, %s4466_s29 }
 0x193   : > { %1423 = vrot.lane.b32.xlu0 %v5367_v5, %s4465_s13 }
 0x194   : > { %v1664_v18 = vpop.permute.xlu1 %1663 }
 0x195   : > { %v1282_v26 = vpop.permute.xlu0 %1281  ;;  %v1979_v33 = vsel %vm1967_vm9, %v1946_v14, %v1664_v18  ;;  %v1751_v18 = vsel %vm277_vm0, %v5113_v29, %v5386_v27 }
 0x196   : > { %1169 = vrot.lane.b32.xlu1 %v477_v57, %s4463_s21  ;;  %4086 = vmatmul.mubr.msk.f32.gmra.mrb[10].mxu0 %vm2005_vm10, %v1979_v33  ;;  %v1881_v49 = vsel %vm1868_vm6, %v1848_v45, %v1282_v26  ;;  %v607_v33 = vld [vmem:[#allocation2 + $0x1c2] sm:$0xff] }
 0x197   : > { %1043 = vrot.lane.b32.xlu0 %v5395_v12, %s4462_s20 }
 0x198   : > { %v5403_v34 = vpop.permute.xlu1 %901 }
 0x199   : > { %v5405_v38 = vpop.permute.xlu0 %775  ;;  %v1784_v26 = vsel %vm1769_vm2, %v1751_v18, %v5403_v34  ;;  %v5510_v34 = vld [vmem:[%s6414_s3] ss:$0 sm:$0xff] }
 0x19a   : > { %1677 = vrot.lane.b32.xlu1 %v508_v63, %s4467_s14 }
 0x19b   : > { %1551 = vrot.lane.b32.xlu0 %v477_v57, %s4466_s29 }
 0x19c   : > { %v1410_v41 = vpop.permute.xlu1 %1409 }
 0x19d   : > { %v1284_v46 = vpop.permute.xlu0 %1283  ;;  %v1914_v16 = vsel %vm1901_vm7, %v1881_v49, %v1410_v41 }
 0x19e   : > { %1171 = vrot.lane.b32.xlu1 %v573_v40, %s4463_s21  ;;  %v1882_v56 = vsel %vm1868_vm6, %v1849_v6, %v1284_v46 }
 0x19f   : > { %789 = vrot.lane.b32.xlu0 %v573_v40, %s4461_s19 }
 0x1a0   : > { %v5413_v28 = vpop.permute.xlu1 %1029 }
 0x1a1   : > { %v5415_v47 = vpop.permute.xlu0 %903 }
 0x1a2   : > { %1679 = vrot.lane.b32.xlu1 %v509_v15, %s4467_s14 }
 0x1a3   : > { %1297 = vrot.lane.b32.xlu0 %v509_v15, %s4464_s22 }
 0x1a4   : > { %v1538_v24 = vpop.permute.xlu1 %1537 }
 0x1a5   : > { %v1412_v42 = vpop.permute.xlu0 %1411  ;;  %v1947_v60 = vsel %vm1934_vm8, %v1914_v16, %v1538_v24 }
 0x1a6   : > { %917 = vrot.lane.b32.xlu1 %v510_v58, %s4460_s18  ;;  %v1915_v43 = vsel %vm1901_vm7, %v1882_v56, %v1412_v42  ;;  %v5516_v42 = vld [vmem:[#allocation2 + $0x1f0] sm:$0xff] }
 0x1a7   : > { %791 = vrot.lane.b32.xlu0 %v479_v19, %s4461_s19 }
 0x1a8   : > { %v5428_v59 = vpop.permute.xlu1 %1157 }
 0x1a9   : > { %v5430_v31 = vpop.permute.xlu0 %1031 }
 0x1aa   : > { %1425 = vrot.lane.b32.xlu1 %v5395_v12, %s4465_s13 }
 0x1ab   : > { %1299 = vrot.lane.b32.xlu0 %v510_v58, %s4464_s22 }
 0x1ac   : > { %v1666_v63 = vpop.permute.xlu1 %1665 }
 0x1ad   : > { %v1540_v57 = vpop.permute.xlu0 %1539  ;;  %v1980_v1 = vsel %vm1967_vm9, %v1947_v60, %v1666_v63 }
 0x1ae   : > { %1045 = vrot.lane.b32.xlu1 %v5439_v53, %s4462_s20  ;;  %4088 = vmatprep.mubr.msk.f32.mxu0 %vm2005_vm10, %v1980_v1  ;;  %v1948_v44 = vsel %vm1934_vm8, %v1915_v43, %v1540_v57  ;;  %v640_v1 = vld [vmem:[#allocation2 + $0x1d0] sm:$0xff] }
 0x1af   : > { %919 = vrot.lane.b32.xlu0 %v511_v37, %s4460_s18 }
 0x1b0   : > { %v5456_v36 = vpop.permute.xlu1 %1159 }
 0x1b1   : > { %v5458_v62 = vpop.permute.xlu0 %777 }
 0x1b2   : > { %1553 = vrot.lane.b32.xlu1 %v573_v40, %s4466_s29  ;;  %v1817_v40 = vsel %vm1802_vm4, %v1784_v26, %v5413_v28 }
 0x1b3   : > { %1427 = vrot.lane.b32.xlu0 %v5439_v53, %s4465_s13  ;;  %v1850_v29 = vsel %vm1835_vm5, %v1817_v40, %v5428_v59 }
 0x1b4   : > { %v1668_v55 = vpop.permute.xlu1 %1667 }
 0x1b5   : > { %v1286_v15 = vpop.permute.xlu0 %1285  ;;  %v1981_v11 = vsel %vm1967_vm9, %v1948_v44, %v1668_v55 }
 0x1b6   : > { %1173 = vrot.lane.b32.xlu1 %v479_v19, %s4463_s21  ;;  %4089 = vmatmul.mubr.msk.f32.gmra.mrb[12].mxu0 %vm2005_vm10, %v1981_v11  ;;  %v1883_v27 = vsel %vm1868_vm6, %v1850_v29, %v1286_v15  ;;  %v577_v15 = vld [vmem:[#allocation2 + $0x201] sm:$0xff] }
 0x1b7   : > { %1047 = vrot.lane.b32.xlu0 %v543_v2, %s4462_s20 }
 0x1b8   : > { %v5472_v13 = vpop.permute.xlu1 %905 }
 0x1b9   : > { %v5474_v17 = vpop.permute.xlu0 %779 }
 0x1ba   : > { %1681 = vrot.lane.b32.xlu1 %v510_v58, %s4467_s14 }
 0x1bb   : > { %1555 = vrot.lane.b32.xlu0 %v479_v19, %s4466_s29 }
 0x1bc   : > { %v1414_v22 = vpop.permute.xlu1 %1413 }
 0x1bd   : > { %v1288_v23 = vpop.permute.xlu0 %1287  ;;  %v1916_v28 = vsel %vm1901_vm7, %v1883_v27, %v1414_v22 }
 0x1be   : > { %1175 = vrot.lane.b32.xlu1 %v575_v20, %s4463_s21 }
 0x1bf   : > { %793 = vrot.lane.b32.xlu0 %v480_v21, %s4461_s19  ;;  %v704_v21 = vld [vmem:[#allocation2 + $0x1d2] sm:$0xff] }
 0x1c0   : > { %v5480_v25 = vpop.permute.xlu1 %1033 }
 0x1c1   : > { %v5482_v7 = vpop.permute.xlu0 %907 }
 0x1c2   : > { %1683 = vrot.lane.b32.xlu1 %v511_v37, %s4467_s14 }
 0x1c3   : > { %1301 = vrot.lane.b32.xlu0 %v511_v37, %s4464_s22  ;;  %v1752_v37 = vsel %vm277_vm0, %v5157_v54, %v5405_v38 }
 0x1c4   : > { %v1542_v0 = vpop.permute.xlu1 %1541  ;;  %v1785_v63 = vsel %vm1769_vm2, %v1752_v37, %v5415_v47 }
 0x1c5   : > { %v1416_v14 = vpop.permute.xlu0 %1415  ;;  %v1949_v51 = vsel %vm1934_vm8, %v1916_v28, %v1542_v0  ;;  %v1818_v3 = vsel %vm1802_vm4, %v1785_v63, %v5430_v31  ;;  %v5546_v31 = vld [vmem:[#allocation2 + $0x200] sm:$0xff]  ;;  %v483_v0 = vld [vmem:[#allocation2 + $0x211] sm:$0xff] }
 0x1c6   : > { %921 = vrot.lane.b32.xlu1 %v512_v32, %s4460_s18  ;;  %v1851_v38 = vsel %vm1835_vm5, %v1818_v3, %v5456_v36  ;;  %v440_v32 = vld [vmem:[#allocation2 + $0x140] sm:$0xff] }
 0x1c7   : > { %795 = vrot.lane.b32.xlu0 %v481_v8, %s4461_s19  ;;  %v1884_v10 = vsel %vm1868_vm6, %v1851_v38, %v1288_v23  ;;  %v1753_v26 = vsel %vm277_vm0, %v440_v32, %v5458_v62 }
 0x1c8   : > { %v5495_v41 = vpop.permute.xlu1 %1161  ;;  %v1917_v47 = vsel %vm1901_vm7, %v1884_v10, %v1416_v14 }
 0x1c9   : > { %v5497_v46 = vpop.permute.xlu0 %1035  ;;  %v4072_v58 = vpop.f32.mrb[0].mxu0 }
 0x1ca   : > { %1429 = vrot.lane.b32.xlu1 %v543_v2, %s4465_s13  ;;  %v2339_v19 = vmul.f32 %v4072_v58, %v5502_v39  ;;  %v2172_v24 = vpop.f32.mrb[1].mxu0  ;;  %v672_v2 = vld [vmem:[#allocation2 + $0x1d1] sm:$0xff] }
 0x1cb   : > { %1303 = vrot.lane.b32.xlu0 %v607_v33, %s4464_s22  ;;  %v2338_v52 = vmul.f32 %v5502_v39, %v2172_v24  ;;  %v5588_v24 = vld [vmem:[#allocation2 + $0x210] sm:$0xff] }
 0x1cc   : > { %v1670_v59 = vpop.permute.xlu1 %1669  ;;  %v2378_v49 = vadd.f32 %v5510_v34, %v2339_v19 }
 0x1cd   : > { %v1544_v45 = vpop.permute.xlu0 %1543  ;;  %v1982_v16 = vsel %vm1967_vm9, %v1949_v51, %v1670_v59  ;;  %v2377_v60 = vadd.f32 %v5510_v34, %v2338_v52 }
 0x1ce   : > { %1049 = vrot.lane.b32.xlu1 %v5516_v42, %s4462_s20  ;;  %v2410_v57 = vmax.f32 %v2378_v49, 0.0  ;;  %4091 = vmatprep.mubr.msk.f32.mxu0 %vm2005_vm10, %v1982_v16  ;;  %v1950_v6 = vsel %vm1934_vm8, %v1917_v47, %v1544_v45  ;;  %v1754_v16 = vsel %vm277_vm0, %v5225_v35, %v5474_v17 }
 0x1cf   : > { %923 = vrot.lane.b32.xlu0 %v513_v50, %s4460_s18  ;;  %v2409_v4 = vmax.f32 %v2377_v60, 0.0  ;;  %v1787_v60 = vsel %vm1769_vm2, %v1754_v16, %v5482_v7 }
 0x1d0   : > { %v5534_v9 = vpop.permute.xlu1 %1163  ;;  %2491 = vst.msk [vmem:[#allocation3 + $0x48] sm:$0xff] %vm1769_vm2, %v2410_v57  ;;  %v1820_v57 = vsel %vm1802_vm4, %v1787_v60, %v5497_v46  ;;  %v5619_v46 = vld [vmem:[#allocation2 + $0x220] sm:$0xff] }
 0x1d1   : > { %v5536_v54 = vpop.permute.xlu0 %781  ;;  %2490 = vst.msk [vmem:[#allocation3 + $0x40] sm:$0xff] %vm1769_vm2, %v2409_v4  ;;  %v1853_v17 = vsel %vm1835_vm5, %v1820_v57, %v5534_v9 }
 0x1d2   : > { %1557 = vrot.lane.b32.xlu1 %v575_v20, %s4466_s29 }
 0x1d3   : > { %1431 = vrot.lane.b32.xlu0 %v640_v1, %s4465_s13 }
 0x1d4   : > { %v1672_v56 = vpop.permute.xlu1 %1671 }
 0x1d5   : > { %v1290_v43 = vpop.permute.xlu0 %1289  ;;  %v1983_v36 = vsel %vm1967_vm9, %v1950_v6, %v1672_v56 }
 0x1d6   : > { %1177 = vrot.lane.b32.xlu1 %v481_v8, %s4463_s21  ;;  %4092 = vmatmul.mubr.msk.f32.gmra.mrb[14].mxu0 %vm2005_vm10, %v1983_v36  ;;  %v514_v8 = vld [vmem:[#allocation2 + $0x202] sm:$0xff] }
 0x1d7   : > { %1051 = vrot.lane.b32.xlu0 %v5546_v31, %s4462_s20 }
 0x1d8   : > { %v5554_v44 = vpop.permute.xlu1 %909 }
 0x1d9   : > { %v5556_v55 = vpop.permute.xlu0 %783 }
 0x1da   : > { %1685 = vrot.lane.b32.xlu1 %v607_v33, %s4467_s14  ;;  %v1786_v33 = vsel %vm1769_vm2, %v1753_v26, %v5472_v13 }
 0x1db   : > { %1559 = vrot.lane.b32.xlu0 %v672_v2, %s4466_s29  ;;  %v1819_v40 = vsel %vm1802_vm4, %v1786_v33, %v5480_v25 }
 0x1dc   : > { %v1418_v11 = vpop.permute.xlu1 %1417  ;;  %v1852_v58 = vsel %vm1835_vm5, %v1819_v40, %v5495_v41 }
 0x1dd   : > { %v1292_v20 = vpop.permute.xlu0 %1291  ;;  %v1885_v28 = vsel %vm1868_vm6, %v1852_v58, %v1290_v43  ;;  %v579_v43 = vld [vmem:[#allocation2 + $0x221] sm:$0xff] }
 0x1de   : > { %1179 = vrot.lane.b32.xlu1 %v577_v15, %s4463_s21  ;;  %v1918_v13 = vsel %vm1901_vm7, %v1885_v28, %v1418_v11  ;;  %v1886_v4 = vsel %vm1868_vm6, %v1853_v17, %v1292_v20  ;;  %v516_v20 = vld [vmem:[#allocation2 + $0x222] sm:$0xff]  ;;  %v5662_v28 = vld [vmem:[#allocation2 + $0x230] sm:$0xff] }
 0x1df   : > { %797 = vrot.lane.b32.xlu0 %v577_v15, %s4461_s19 }
 0x1e0   : > { %v5562_v22 = vpop.permute.xlu1 %1037 }
 0x1e1   : > { %v5564_v23 = vpop.permute.xlu0 %911 }
 0x1e2   : > { %1687 = vrot.lane.b32.xlu1 %v704_v21, %s4467_s14  ;;  %v485_v21 = vld [vmem:[#allocation2 + $0x231] sm:$0xff] }
 0x1e3   : > { %1305 = vrot.lane.b32.xlu0 %v513_v50, %s4464_s22  ;;  %v515_v50 = vld [vmem:[#allocation2 + $0x212] sm:$0xff] }
 0x1e4   : > { %v1546_v14 = vpop.permute.xlu1 %1545 }
 0x1e5   : > { %v1420_v18 = vpop.permute.xlu0 %1419  ;;  %v1951_v51 = vsel %vm1934_vm8, %v1918_v13, %v1546_v14 }
 0x1e6   : > { %925 = vrot.lane.b32.xlu1 %v514_v8, %s4460_s18  ;;  %v1919_v7 = vsel %vm1901_vm7, %v1886_v4, %v1420_v18 }
 0x1e7   : > { %799 = vrot.lane.b32.xlu0 %v483_v0, %s4461_s19 }
 0x1e8   : > { %v5576_v29 = vpop.permute.xlu1 %1165 }
 0x1e9   : > { %v5578_v27 = vpop.permute.xlu0 %1039  ;;  %v4075_v62 = vpop.f32.mrb[2].mxu0 }
 0x1ea   : > { %1433 = vrot.lane.b32.xlu1 %v5546_v31, %s4465_s13  ;;  %v2341_v19 = vmul.f32 %v4075_v62, %v5502_v39  ;;  %v2182_v25 = vpop.f32.mrb[3].mxu0  ;;  %v517_v62 = vld [vmem:[#allocation2 + $0x232] sm:$0xff] }
 0x1eb   : > { %1307 = vrot.lane.b32.xlu0 %v514_v8, %s4464_s22  ;;  %v2340_v41 = vmul.f32 %v5502_v39, %v2182_v25 }
 0x1ec   : > { %v1674_v52 = vpop.permute.xlu1 %1673  ;;  %v2380_v45 = vadd.f32 %v5510_v34, %v2341_v19 }
 0x1ed   : > { %v1548_v59 = vpop.permute.xlu0 %1547  ;;  %v1984_v49 = vsel %vm1967_vm9, %v1951_v51, %v1674_v52  ;;  %v2379_v37 = vadd.f32 %v5510_v34, %v2340_v41  ;;  %v1756_v41 = vsel %vm277_vm0, %v5295_v30, %v5556_v55 }
 0x1ee   : > { %1053 = vrot.lane.b32.xlu1 %v5588_v24, %s4462_s20  ;;  %v2412_v63 = vmax.f32 %v2380_v45, 0.0  ;;  %4094 = vmatprep.mubr.msk.f32.mxu0 %vm2005_vm10, %v1984_v49  ;;  %v1952_v38 = vsel %vm1934_vm8, %v1919_v7, %v1548_v59  ;;  %v1789_v59 = vsel %vm1769_vm2, %v1756_v41, %v5564_v23  ;;  %v581_v7 = vld [vmem:[#allocation2 + $0x241] sm:$0xff] }
 0x1ef   : > { %927 = vrot.lane.b32.xlu0 %v515_v50, %s4460_s18  ;;  %v2411_v1 = vmax.f32 %v2379_v37, 0.0  ;;  %v1822_v49 = vsel %vm1802_vm4, %v1789_v59, %v5578_v27  ;;  %v5693_v27 = vld [vmem:[#allocation2 + $0x240] sm:$0xff] }
 0x1f0   : > { %v5606_v3 = vpop.permute.xlu1 %1167  ;;  %2493 = vst.msk [vmem:[#allocation3 + $0x58] sm:$0xff] %vm1769_vm2, %v2412_v63 }
 0x1f1   : > { %v5608_v35 = vpop.permute.xlu0 %785  ;;  %2492 = vst.msk [vmem:[#allocation3 + $0x50] sm:$0xff] %vm1769_vm2, %v2411_v1  ;;  %v1855_v55 = vsel %vm1835_vm5, %v1822_v49, %v5606_v3 }
 0x1f2   : > { %1561 = vrot.lane.b32.xlu1 %v577_v15, %s4466_s29 }
 0x1f3   : > { %1435 = vrot.lane.b32.xlu0 %v5588_v24, %s4465_s13 }
 0x1f4   : > { %v1676_v10 = vpop.permute.xlu1 %1675 }
 0x1f5   : > { %v1294_v47 = vpop.permute.xlu0 %1293  ;;  %v1985_v9 = vsel %vm1967_vm9, %v1952_v38, %v1676_v10 }
 0x1f6   : > { %1181 = vrot.lane.b32.xlu1 %v483_v0, %s4463_s21  ;;  %4095 = vmatmul.mubr.msk.f32.gmra.mrb[16].mxu0 %vm2005_vm10, %v1985_v9 }
 0x1f7   : > { %1055 = vrot.lane.b32.xlu0 %v5619_v46, %s4462_s20 }
 0x1f8   : > { %v5627_v6 = vpop.permute.xlu1 %913 }
 0x1f9   : > { %v5629_v56 = vpop.permute.xlu0 %787 }
 0x1fa   : > { %1689 = vrot.lane.b32.xlu1 %v514_v8, %s4467_s14 }
 0x1fb   : > { %1563 = vrot.lane.b32.xlu0 %v483_v0, %s4466_s29  ;;  %v1755_v0 = vsel %vm277_vm0, %v5252_v61, %v5536_v54 }
 0x1fc   : > { %v1422_v36 = vpop.permute.xlu1 %1421  ;;  %v1788_v14 = vsel %vm1769_vm2, %v1755_v0, %v5554_v44 }
 0x1fd   : > { %v1296_v2 = vpop.permute.xlu0 %1295  ;;  %v1821_v18 = vsel %vm1802_vm4, %v1788_v14, %v5562_v22 }
 0x1fe   : > { %1183 = vrot.lane.b32.xlu1 %v579_v43, %s4463_s21  ;;  %v1854_v40 = vsel %vm1835_vm5, %v1821_v18, %v5576_v29  ;;  %v1888_v60 = vsel %vm1868_vm6, %v1855_v55, %v1296_v2 }
 0x1ff   : > { %801 = vrot.lane.b32.xlu0 %v579_v43, %s4461_s19  ;;  %v1887_v58 = vsel %vm1868_vm6, %v1854_v40, %v1294_v47 }
 0x200   : > { %v5635_v15 = vpop.permute.xlu1 %1041  ;;  %v1920_v54 = vsel %vm1901_vm7, %v1887_v58, %v1422_v36  ;;  %v487_v36 = vld [vmem:[#allocation2 + $0x251] sm:$0xff] }
 0x201   : > { %v5637_v11 = vpop.permute.xlu0 %915  ;;  %v5736_v58 = vld [vmem:[#allocation2 + $0x250] sm:$0xff] }
 0x202   : > { %1691 = vrot.lane.b32.xlu1 %v515_v50, %s4467_s14 }
 0x203   : > { %1309 = vrot.lane.b32.xlu0 %v515_v50, %s4464_s22 }
 0x204   : > { %v1550_v32 = vpop.permute.xlu1 %1549 }
 0x205   : > { %v1424_v8 = vpop.permute.xlu0 %1423  ;;  %v1953_v13 = vsel %vm1934_vm8, %v1920_v54, %v1550_v32 }
 0x206   : > { %929 = vrot.lane.b32.xlu1 %v516_v20, %s4460_s18  ;;  %v1921_v23 = vsel %vm1901_vm7, %v1888_v60, %v1424_v8 }
 0x207   : > { %803 = vrot.lane.b32.xlu0 %v485_v21, %s4461_s19 }
 0x208   : > { %v5650_v26 = vpop.permute.xlu1 %1169 }
 0x209   : > { %v5652_v33 = vpop.permute.xlu0 %1043  ;;  %v4078_v61 = vpop.f32.mrb[4].mxu0 }
 0x20a   : > { %1437 = vrot.lane.b32.xlu1 %v5619_v46, %s4465_s13  ;;  %v2343_v44 = vmul.f32 %v4078_v61, %v5502_v39  ;;  %v2192_v22 = vpop.f32.mrb[5].mxu0  ;;  %v519_v61 = vld [vmem:[#allocation2 + $0x252] sm:$0xff] }
 0x20b   : > { %1311 = vrot.lane.b32.xlu0 %v516_v20, %s4464_s22  ;;  %v2342_v29 = vmul.f32 %v5502_v39, %v2192_v22 }
 0x20c   : > { %v1678_v19 = vpop.permute.xlu1 %1677  ;;  %v2382_v50 = vadd.f32 %v5510_v34, %v2343_v44 }
 0x20d   : > { %v1552_v25 = vpop.permute.xlu0 %1551  ;;  %v1986_v51 = vsel %vm1967_vm9, %v1953_v13, %v1678_v19  ;;  %v2381_v52 = vadd.f32 %v5510_v34, %v2342_v29  ;;  %v1758_v29 = vsel %vm277_vm0, %v5367_v5, %v5629_v56 }
 0x20e   : > { %1057 = vrot.lane.b32.xlu1 %v5662_v28, %s4462_s20  ;;  %v2414_v45 = vmax.f32 %v2382_v50, 0.0  ;;  %4097 = vmatprep.mubr.msk.f32.mxu0 %vm2005_vm10, %v1986_v51  ;;  %v1954_v63 = vsel %vm1934_vm8, %v1921_v23, %v1552_v25  ;;  %v1791_v25 = vsel %vm1769_vm2, %v1758_v29, %v5637_v11  ;;  %v583_v23 = vld [vmem:[#allocation2 + $0x261] sm:$0xff] }
 0x20f   : > { %931 = vrot.lane.b32.xlu0 %v517_v62, %s4460_s18  ;;  %v2413_v16 = vmax.f32 %v2381_v52, 0.0  ;;  %v1824_v51 = vsel %vm1802_vm4, %v1791_v25, %v5652_v33  ;;  %v551_v33 = vld [vmem:[#allocation2 + $0x260] sm:$0xff] }
 0x210   : > { %v5680_v37 = vpop.permute.xlu1 %1171  ;;  %2495 = vst.msk [vmem:[#allocation3 + $0x68] sm:$0xff] %vm1769_vm2, %v2414_v45 }
 0x211   : > { %v5682_v30 = vpop.permute.xlu0 %789  ;;  %2494 = vst.msk [vmem:[#allocation3 + $0x60] sm:$0xff] %vm1769_vm2, %v2413_v16  ;;  %v1857_v56 = vsel %vm1835_vm5, %v1824_v51, %v5680_v37 }
 0x212   : > { %1565 = vrot.lane.b32.xlu1 %v579_v43, %s4466_s29  ;;  %v518_v43 = vld [vmem:[#allocation2 + $0x242] sm:$0xff] }
 0x213   : > { %1439 = vrot.lane.b32.xlu0 %v5662_v28, %s4465_s13 }
 0x214   : > { %v1680_v57 = vpop.permute.xlu1 %1679 }
 0x215   : > { %v1298_v1 = vpop.permute.xlu0 %1297  ;;  %v1987_v3 = vsel %vm1967_vm9, %v1954_v63, %v1680_v57 }
 0x216   : > { %1185 = vrot.lane.b32.xlu1 %v485_v21, %s4463_s21  ;;  %4098 = vmatmul.mubr.msk.f32.gmra.mrb[18].mxu0 %vm2005_vm10, %v1987_v3 }
 0x217   : > { %1059 = vrot.lane.b32.xlu0 %v5693_v27, %s4462_s20 }
 0x218   : > { %v5701_v17 = vpop.permute.xlu1 %917 }
 0x219   : > { %v5703_v4 = vpop.permute.xlu0 %791 }
 0x21a   : > { %1693 = vrot.lane.b32.xlu1 %v516_v20, %s4467_s14 }
 0x21b   : > { %1567 = vrot.lane.b32.xlu0 %v485_v21, %s4466_s29  ;;  %v1757_v21 = vsel %vm277_vm0, %v5323_v48, %v5608_v35 }
 0x21c   : > { %v1426_v38 = vpop.permute.xlu1 %1425  ;;  %v1790_v32 = vsel %vm1769_vm2, %v1757_v21, %v5627_v6  ;;  %v680_v21 = vld [vmem:[#allocation2 + $0x271] sm:$0xff] }
 0x21d   : > { %v1300_v10 = vpop.permute.xlu0 %1299  ;;  %v1823_v8 = vsel %vm1802_vm4, %v1790_v32, %v5635_v15 }
 0x21e   : > { %1187 = vrot.lane.b32.xlu1 %v581_v7, %s4463_s21  ;;  %v1856_v18 = vsel %vm1835_vm5, %v1823_v8, %v5650_v26  ;;  %v1890_v59 = vsel %vm1868_vm6, %v1857_v56, %v1300_v10 }
 0x21f   : > { %805 = vrot.lane.b32.xlu0 %v581_v7, %s4461_s19  ;;  %v1889_v40 = vsel %vm1868_vm6, %v1856_v18, %v1298_v1  ;;  %v615_v1 = vld [vmem:[#allocation2 + $0x262] sm:$0xff] }
 0x220   : > { %v5709_v47 = vpop.permute.xlu1 %1045  ;;  %v1922_v35 = vsel %vm1901_vm7, %v1889_v40, %v1426_v38  ;;  %v648_v38 = vld [vmem:[#allocation2 + $0x270] sm:$0xff] }
 0x221   : > { %v5711_v9 = vpop.permute.xlu0 %919 }
 0x222   : > { %1695 = vrot.lane.b32.xlu1 %v517_v62, %s4467_s14 }
 0x223   : > { %1313 = vrot.lane.b32.xlu0 %v517_v62, %s4464_s22 }
 0x224   : > { %v1554_v2 = vpop.permute.xlu1 %1553 }
 0x225   : > { %v1428_v20 = vpop.permute.xlu0 %1427  ;;  %v1955_v54 = vsel %vm1934_vm8, %v1922_v35, %v1554_v2  ;;  %v1759_v2 = vsel %vm277_vm0, %v5395_v12, %v5682_v30 }
 0x226   : > { %933 = vrot.lane.b32.xlu1 %v518_v43, %s4460_s18  ;;  %v1923_v11 = vsel %vm1901_vm7, %v1890_v59, %v1428_v20  ;;  %v1792_v20 = vsel %vm1769_vm2, %v1759_v2, %v5701_v17 }
 0x227   : > { %807 = vrot.lane.b32.xlu0 %v487_v36, %s4461_s19  ;;  %v1825_v32 = vsel %vm1802_vm4, %v1792_v20, %v5709_v47 }
 0x228   : > { %v5724_v0 = vpop.permute.xlu1 %1173 }
 0x229   : > { %v5726_v14 = vpop.permute.xlu0 %1047  ;;  %v4081_v48 = vpop.f32.mrb[6].mxu0  ;;  %v1858_v40 = vsel %vm1835_vm5, %v1825_v32, %v5724_v0 }
 0x22a   : > { %1441 = vrot.lane.b32.xlu1 %v5693_v27, %s4465_s13  ;;  %v2345_v6 = vmul.f32 %v4081_v48, %v5502_v39  ;;  %v2202_v15 = vpop.f32.mrb[7].mxu0 }
 0x22b   : > { %1315 = vrot.lane.b32.xlu0 %v518_v43, %s4464_s22  ;;  %v2344_v26 = vmul.f32 %v5502_v39, %v2202_v15 }
 0x22c   : > { %v1682_v44 = vpop.permute.xlu1 %1681  ;;  %v2384_v62 = vadd.f32 %v5510_v34, %v2345_v6  ;;  %v712_v6 = vld [vmem:[#allocation2 + $0x272] sm:$0xff] }
 0x22d   : > { %v1556_v22 = vpop.permute.xlu0 %1555  ;;  %v1988_v13 = vsel %vm1967_vm9, %v1955_v54, %v1682_v44  ;;  %v2383_v19 = vadd.f32 %v5510_v34, %v2344_v26  ;;  %v1760_v44 = vsel %vm277_vm0, %v5439_v53, %v5703_v4 }
 0x22e   : > { %1061 = vrot.lane.b32.xlu1 %v5736_v58, %s4462_s20  ;;  %v2416_v50 = vmax.f32 %v2384_v62, 0.0  ;;  %4100 = vmatprep.mubr.msk.f32.mxu0 %vm2005_vm10, %v1988_v13  ;;  %v1956_v45 = vsel %vm1934_vm8, %v1923_v11, %v1556_v22  ;;  %v1793_v62 = vsel %vm1769_vm2, %v1760_v44, %v5711_v9 }
 0x22f   : > { %935 = vrot.lane.b32.xlu0 %v519_v61, %s4460_s18  ;;  %v2415_v41 = vmax.f32 %v2383_v19, 0.0  ;;  %v1826_v29 = vsel %vm1802_vm4, %v1793_v62, %v5726_v14  ;;  %s269_s18 = sand.u32 1, %s4449_s25  }
 0x230   : > { %v5754_v52 = vpop.permute.xlu1 %1175  ;;  %2497 = vst.msk [vmem:[#allocation3 + $0x78] sm:$0xff] %vm1769_vm2, %v2416_v50  ;;  %s3781_s19 = sshll.u32 %s269_s18, 4  ;;  %s3704_s9 = scalar_lea.sflag [#allocation5], %s269_s18 }
 0x231   : > { %v5756_v5 = vpop.permute.xlu0 %793  ;;  %2496 = vst.msk [vmem:[#allocation3 + $0x70] sm:$0xff] %vm1769_vm2, %v2415_v41  ;;  %v1859_v53 = vsel %vm1835_vm5, %v1826_v29, %v5754_v52 }
 0x232   : > { %1569 = vrot.lane.b32.xlu1 %v581_v7, %s4466_s29 }
 0x233   : > { %1443 = vrot.lane.b32.xlu0 %v5736_v58, %s4465_s13 }
 0x234   : > { %v1684_v49 = vpop.permute.xlu1 %1683 }
 0x235   : > { %v1302_v16 = vpop.permute.xlu0 %1301  ;;  %v1989_v37 = vsel %vm1967_vm9, %v1956_v45, %v1684_v49 }
 0x236   : > { %1189 = vrot.lane.b32.xlu1 %v487_v36, %s4463_s21  ;;  %4101 = vmatmul.mubr.msk.f32.gmra.mrb[20].mxu0 %vm2005_vm10, %v1989_v37  ;;  %v1891_v12 = vsel %vm1868_vm6, %v1858_v40, %v1302_v16  ;;  %v448_v16 = vld [vmem:[#allocation2 + $0x1e0] sm:$0xff] }
 0x237   : > { %1063 = vrot.lane.b32.xlu0 %v551_v33, %s4462_s20  ;;  %s271_s20 = scalar_lea.vmem [#allocation4], %s3781_s19 }
 0x238   : > { %v5772_v55 = vpop.permute.xlu1 %921 }
 0x239   : > { %v5774_v60 = vpop.permute.xlu0 %795 }
 0x23a   : > { %1697 = vrot.lane.b32.xlu1 %v518_v43, %s4467_s14 }
 0x23b   : > { %1571 = vrot.lane.b32.xlu0 %v487_v36, %s4466_s29  ;;  %v3819_v36 = vld [vmem:[%s6415_s4 + $0x8] sm:$0xff] }
 0x23c   : > { %v1430_v63 = vpop.permute.xlu1 %1429  ;;  %4118 = vmatprep.subr.mxu0 %v3819_v36  ;;  %4276 = vmatprep.subr.mxu1 %v3819_v36 }
 0x23d   : > { %v1304_v57 = vpop.permute.xlu0 %1303  ;;  %4119 = vmatpush3.msra.mxu0 %v3819_v36  ;;  %4277 = vmatpush3.msra.mxu1 %v3819_v36  ;;  %v1924_v17 = vsel %vm1901_vm7, %v1891_v12, %v1430_v63  ;;  %v1761_v63 = vsel %vm277_vm0, %v448_v16, %v5756_v5 }
 0x23e   : > { %1317 = vrot.lane.b32.xlu1 %v519_v61, %s4464_s22  ;;  %v1892_v4 = vsel %vm1868_vm6, %v1859_v53, %v1304_v57  ;;  %v1794_v57 = vsel %vm1769_vm2, %v1761_v63, %v5772_v55 }
 0x23f   : > { %1191 = vrot.lane.b32.xlu0 %v583_v23, %s4463_s21  ;;  %s3923_s21 = sshll.u32 %s4531_s28, 8  ;;  %s4469_s28 = smov [#allocation4]  }
 0x240   : > { %v5780_v3 = vpop.permute.xlu1 %1049  ;;  %s6369_s8 = scalar_lea.hbm %s6418_s7, %s3923_s21  ;;  %s4399_s17 = sshll.u32 %s4469_s28, 4  ;;  %s4400_s17 = int_to_ptr.vmem [resolvable:$false] %s4399_s17 }
 0x241   : > { %v5782_v7 = vpop.permute.xlu0 %923  ;;  %s4401_s15 = scalar_lea.vmem %s4400_s17, 512 }
 0x242   : > { %1319 = vrot.lane.b32.xlu1 %v615_v1, %s4464_s22  ;;  %s3718_s22 = sshll.u32 %s271_s20, 4  ;;  %s6371_s22 = int_to_ptr.vmem [resolvable:$true] %s3718_s22 }
 0x243   : > { %1699 = vrot.lane.b32.xlu0 %v519_v61, %s4467_s14  ;;  %p4402_p0 = scmp.lt.s32.totalorder %s6371_s22, %s4400_s17 }
 0x244   : > { %v1558_v10 = vpop.permute.xlu1 %1557 }
 0x245   : > { %v1432_v43 = vpop.permute.xlu0 %1431  ;;  %v1957_v47 = vsel %vm1934_vm8, %v1924_v17, %v1558_v10 }
 0x246   : > { %1447 = vrot.lane.b32.xlu1 %v648_v38, %s4465_s13  ;;  %v1925_v9 = vsel %vm1901_vm7, %v1892_v4, %v1432_v43 }
 0x247   : > { %1445 = vrot.lane.b32.xlu0 %v551_v33, %s4465_s13 }
 0x248   : > { %v1178_v8 = vpop.permute.xlu1 %1177 }
 0x249   : > { %v5798_v18 = vpop.permute.xlu0 %1051  ;;  %v4084_v30 = vpop.f32.mrb[8].mxu0 }
 0x24a   : > { %1575 = vrot.lane.b32.xlu1 %v680_v21, %s4466_s29  ;;  %v2347_v48 = vmul.f32 %v4084_v30, %v5502_v39  ;;  %v2212_v35 = vpop.f32.mrb[9].mxu0 }
 0x24b   : > { %1573 = vrot.lane.b32.xlu0 %v583_v23, %s4466_s29  ;;  %v2346_v15 = vmul.f32 %v5502_v39, %v2212_v35 }
 0x24c   : > { %v1686_v61 = vpop.permute.xlu1 %1685  ;;  %v2386_v0 = vadd.f32 %v5510_v34, %v2347_v48 }
 0x24d   : > { %v1560_v54 = vpop.permute.xlu0 %1559  ;;  %v1990_v26 = vsel %vm1967_vm9, %v1957_v47, %v1686_v61  ;;  %v2385_v22 = vadd.f32 %v5510_v34, %v2346_v15 }
 0x24e   : > { %1703 = vrot.lane.b32.xlu1 %v712_v6, %s4467_s14  ;;  %v2418_v13 = vmax.f32 %v2386_v0, 0.0  ;;  %4103 = vmatprep.mubr.msk.f32.mxu0 %vm2005_vm10, %v1990_v26  ;;  %v1958_v51 = vsel %vm1934_vm8, %v1925_v9, %v1560_v54 }
 0x24f   : > { %1701 = vrot.lane.b32.xlu0 %v615_v1, %s4467_s14  ;;  %v2417_v19 = vmax.f32 %v2385_v22, 0.0  ;;  %v1827_v1 = vsel %vm1802_vm4, %v1794_v57, %v5780_v3  ;;  %s4395_s14 = scalar_lea.vmem %s6371_s22, 256 }
 0x250   : > { %v1180_v25 = vpop.permute.xlu1 %1179  ;;  %2499 = vst.msk [vmem:[#allocation3 + $0x88] sm:$0xff] %vm1769_vm2, %v2418_v13  ;;  %v1860_v43 = vsel %vm1835_vm5, %v1827_v1, %v1178_v8  ;;  %v1762_v8 = vsel %vm277_vm0, %v5516_v42, %v5774_v60  ;;  %p4396_p11 = scmp.ne.s32.totalorder %s6371_s22, %s4395_s14  ;;  %p4403_p1 = scmp.lt.s32.totalorder %s4401_s15, %s4395_s14 }
 0x251   : > { %v5822_v50 = vpop.permute.xlu0 %797  ;;  %2498 = vst.msk [vmem:[#allocation3 + $0x80] sm:$0xff] %vm1769_vm2, %v2417_v19  ;;  %v1795_v48 = vsel %vm1769_vm2, %v1762_v8, %v5782_v7 }
 0x252   : > { %v1828_v6 = vsel %vm1802_vm4, %v1795_v48, %v5798_v18  ;;  %v1763_v4 = vsel %vm277_vm0, %v5546_v31, %v5822_v50  ;;  %p4397_p12 = pnand %p4396_p11, %p4548_p5  ;;  %p4404_p2 = por %p4403_p1, %p4402_p0 }
 0x253   : > { %v1861_v54 = vsel %vm1835_vm5, %v1828_v6, %v1180_v25 }
 0x254   : > { %v1688_v41 = vpop.permute.xlu1 %1687  ;;  %p4398_p13 = pneg %p4397_p12 }
 0x255   : > { %v1306_v56 = vpop.permute.xlu0 %1305  ;;  %v1991_v14 = vsel %vm1967_vm9, %v1958_v51, %v1688_v41 }
 0x256   : > { %4104 = vmatmul.mubr.msk.f32.gmra.mrb[22].mxu0 %vm2005_vm10, %v1991_v14  ;;  %v1893_v36 = vsel %vm1868_vm6, %v1860_v43, %v1306_v56  ;;  %p4405_p3 = pnand %p4404_p2, %p4398_p13 }
 0x258   : > { %v926_v59 = vpop.permute.xlu1 %925 }
 0x259   : > { %v5833_v11 = vpop.permute.xlu0 %799  ;;  %v1796_v9 = vsel %vm1769_vm2, %v1763_v4, %v926_v59 }
 0x25a   : > { %v1764_v1 = vsel %vm277_vm0, %v5588_v24, %v5833_v11 }
 0x25c   : > { %v1434_v52 = vpop.permute.xlu1 %1433 }
 0x25d   : > { %v1308_v33 = vpop.permute.xlu0 %1307  ;;  %v1926_v20 = vsel %vm1901_vm7, %v1893_v36, %v1434_v52 }
 0x25e   : > { %v1894_v42 = vsel %vm1868_vm6, %v1861_v54, %v1308_v33 }
 0x260   : > { %v1054_v45 = vpop.permute.xlu1 %1053 }
 0x261   : > { %v5835_v49 = vpop.permute.xlu0 %927  ;;  %v1829_v51 = vsel %vm1802_vm4, %v1796_v9, %v1054_v45 }
 0x262   : > { %v1797_v43 = vsel %vm1769_vm2, %v1764_v1, %v5835_v49 }
 0x264   : > { %v1562_v37 = vpop.permute.xlu1 %1561 }
 0x265   : > { %v1436_v23 = vpop.permute.xlu0 %1435  ;;  %v1959_v5 = vsel %vm1934_vm8, %v1926_v20, %v1562_v37 }
 0x266   : > { %v1927_v60 = vsel %vm1901_vm7, %v1894_v42, %v1436_v23 }
 0x268   : > { %v1182_v38 = vpop.permute.xlu1 %1181 }
 0x269   : > { %v5843_v10 = vpop.permute.xlu0 %1055  ;;  %v4087_v2 = vpop.f32.mrb[10].mxu0  ;;  %v1862_v14 = vsel %vm1835_vm5, %v1829_v51, %v1182_v38 }
 0x26a   : > { %v2349_v21 = vmul.f32 %v4087_v2, %v5502_v39  ;;  %v2222_v32 = vpop.f32.mrb[11].mxu0  ;;  %v1830_v2 = vsel %vm1802_vm4, %v1797_v43, %v5843_v10 }
 0x26b   : > { %v2348_v55 = vmul.f32 %v5502_v39, %v2222_v32 }
 0x26c   : > { %v1690_v40 = vpop.permute.xlu1 %1689  ;;  %v2388_v3 = vadd.f32 %v5510_v34, %v2349_v21 }
 0x26d   : > { %v1564_v12 = vpop.permute.xlu0 %1563  ;;  %v1992_v30 = vsel %vm1967_vm9, %v1959_v5, %v1690_v40  ;;  %v2387_v17 = vadd.f32 %v5510_v34, %v2348_v55 }
 0x26e   : > { %4106 = vmatprep.mubr.msk.f32.mxu0 %vm2005_vm10, %v1992_v30  ;;  %v2420_v35 = vmax.f32 %v2388_v3, 0.0  ;;  %v1960_v7 = vsel %vm1934_vm8, %v1927_v60, %v1564_v12 }
 0x26f   : > { %v2419_v47 = vmax.f32 %v2387_v17, 0.0 }
 0x270   : > { %v1184_v15 = vpop.permute.xlu1 %1183  ;;  %2501 = vst.msk [vmem:[#allocation3 + $0x98] sm:$0xff] %vm1769_vm2, %v2420_v35 }
 0x271   : > { %v5862_v61 = vpop.permute.xlu0 %801  ;;  %2500 = vst.msk [vmem:[#allocation3 + $0x90] sm:$0xff] %vm1769_vm2, %v2419_v47  ;;  %v1863_v5 = vsel %vm1835_vm5, %v1830_v2, %v1184_v15 }
 0x272   : > { %v1765_v47 = vsel %vm277_vm0, %v5619_v46, %v5862_v61 }
 0x274   : > { %v1692_v0 = vpop.permute.xlu1 %1691 }
 0x275   : > { %v1310_v26 = vpop.permute.xlu0 %1309  ;;  %v1993_v18 = vsel %vm1967_vm9, %v1960_v7, %v1692_v0 }
 0x276   : > { %4107 = vmatmul.mubr.msk.f32.gmra.mrb[24].mxu0 %vm2005_vm10, %v1993_v18  ;;  %v1895_v52 = vsel %vm1868_vm6, %v1862_v14, %v1310_v26 }
 0x278   : > { %v930_v44 = vpop.permute.xlu1 %929 }
 0x279   : > { %v5872_v22 = vpop.permute.xlu0 %803  ;;  %v1798_v15 = vsel %vm1769_vm2, %v1765_v47, %v930_v44 }
 0x27a   : > { %v1766_v4 = vsel %vm277_vm0, %v5662_v28, %v5872_v22 }
 0x27c   : > { %v1438_v62 = vpop.permute.xlu1 %1437 }
 0x27d   : > { %v1312_v13 = vpop.permute.xlu0 %1311  ;;  %v1928_v16 = vsel %vm1901_vm7, %v1895_v52, %v1438_v62 }
 0x27e   : > { %v1896_v24 = vsel %vm1868_vm6, %v1863_v5, %v1312_v13 }
 0x280   : > { %v1058_v29 = vpop.permute.xlu1 %1057 }
 0x281   : > { %v5874_v19 = vpop.permute.xlu0 %931  ;;  %v1831_v54 = vsel %vm1802_vm4, %v1798_v15, %v1058_v29 }
 0x282   : > { %v1799_v51 = vsel %vm1769_vm2, %v1766_v4, %v5874_v19  ;;  %v6039_v4 = vld [vmem:[%s6413_s2] ss:$0 sm:$0xff] }
 0x284   : > { %v1566_v25 = vpop.permute.xlu1 %1565 }
 0x285   : > { %v1440_v53 = vpop.permute.xlu0 %1439  ;;  %v1961_v63 = vsel %vm1934_vm8, %v1928_v16, %v1566_v25 }
 0x286   : > { %v1929_v11 = vsel %vm1901_vm7, %v1896_v24, %v1440_v53 }
 0x288   : > { %v1186_v41 = vpop.permute.xlu1 %1185 }
 0x289   : > { %v5881_v56 = vpop.permute.xlu0 %1059  ;;  %v4090_v33 = vpop.f32.mrb[12].mxu0  ;;  %v1864_v7 = vsel %vm1835_vm5, %v1831_v54, %v1186_v41 }
 0x28a   : > { %v2351_v37 = vmul.f32 %v4090_v33, %v5502_v39  ;;  %v2232_v23 = vpop.f32.mrb[13].mxu0  ;;  %v1832_v14 = vsel %vm1802_vm4, %v1799_v51, %v5881_v56 }
 0x28b   : > { %v2350_v31 = vmul.f32 %v5502_v39, %v2232_v23 }
 0x28c   : > { %v1694_v50 = vpop.permute.xlu1 %1693  ;;  %v2390_v45 = vadd.f32 %v5510_v34, %v2351_v37 }
 0x28d   : > { %v1568_v59 = vpop.permute.xlu0 %1567  ;;  %v1994_v57 = vsel %vm1967_vm9, %v1961_v63, %v1694_v50  ;;  %v2389_v38 = vadd.f32 %v5510_v34, %v2350_v31 }
 0x28e   : > { %4109 = vmatprep.mubr.msk.f32.mxu0 %vm2005_vm10, %v1994_v57  ;;  %v2422_v36 = vmax.f32 %v2390_v45, 0.0  ;;  %v1962_v55 = vsel %vm1934_vm8, %v1929_v11, %v1568_v59 }
 0x28f   : > { %v2421_v20 = vmax.f32 %v2389_v38, 0.0 }
 0x290   : > { %v1188_v21 = vpop.permute.xlu1 %1187  ;;  %2503 = vst.msk [vmem:[#allocation3 + $0xa8] sm:$0xff] %vm1769_vm2, %v2422_v36 }
 0x291   : > { %v806_v32 = vpop.permute.xlu0 %805  ;;  %2502 = vst.msk [vmem:[#allocation3 + $0xa0] sm:$0xff] %vm1769_vm2, %v2421_v20  ;;  %v1865_v37 = vsel %vm1835_vm5, %v1832_v14, %v1188_v21  ;;  %v6046_v14 = vld [vmem:[%s6414_s3] ss:$0 sm:$0xff] }
 0x292   : > { %v1767_v59 = vsel %vm277_vm0, %v5693_v27, %v806_v32 }
 0x294   : > { %v1696_v49 = vpop.permute.xlu1 %1695 }
 0x295   : > { %v1314_v40 = vpop.permute.xlu0 %1313  ;;  %v1995_v12 = vsel %vm1967_vm9, %v1962_v55, %v1696_v49 }
 0x296   : > { %4110 = vmatmul.mubr.msk.f32.gmra.mrb[26].mxu0 %vm2005_vm10, %v1995_v12  ;;  %v1897_v0 = vsel %vm1868_vm6, %v1864_v7, %v1314_v40  ;;  %v5986_v7 = vld [vmem:[#allocation3 + $0x70] sm:$0xff] }
 0x298   : > { %v934_v10 = vpop.permute.xlu1 %933 }
 0x299   : > { %v808_v3 = vpop.permute.xlu0 %807  ;;  %v1800_v57 = vsel %vm1769_vm2, %v1767_v59, %v934_v10  ;;  %v5958_v10 = vld [vmem:[#allocation3 + $0x40] sm:$0xff] }
 0x29a   : > { %v1768_v45 = vsel %vm277_vm0, %v5736_v58, %v808_v3  ;;  %v5962_v3 = vld [vmem:[#allocation3 + $0x48] sm:$0xff] }
 0x29c   : > { %v1442_v30 = vpop.permute.xlu1 %1441 }
 0x29d   : > { %v1316_v8 = vpop.permute.xlu0 %1315  ;;  %v1930_v18 = vsel %vm1901_vm7, %v1897_v0, %v1442_v30  ;;  %v5966_v30 = vld [vmem:[#allocation3 + $0x50] sm:$0xff] }
 0x29e   : > { %v1898_v28 = vsel %vm1868_vm6, %v1865_v37, %v1316_v8 }
 0x2a0   : > { %v1062_v17 = vpop.permute.xlu1 %1061 }
 0x2a1   : > { %v936_v48 = vpop.permute.xlu0 %935  ;;  %v1833_v38 = vsel %vm1802_vm4, %v1800_v57, %v1062_v17  ;;  %v5970_v17 = vld [vmem:[#allocation3 + $0x58] sm:$0xff] }
 0x2a2   : > { %v1801_v1 = vsel %vm1769_vm2, %v1768_v45, %v936_v48 }
 0x2a4   : > { %v1570_v35 = vpop.permute.xlu1 %1569 }
 0x2a5   : > { %v1444_v6 = vpop.permute.xlu0 %1443  ;;  %v1963_v25 = vsel %vm1934_vm8, %v1930_v18, %v1570_v35  ;;  %v6004_v18 = vld [vmem:[#allocation3 + $0x90] sm:$0xff] }
 0x2a6   : > { %v1931_v22 = vsel %vm1901_vm7, %v1898_v28, %v1444_v6  ;;  %v5975_v6 = vld [vmem:[#allocation3 + $0x60] sm:$0xff] }
 0x2a8   : > { %v1190_v42 = vpop.permute.xlu1 %1189 }
 0x2a9   : > { %v1064_v60 = vpop.permute.xlu0 %1063  ;;  %v4093_v26 = vpop.f32.mrb[14].mxu0  ;;  %v1866_v20 = vsel %vm1835_vm5, %v1833_v38, %v1190_v42  ;;  %v5982_v42 = vld [vmem:[#allocation3 + $0x68] sm:$0xff]  ;;  %v6077_v38 = vld [vmem:[%s6415_s4] sm:$0xff] }
 0x2aa   : > { %v2353_v62 = vmul.f32 %v4093_v26, %v5502_v39  ;;  %v2242_v13 = vpop.f32.mrb[15].mxu0  ;;  %v1834_v43 = vsel %vm1802_vm4, %v1801_v1, %v1064_v60  ;;  %v6000_v26 = vld [vmem:[#allocation3 + $0x88] sm:$0xff]  ;;  %4168 = vmatprep.subr.mxu1 %v6077_v38 }
 0x2ab   : > { %v2352_v46 = vmul.f32 %v5502_v39, %v2242_v13  ;;  %v6012_v13 = vld [vmem:[#allocation3 + $0xa0] sm:$0xff] }
 0x2ac   : > { %v1698_v61 = vpop.permute.xlu1 %1697  ;;  %v2392_v29 = vadd.f32 %v5510_v34, %v2353_v62  ;;  %v6008_v62 = vld [vmem:[#allocation3 + $0x98] sm:$0xff] }
 0x2ad   : > { %v1572_v44 = vpop.permute.xlu0 %1571  ;;  %v1996_v53 = vsel %vm1967_vm9, %v1963_v25, %v1698_v61  ;;  %v2391_v9 = vadd.f32 %v5510_v34, %v2352_v46  ;;  %v6016_v25 = vld [vmem:[#allocation3 + $0xa8] sm:$0xff] }
 0x2ae   : > { %4112 = vmatprep.mubr.msk.f32.mxu0 %vm2005_vm10, %v1996_v53  ;;  %v2424_v41 = vmax.f32 %v2392_v29, 0.0  ;;  %v1964_v23 = vsel %vm1934_vm8, %v1931_v22, %v1572_v44 }
 0x2af   : > { %v2423_v52 = vmax.f32 %v2391_v9, 0.0 }
 0x2b0   : > { %v1318_v33 = vpop.permute.xlu1 %1317  ;;  %2505 = vst.msk [vmem:[#allocation3 + $0xb8] sm:$0xff] %vm1769_vm2, %v2424_v41 }
 0x2b1   : > { %v1192_v16 = vpop.permute.xlu0 %1191  ;;  %2504 = vst.msk [vmem:[#allocation3 + $0xb0] sm:$0xff] %vm1769_vm2, %v2423_v52  ;;  %v1899_v5 = vsel %vm1868_vm6, %v1866_v20, %v1318_v33 }
 0x2b2   : > { %v1867_v21 = vsel %vm1835_vm5, %v1834_v43, %v1192_v16 }
 0x2b4   : > { %v1320_v19 = vpop.permute.xlu1 %1319 }
 0x2b5   : > { %v1700_v63 = vpop.permute.xlu0 %1699  ;;  %v1900_v27 = vsel %vm1868_vm6, %v1867_v21, %v1320_v19 }
 0x2b6   : > { %v1997_v31 = vsel %vm1967_vm9, %v1964_v23, %v1700_v63 }
 0x2b7   : > { %4113 = vmatmul.mubr.msk.f32.gmra.mrb[28].mxu0 %vm2005_vm10, %v1997_v31  ;;  %v6024_v61 = vld [vmem:[#allocation3 + $0xb8] sm:$0xff] }
 0x2b8   : > { %v1448_v56 = vpop.permute.xlu1 %1447  ;;  %v6020_v46 = vld [vmem:[#allocation3 + $0xb0] sm:$0xff] }
 0x2b9   : > { %v1446_v50 = vpop.permute.xlu0 %1445  ;;  %v1933_v58 = vsel %vm1901_vm7, %v1900_v27, %v1448_v56 }
 0x2ba   : > { %v1932_v32 = vsel %vm1901_vm7, %v1899_v5, %v1446_v50 }
 0x2bc   : > { %v1576_v36 = vpop.permute.xlu1 %1575 }
 0x2bd   : > { %v1574_v2 = vpop.permute.xlu0 %1573  ;;  %v1966_v24 = vsel %vm1934_vm8, %v1933_v58, %v1576_v36 }
 0x2be   : > { %v1965_v11 = vsel %vm1934_vm8, %v1932_v32, %v1574_v2 }
 0x2c0   : > { %v1704_v55 = vpop.permute.xlu1 %1703 }
 0x2c1   : > { %v1702_v49 = vpop.permute.xlu0 %1701  ;;  %v1999_v40 = vsel %vm1967_vm9, %v1966_v24, %v1704_v55 }
 0x2c2   : > { %v1998_v12 = vsel %vm1967_vm9, %v1965_v11, %v1702_v49 }
 0x2c3   : > { %4115 = vmatprep.mubr.msk.f32.mxu0 %vm2005_vm10, %v1998_v12 }
 0x2c4   : > { %4116 = vmatmul.mubr.msk.f32.gmra.mrb[30].mxu0 %vm2005_vm10, %v1999_v40 }
 0x2c5   : > { %4120 = vmatprep.mubr.msk.f32.mxu0 %vm1769_vm2, %v5958_v10 }
 0x2c8   : > { %4121 = vmatmul.mubr.msk.f32.vlgmr.msra.gmra.mrb[32].mxu0 %vm1769_vm2, %v5962_v3 }
 0x2c9   : > { %4123 = vmatprep.mubr.msk.f32.mxu0 %vm1769_vm2, %v5966_v30  ;;  %v4096_v8 = vpop.f32.mrb[16].mxu0 }
 0x2ca   : > { %v2355_v48 = vmul.f32 %v4096_v8, %v5502_v39  ;;  %v2252_v35 = vpop.f32.mrb[17].mxu0 }
 0x2cb   : > { %v2354_v47 = vmul.f32 %v5502_v39, %v2252_v35  ;;  %v5992_v39 = vld [vmem:[#allocation3 + $0x78] sm:$0xff] }
 0x2cc   : > { %4124 = vmatmul.mubr.msk.f32.gmra.mrb[34].mxu0 %vm1769_vm2, %v5970_v17  ;;  %v2394_v15 = vadd.f32 %v5510_v34, %v2355_v48 }
 0x2cd   : > { %4126 = vmatprep.mubr.msk.f32.mxu0 %vm1769_vm2, %v5975_v6  ;;  %v2393_v54 = vadd.f32 %v5510_v34, %v2354_v47  ;;  %v5996_v34 = vld [vmem:[#allocation3 + $0x80] sm:$0xff] }
 0x2ce   : > { %v2426_v60 = vmax.f32 %v2394_v15, 0.0 }
 0x2cf   : > { %v2425_v0 = vmax.f32 %v2393_v54, 0.0 }
 0x2d0   : > { %4127 = vmatmul.mubr.msk.f32.gmra.mrb[36].mxu0 %vm1769_vm2, %v5982_v42  ;;  %2507 = vst.msk [vmem:[#allocation3 + $0xc8] sm:$0xff] %vm1769_vm2, %v2426_v60 }
 0x2d1   : > { %4129 = vmatprep.mubr.msk.f32.mxu0 %vm1769_vm2, %v5986_v7  ;;  %2506 = vst.msk [vmem:[#allocation3 + $0xc0] sm:$0xff] %vm1769_vm2, %v2425_v0 }
 0x2d4   : > { %4130 = vmatmul.mubr.msk.f32.gmra.mrb[38].mxu0 %vm1769_vm2, %v5992_v39 }
 0x2d5   : > { %4132 = vmatprep.mubr.msk.f32.mxu0 %vm1769_vm2, %v5996_v34 }
 0x2d7   : > { %v6032_v29 = vld [vmem:[#allocation3 + $0xc8] sm:$0xff] }
 0x2d8   : > { %4133 = vmatmul.mubr.msk.f32.gmra.mrb[40].mxu0 %vm1769_vm2, %v6000_v26  ;;  %v6028_v44 = vld [vmem:[#allocation3 + $0xc0] sm:$0xff] }
 0x2d9   : > { %4135 = vmatprep.mubr.msk.f32.mxu0 %vm1769_vm2, %v6004_v18 }
 0x2dc   : > { %4136 = vmatmul.mubr.msk.f32.gmra.mrb[42].mxu0 %vm1769_vm2, %v6008_v62 }
 0x2dd   : > { %4138 = vmatprep.mubr.msk.f32.mxu0 %vm1769_vm2, %v6012_v13 }
 0x2e0   : > { %4139 = vmatmul.mubr.msk.f32.gmra.mrb[44].mxu0 %vm1769_vm2, %v6016_v25 }
 0x2e1   : > { %4141 = vmatprep.mubr.msk.f32.mxu0 %vm1769_vm2, %v6020_v46 }
 0x2e4   : > { %4142 = vmatmul.mubr.msk.f32.gmra.mrb[46].mxu0 %vm1769_vm2, %v6024_v61 }
 0x2e5   : > { %4144 = vmatprep.mubr.msk.f32.mxu0 %vm1769_vm2, %v6028_v44 }
 0x2e8   : > { %4145 = vmatmul.mubr.msk.f32.gmra.mrb[48].mxu0 %vm1769_vm2, %v6032_v29 }
 0x2e9   : > { %v4099_v53 = vpop.f32.mrb[18].mxu0 }
 0x2ea   : > { %v2357_v9 = vmul.f32 %v6039_v4, %v4099_v53  ;;  %v2262_v51 = vpop.f32.mrb[19].mxu0 }
 0x2eb   : > { %v2356_v41 = vmul.f32 %v6039_v4, %v2262_v51 }
 0x2ec   : > { %v2396_v52 = vadd.f32 %v6046_v14, %v2357_v9 }
 0x2ed   : > { %v2395_v33 = vadd.f32 %v6046_v14, %v2356_v41 }
 0x2ee   : > { %v2428_v16 = vmax.f32 %v2396_v52, 0.0 }
 0x2ef   : > { %v2427_v37 = vmax.f32 %v2395_v33, 0.0 }
 0x2f0   : > { %2509 = vst.msk [vmem:[#allocation3 + $0xd8] sm:$0xff] %vm1769_vm2, %v2428_v16 }
 0x2f1   : > { %2508 = vst.msk [vmem:[#allocation3 + $0xd0] sm:$0xff] %vm1769_vm2, %v2427_v37 }
 0x2f7   : > { %v6056_v22 = vld [vmem:[#allocation3 + $0xd8] sm:$0xff] }
 0x2f8   : > { %v6052_v28 = vld [vmem:[#allocation3 + $0xd0] sm:$0xff] }
 0x2f9   : > { %4147 = vmatprep.mubr.msk.f32.mxu0 %vm1769_vm2, %v6052_v28 }
 0x2fa   : > { %4148 = vmatmul.mubr.msk.f32.gmra.mrb[50].mxu0 %vm1769_vm2, %v6056_v22 }
 0x309   : > { %v4102_v23 = vpop.f32.mrb[20].mxu0 }
 0x30a   : > { %v2359_v19 = vmul.f32 %v6039_v4, %v4102_v23  ;;  %v2272_v63 = vpop.f32.mrb[21].mxu0 }
 0x30b   : > { %v2358_v31 = vmul.f32 %v6039_v4, %v2272_v63 }
 0x30c   : > { %v2398_v56 = vadd.f32 %v6046_v14, %v2359_v19 }
 0x30d   : > { %v2397_v50 = vadd.f32 %v6046_v14, %v2358_v31 }
 0x30e   : > { %v2430_v59 = vmax.f32 %v2398_v56, 0.0 }
 0x30f   : > { %v2429_v45 = vmax.f32 %v2397_v50, 0.0 }
 0x310   : > { %2511 = vst.msk [vmem:[#allocation3 + $0xe8] sm:$0xff] %vm1769_vm2, %v2430_v59 }
 0x311   : > { %2510 = vst.msk [vmem:[#allocation3 + $0xe0] sm:$0xff] %vm1769_vm2, %v2429_v45 }
 0x317   : > { %v6070_v1 = vld [vmem:[#allocation3 + $0xe8] sm:$0xff] }
 0x318   : > { %v6066_v57 = vld [vmem:[#allocation3 + $0xe0] sm:$0xff] }
 0x319   : > { %4150 = vmatprep.mubr.msk.f32.mxu0 %vm1769_vm2, %v6066_v57 }
 0x31a   : > { %4151 = vmatmul.mubr.msk.f32.gmra.mrb[52].mxu0 %vm1769_vm2, %v6070_v1 }
 0x329   : > { %v4105_v43 = vpop.f32.mrb[22].mxu0 }
 0x32a   : > { %v2361_v36 = vmul.f32 %v6039_v4, %v4105_v43  ;;  %v2282_v2 = vpop.f32.mrb[23].mxu0 }
 0x32b   : > { %v2360_v20 = vmul.f32 %v6039_v4, %v2282_v2 }
 0x32c   : > { %v2400_v21 = vadd.f32 %v6046_v14, %v2361_v36 }
 0x32d   : > { %v2399_v5 = vadd.f32 %v6046_v14, %v2360_v20 }
 0x32e   : > { %v2432_v27 = vmax.f32 %v2400_v21, 0.0 }
 0x32f   : > { %v2431_v58 = vmax.f32 %v2399_v5, 0.0 }
 0x330   : > { %2513 = vst.msk [vmem:[#allocation3 + $0xf8] sm:$0xff] %vm1769_vm2, %v2432_v27 }
 0x331   : > { %2512 = vst.msk [vmem:[#allocation3 + $0xf0] sm:$0xff] %vm1769_vm2, %v2431_v58 }
 0x337   : > { %v6090_v24 = vld [vmem:[#allocation3 + $0xf8] sm:$0xff] }
 0x338   : > { %v6086_v32 = vld [vmem:[#allocation3 + $0xf0] sm:$0xff] }
 0x339   : > { %4153 = vmatprep.mubr.msk.f32.mxu0 %vm1769_vm2, %v6086_v32 }
 0x33a   : > { %4154 = vmatmul.mubr.msk.f32.gmra.mrb[54].mxu0 %vm1769_vm2, %v6090_v24 }
 0x349   : > { %v4108_v11 = vpop.f32.mrb[24].mxu0 }
 0x34a   : > { %v2363_v55 = vmul.f32 %v6039_v4, %v4108_v11  ;;  %v2292_v49 = vpop.f32.mrb[25].mxu0 }
 0x34b   : > { %v2362_v40 = vmul.f32 %v6039_v4, %v2292_v49 }
 0x34c   : > { %v2402_v12 = vadd.f32 %v6046_v14, %v2363_v55 }
 0x34d   : > { %v2401_v8 = vadd.f32 %v6046_v14, %v2362_v40 }
 0x34e   : > { %v2434_v48 = vmax.f32 %v2402_v12, 0.0 }
 0x34f   : > { %v2433_v35 = vmax.f32 %v2401_v8, 0.0 }
 0x350   : > { %2515 = vst.msk [vmem:[#allocation3 + $0x108] sm:$0xff] %vm1769_vm2, %v2434_v48  ;;  %v2522_v48 = vld [vmem:[#allocation3] sm:$0xff] }
 0x351   : > { %2514 = vst.msk [vmem:[#allocation3 + $0x100] sm:$0xff] %vm1769_vm2, %v2433_v35 }
 0x357   : > { %v6104_v15 = vld [vmem:[#allocation3 + $0x108] sm:$0xff] }
 0x358   : > { %v6100_v47 = vld [vmem:[#allocation3 + $0x100] sm:$0xff] }
 0x359   : > { %4156 = vmatprep.mubr.msk.f32.mxu0 %vm1769_vm2, %v6100_v47 }
 0x35a   : > { %4157 = vmatmul.mubr.msk.f32.gmra.mrb[56].mxu0 %vm1769_vm2, %v6104_v15 }
 0x369   : > { %v4111_v54 = vpop.f32.mrb[26].mxu0 }
 0x36a   : > { %v2365_v60 = vmul.f32 %v6039_v4, %v4111_v54  ;;  %v2302_v0 = vpop.f32.mrb[27].mxu0 }
 0x36b   : > { %v2364_v53 = vmul.f32 %v6039_v4, %v2302_v0 }
 0x36c   : > { %v2404_v9 = vadd.f32 %v6046_v14, %v2365_v60  ;;  %v3884_v60 = vld [vmem:[%s6415_s4 + $0x10] sm:$0xff] }
 0x36d   : > { %v2403_v51 = vadd.f32 %v6046_v14, %v2364_v53  ;;  %v2523_v53 = vld [vmem:[#allocation3 + $0x8] sm:$0xff] }
 0x36e   : > { %v2436_v41 = vmax.f32 %v2404_v9, 0.0  ;;  %v2524_v9 = vld [vmem:[#allocation3 + $0x10] sm:$0xff] }
 0x36f   : > { %v2435_v52 = vmax.f32 %v2403_v51, 0.0 }
 0x370   : > { %2517 = vst.msk [vmem:[#allocation3 + $0x118] sm:$0xff] %vm1769_vm2, %v2436_v41 }
 0x371   : > { %2516 = vst.msk [vmem:[#allocation3 + $0x110] sm:$0xff] %vm1769_vm2, %v2435_v52  ;;  %v2525_v52 = vld [vmem:[#allocation3 + $0x18] sm:$0xff] }
 0x377   : > { %v6118_v16 = vld [vmem:[#allocation3 + $0x118] sm:$0xff] }
 0x378   : > { %v6114_v33 = vld [vmem:[#allocation3 + $0x110] sm:$0xff] }
 0x379   : > { %4159 = vmatprep.mubr.msk.f32.mxu0 %vm1769_vm2, %v6114_v33 }
 0x37a   : > { %4160 = vmatmul.mubr.msk.f32.gmra.mrb[58].mxu0 %vm1769_vm2, %v6118_v16 }
 0x38a   : > { %v4114_v37 = vpop.f32.mrb[28].mxu0 }
 0x38b   : > { %v2367_v23 = vmul.f32 %v6039_v4, %v4114_v37  ;;  %v2312_v19 = vpop.f32.mrb[29].mxu0  ;;  %v2526_v37 = vld [vmem:[#allocation3 + $0x20] sm:$0xff] }
 0x38c   : > { %v2366_v63 = vmul.f32 %v6039_v4, %v2312_v19 }
 0x38d   : > { %v2406_v31 = vadd.f32 %v6046_v14, %v2367_v23 }
 0x38e   : > { %v2405_v56 = vadd.f32 %v6046_v14, %v2366_v63  ;;  %v2528_v63 = vld [vmem:[#allocation3 + $0x30] sm:$0xff] }
 0x38f   : > { %v2438_v50 = vmax.f32 %v2406_v31, 0.0 }
 0x390   : > { %v2437_v59 = vmax.f32 %v2405_v56, 0.0 }
 0x391   : > { %2519 = vst.msk [vmem:[#allocation3 + $0x128] sm:$0xff] %vm1769_vm2, %v2438_v50  ;;  %v2529_v50 = vld [vmem:[#allocation3 + $0x38] sm:$0xff] }
 0x392   : > { %2518 = vst.msk [vmem:[#allocation3 + $0x120] sm:$0xff] %vm1769_vm2, %v2437_v59 }
 0x397   : > { %v4117_v45 = vpop.f32.mrb[30].mxu0 }
 0x398   : > { %v2369_v43 = vmul.f32 %v6039_v4, %v4117_v45  ;;  %v2322_v36 = vpop.f32.mrb[31].mxu0  ;;  %v6135_v5 = vld [vmem:[#allocation3 + $0x128] sm:$0xff] }
 0x399   : > { %v2368_v2 = vmul.f32 %v6039_v4, %v2322_v36  ;;  %v6130_v20 = vld [vmem:[#allocation3 + $0x120] sm:$0xff] }
 0x39a   : > { %v2408_v21 = vadd.f32 %v6046_v14, %v2369_v43  ;;  %4162 = vmatprep.mubr.msk.f32.mxu0 %vm1769_vm2, %v6130_v20 }
 0x39b   : > { %v2407_v27 = vadd.f32 %v6046_v14, %v2368_v2  ;;  %v6138_v58 = vpop.f32.mrb[32].mxu0  ;;  %4163 = vmatmul.mubr.msk.f32.gmra.mrb[60].mxu0 %vm1769_vm2, %v6135_v5 }
 0x39c   : > { %v2440_v11 = vmax.f32 %v2408_v21, 0.0  ;;  %v6142_v55 = vpop.f32.mrb[33].mxu0 }
 0x39d   : > { %v2439_v4 = vmax.f32 %v2407_v27, 0.0 }
 0x39e   : > { %2521 = vst.msk [vmem:[#allocation3 + $0x138] sm:$0xff] %vm1769_vm2, %v2440_v11 }
 0x39f   : > { %2520 = vst.msk [vmem:[#allocation3 + $0x130] sm:$0xff] %vm1769_vm2, %v2439_v4  ;;  %v6146_v49 = vpop.f32.mrb[34].mxu0 }
 0x3a0   : > { %v6148_v40 = vpop.f32.mrb[35].mxu0 }
 0x3a3   : > { %v6150_v12 = vpop.f32.mrb[36].mxu0 }
 0x3a4   : > { %v6152_v14 = vpop.f32.mrb[37].mxu0 }
 0x3a5   : > { %v6160_v54 = vld [vmem:[#allocation3 + $0x138] sm:$0xff] }
 0x3a6   : > { %v6154_v8 = vld [vmem:[#allocation3 + $0x130] sm:$0xff] }
 0x3a7   : > { %v6156_v35 = vpop.f32.mrb[38].mxu0  ;;  %4165 = vmatprep.mubr.msk.f32.mxu1 %vm1769_vm2, %v6154_v8 }
 0x3a8   : > { %v6165_v0 = vpop.f32.mrb[39].mxu0  ;;  %4166 = vmatmul.mubr.msk.f32.vlgmr.msra.gmra.mrb[0].mxu1 %vm1769_vm2, %v6160_v54 }
 0x3a9   : > { %4169 = vmatpush3.msra.mxu1 %v6077_v38  ;;  %4170 = vmatprep.mubr.msk.f32.mxu1 %vm1769_vm2, %v2522_v48  ;;  %v2527_v38 = vld [vmem:[#allocation3 + $0x28] sm:$0xff] }
 0x3aa   : > { %4218 = vmatprep.subr.mxu1 %v3884_v60 }
 0x3ab   : > { %v6171_v51 = vpop.f32.mrb[40].mxu0 }
 0x3ac   : > { %v6173_v41 = vpop.f32.mrb[41].mxu0  ;;  %4171 = vmatmul.mubr.msk.f32.vlgmr.msra.gmra.mrb[2].mxu1 %vm1769_vm2, %v2523_v53 }
 0x3ad   : > { %4219 = vmatpush3.msra.mxu1 %v3884_v60  ;;  %4173 = vmatprep.mubr.msk.f32.mxu1 %vm1769_vm2, %v2524_v9 }
 0x3af   : > { %v6177_v23 = vpop.f32.mrb[42].mxu0 }
 0x3b0   : > { %v6179_v19 = vpop.f32.mrb[43].mxu0  ;;  %4174 = vmatmul.mubr.msk.f32.gmra.mrb[4].mxu1 %vm1769_vm2, %v2525_v52 }
 0x3b1   : > { %4176 = vmatprep.mubr.msk.f32.mxu1 %vm1769_vm2, %v2526_v37 }
 0x3b3   : > { %v6183_v31 = vpop.f32.mrb[44].mxu0 }
 0x3b4   : > { %v6185_v56 = vpop.f32.mrb[45].mxu0  ;;  %4177 = vmatmul.mubr.msk.f32.gmra.mrb[6].mxu1 %vm1769_vm2, %v2527_v38 }
 0x3b5   : > { %4179 = vmatprep.mubr.msk.f32.mxu1 %vm1769_vm2, %v2528_v63 }
 0x3b7   : > { %v6189_v59 = vpop.f32.mrb[46].mxu0 }
 0x3b8   : > { %v6191_v45 = vpop.f32.mrb[47].mxu0  ;;  %4180 = vmatmul.mubr.msk.f32.gmra.mrb[8].mxu1 %vm1769_vm2, %v2529_v50 }
 0x3b9   : > { %4182 = vmatprep.mubr.msk.f32.mxu1 %vm1769_vm2, %v5958_v10 }
 0x3bb   : > { %v6196_v43 = vpop.f32.mrb[48].mxu0 }
 0x3bc   : > { %v6198_v36 = vpop.f32.mrb[49].mxu0  ;;  %4183 = vmatmul.mubr.msk.f32.gmra.mrb[10].mxu1 %vm1769_vm2, %v5962_v3 }
 0x3bd   : > { %4185 = vmatprep.mubr.msk.f32.mxu1 %vm1769_vm2, %v5966_v30 }
 0x3c0   : > { %4186 = vmatmul.mubr.msk.f32.gmra.mrb[12].mxu1 %vm1769_vm2, %v5970_v17  ;;  %v3683_v17 = vld [vmem:[%s6416_s5] sm:$0xff] }
 0x3c1   : > { %4188 = vmatprep.mubr.msk.f32.mxu1 %vm1769_vm2, %v5975_v6 }
 0x3c4   : > { %4189 = vmatmul.mubr.msk.f32.gmra.mrb[14].mxu1 %vm1769_vm2, %v5982_v42  ;;  %v4468_v42 = vmov 0  }
 0x3c5   : > { %4191 = vmatprep.mubr.msk.f32.mxu1 %vm1769_vm2, %v5986_v7  ;;  %4391 = vset.pattern.permute.xlu1 %v4468_v42  ;;  %v3691_v7 = vld [vmem:[%s6417_s6] sm:$0xff] }
 0x3c6   : > { %3686 = vperm.xlu1 %4391, %v3683_v17  }
 0x3c8   : > { %4192 = vmatmul.mubr.msk.f32.gmra.mrb[16].mxu1 %vm1769_vm2, %v5992_v39 }
 0x3c9   : > { %4194 = vmatprep.mubr.msk.f32.mxu1 %vm1769_vm2, %v5996_v34 }
 0x3ca   : > { %3694 = vperm.xlu1 %4391, %v3691_v7  }
 0x3cc   : > { %4195 = vmatmul.mubr.msk.f32.gmra.mrb[18].mxu1 %vm1769_vm2, %v6000_v26 }
 0x3cd   : > { %4197 = vmatprep.mubr.msk.f32.mxu1 %vm1769_vm2, %v6004_v18  ;;  %v6220_v10 = vpop.f32.mrb[50].mxu0 }
 0x3ce   : > { %v6222_v3 = vpop.f32.mrb[51].mxu0 }
 0x3d0   : > { %4198 = vmatmul.mubr.msk.f32.gmra.mrb[20].mxu1 %vm1769_vm2, %v6008_v62 }
 0x3d1   : > { %4200 = vmatprep.mubr.msk.f32.mxu1 %vm1769_vm2, %v6012_v13 }
 0x3d4   : > { %4201 = vmatmul.mubr.msk.f32.gmra.mrb[22].mxu1 %vm1769_vm2, %v6016_v25 }
 0x3d5   : > { %4203 = vmatprep.mubr.msk.f32.mxu1 %vm1769_vm2, %v6020_v46 }
 0x3d8   : > { %4204 = vmatmul.mubr.msk.f32.gmra.mrb[24].mxu1 %vm1769_vm2, %v6024_v61 }
 0x3d9   : > { %4206 = vmatprep.mubr.msk.f32.mxu1 %vm1769_vm2, %v6028_v44 }
 0x3dc   : > { %4207 = vmatmul.mubr.msk.f32.gmra.mrb[26].mxu1 %vm1769_vm2, %v6032_v29 }
 0x3dd   : > { %4209 = vmatprep.mubr.msk.f32.mxu1 %vm1769_vm2, %v6052_v28 }
 0x3e0   : > { %4210 = vmatmul.mubr.msk.f32.gmra.mrb[28].mxu1 %vm1769_vm2, %v6056_v22 }
 0x3e1   : > { %4212 = vmatprep.mubr.msk.f32.mxu1 %vm1769_vm2, %v6066_v57 }
 0x3e4   : > { %4213 = vmatmul.mubr.msk.f32.gmra.mrb[30].mxu1 %vm1769_vm2, %v6070_v1 }
 0x3e5   : > { %4215 = vmatprep.mubr.msk.f32.mxu1 %vm1769_vm2, %v6086_v32 }
 0x3e8   : > { %4216 = vmatmul.mubr.msk.f32.gmra.mrb[0].mxu1 %vm1769_vm2, %v6090_v24 }
 0x3e9   : > { %4220 = vmatprep.mubr.msk.f32.mxu1 %vm1769_vm2, %v5996_v34 }
 0x3ec   : > { %4221 = vmatmul.mubr.msk.f32.vlgmr.msra.gmra.mrb[2].mxu1 %vm1769_vm2, %v6000_v26  ;;  %v3256_v26 = vld [vmem:[#allocation3 + $0x140] sm:$0xff] }
 0x3ed   : > { %4223 = vmatprep.mubr.msk.f32.mxu1 %vm1769_vm2, %v6004_v18  ;;  %v6256_v30 = vpop.f32.mrb[52].mxu0  ;;  %v3257_v18 = vld [vmem:[#allocation3 + $0x148] sm:$0xff] }
 0x3ee   : > { %v6261_v6 = vpop.f32.mrb[53].mxu0 }
 0x3f0   : > { %4224 = vmatmul.mubr.msk.f32.gmra.mrb[4].mxu1 %vm1769_vm2, %v6008_v62  ;;  %v3258_v62 = vld [vmem:[#allocation3 + $0x150] sm:$0xff] }
 0x3f1   : > { %4226 = vmatprep.mubr.msk.f32.mxu1 %vm1769_vm2, %v6012_v13  ;;  %v3259_v13 = vld [vmem:[#allocation3 + $0x158] sm:$0xff] }
 0x3f4   : > { %4227 = vmatmul.mubr.msk.f32.gmra.mrb[6].mxu1 %vm1769_vm2, %v6016_v25  ;;  %v3260_v25 = vld [vmem:[#allocation3 + $0x160] sm:$0xff] }
 0x3f5   : > { %4229 = vmatprep.mubr.msk.f32.mxu1 %vm1769_vm2, %v6020_v46  ;;  %v3261_v46 = vld [vmem:[#allocation3 + $0x168] sm:$0xff] }
 0x3f8   : > { %4230 = vmatmul.mubr.msk.f32.gmra.mrb[8].mxu1 %vm1769_vm2, %v6024_v61  ;;  %v3262_v61 = vld [vmem:[#allocation3 + $0x170] sm:$0xff] }
 0x3f9   : > { %4232 = vmatprep.mubr.msk.f32.mxu1 %vm1769_vm2, %v6028_v44  ;;  %v3263_v44 = vld [vmem:[#allocation3 + $0x178] sm:$0xff] }
 0x3fc   : > { %4233 = vmatmul.mubr.msk.f32.gmra.mrb[10].mxu1 %vm1769_vm2, %v6032_v29 }
 0x3fd   : > { %4235 = vmatprep.mubr.msk.f32.mxu1 %vm1769_vm2, %v6052_v28 }
 0x400   : > { %4236 = vmatmul.mubr.msk.f32.gmra.mrb[12].mxu1 %vm1769_vm2, %v6056_v22 }
 0x401   : > { %4238 = vmatprep.mubr.msk.f32.mxu1 %vm1769_vm2, %v6066_v57 }
 0x404   : > { %4239 = vmatmul.mubr.msk.f32.gmra.mrb[14].mxu1 %vm1769_vm2, %v6070_v1 }
 0x405   : > { %4241 = vmatprep.mubr.msk.f32.mxu1 %vm1769_vm2, %v6086_v32 }
 0x408   : > { %4242 = vmatmul.mubr.msk.f32.gmra.mrb[16].mxu1 %vm1769_vm2, %v6090_v24 }
 0x409   : > { %4244 = vmatprep.mubr.msk.f32.mxu1 %vm1769_vm2, %v6100_v47 }
 0x40c   : > { %4245 = vmatmul.mubr.msk.f32.gmra.mrb[18].mxu1 %vm1769_vm2, %v6104_v15 }
 0x40d   : > { %4247 = vmatprep.mubr.msk.f32.mxu1 %vm1769_vm2, %v6114_v33  ;;  %v6299_v39 = vpop.f32.mrb[54].mxu0 }
 0x40e   : > { %v6301_v34 = vpop.f32.mrb[55].mxu0 }
 0x410   : > { %4248 = vmatmul.mubr.msk.f32.gmra.mrb[20].mxu1 %vm1769_vm2, %v6118_v16 }
 0x411   : > { %4250 = vmatprep.mubr.msk.f32.mxu1 %vm1769_vm2, %v6130_v20 }
 0x414   : > { %4251 = vmatmul.mubr.msk.f32.gmra.mrb[22].mxu1 %vm1769_vm2, %v6135_v5 }
 0x415   : > { %4253 = vmatprep.mubr.msk.f32.mxu1 %vm1769_vm2, %v6154_v8 }
 0x418   : > { %4254 = vmatmul.mubr.msk.f32.gmra.mrb[24].mxu1 %vm1769_vm2, %v6160_v54 }
 0x419   : > { %4256 = vmatprep.mubr.msk.f32.mxu1 %vm1769_vm2, %v3256_v26 }
 0x41c   : > { %4257 = vmatmul.mubr.msk.f32.gmra.mrb[26].mxu1 %vm1769_vm2, %v3257_v18 }
 0x41d   : > { %4259 = vmatprep.mubr.msk.f32.mxu1 %vm1769_vm2, %v3258_v62 }
 0x420   : > { %4260 = vmatmul.mubr.msk.f32.gmra.mrb[28].mxu1 %vm1769_vm2, %v3259_v13 }
 0x421   : > { %4262 = vmatprep.mubr.msk.f32.mxu1 %vm1769_vm2, %v3260_v25 }
 0x424   : > { %4263 = vmatmul.mubr.msk.f32.gmra.mrb[30].mxu1 %vm1769_vm2, %v3261_v46 }
 0x425   : > { %4265 = vmatprep.mubr.msk.f32.mxu1 %vm1769_vm2, %v3262_v61 }
 0x428   : > { %4266 = vmatmul.mubr.msk.f32.gmra.mrb[0].mxu1 %vm1769_vm2, %v3263_v44 }
 0x42d   : > { %v6321_v29 = vpop.f32.mrb[56].mxu0 }
 0x42e   : > { %v6323_v28 = vpop.f32.mrb[57].mxu0 }
 0x44d   : > { %v6325_v22 = vpop.f32.mrb[58].mxu0 }
 0x44e   : > { %v6327_v57 = vpop.f32.mrb[59].mxu0 }
 0x46e   : > { %v6329_v1 = vpop.f32.mrb[60].mxu0 }
 0x46f   : > { %v6331_v32 = vpop.f32.mrb[61].mxu0 }
 0x4bf   : > { %v4222_v24 = vpop.f32.mrb[2].mxu1 }
 0x4c0   : > { %v4278_v47 = vadd.f32 %v4222_v24, %v6138_v58  ;;  %v3428_v15 = vpop.f32.mrb[3].mxu1 }
 0x4c1   : > { %v4279_v33 = vadd.f32 %v3428_v15, %v6142_v55 }
 0x4c3   : > { %3619 = vxpose.xlu0.b32.start [1/16] (narrow) %v4279_v33, 8  ;;  %v4225_v16 = vpop.f32.mrb[4].mxu1 }
 0x4c4   : > { %v4280_v2 = vadd.f32 %v4225_v16, %v6146_v49  ;;  %v3438_v20 = vpop.f32.mrb[5].mxu1 }
 0x4c5   : > { %v4281_v21 = vadd.f32 %v3438_v20, %v6148_v40 }
 0x4c7   : > { %3620 = vxpose.xlu0.b32.cont [2/16] (narrow) %v4278_v47, 8  ;;  %v4228_v5 = vpop.f32.mrb[6].mxu1 }
 0x4c8   : > { %v4282_v27 = vadd.f32 %v4228_v5, %v6150_v12  ;;  %v3448_v11 = vpop.f32.mrb[7].mxu1 }
 0x4c9   : > { %v4283_v4 = vadd.f32 %v3448_v11, %v6152_v14 }
 0x4cb   : > { %3621 = vxpose.xlu0.b32.cont [3/16] (narrow) %v4281_v21, 8  ;;  %v4231_v8 = vpop.f32.mrb[8].mxu1 }
 0x4cc   : > { %v4284_v58 = vadd.f32 %v4231_v8, %v6156_v35  ;;  %v3458_v48 = vpop.f32.mrb[9].mxu1 }
 0x4cd   : > { %v4285_v55 = vadd.f32 %v3458_v48, %v6165_v0 }
 0x4cf   : > { %3622 = vxpose.xlu0.b32.cont [4/16] (narrow) %v4280_v2, 8  ;;  %v4234_v54 = vpop.f32.mrb[10].mxu1 }
 0x4d0   : > { %v4286_v49 = vadd.f32 %v4234_v54, %v6171_v51  ;;  %v3468_v60 = vpop.f32.mrb[11].mxu1 }
 0x4d1   : > { %v4287_v40 = vadd.f32 %v3468_v60, %v6173_v41 }
 0x4d3   : > { %3623 = vxpose.xlu0.b32.cont [5/16] (narrow) %v4283_v4, 8  ;;  %v4237_v53 = vpop.f32.mrb[12].mxu1 }
 0x4d4   : > { %v4288_v12 = vadd.f32 %v4237_v53, %v6177_v23  ;;  %v3478_v9 = vpop.f32.mrb[13].mxu1 }
 0x4d5   : > { %v4289_v14 = vadd.f32 %v3478_v9, %v6179_v19 }
 0x4d7   : > { %3624 = vxpose.xlu0.b32.cont [6/16] (narrow) %v4282_v27, 8  ;;  %v4240_v52 = vpop.f32.mrb[14].mxu1 }
 0x4d8   : > { %v4290_v35 = vadd.f32 %v4240_v52, %v6183_v31  ;;  %v3488_v37 = vpop.f32.mrb[15].mxu1 }
 0x4d9   : > { %v4291_v0 = vadd.f32 %v3488_v37, %v6185_v56 }
 0x4db   : > { %3625 = vxpose.xlu0.b32.cont [7/16] (narrow) %v4285_v55, 8  ;;  %v4243_v38 = vpop.f32.mrb[16].mxu1 }
 0x4dc   : > { %v4292_v51 = vadd.f32 %v4243_v38, %v6189_v59  ;;  %v3498_v63 = vpop.f32.mrb[17].mxu1 }
 0x4dd   : > { %v4293_v41 = vadd.f32 %v3498_v63, %v6191_v45 }
 0x4df   : > { %3626 = vxpose.xlu0.b32.cont [8/16] (narrow) %v4284_v58, 8  ;;  %v4246_v50 = vpop.f32.mrb[18].mxu1 }
 0x4e0   : > { %v4294_v23 = vadd.f32 %v4246_v50, %v6196_v43  ;;  %v3508_v17 = vpop.f32.mrb[19].mxu1 }
 0x4e1   : > { %v4295_v19 = vadd.f32 %v3508_v17, %v6198_v36 }
 0x4e3   : > { %3627 = vxpose.xlu0.b32.cont [9/16] (narrow) %v4287_v40, 8  ;;  %3651 = vxpose.xlu1.b32.start [1/16] (narrow) %v4295_v19, 8  ;;  %v4249_v31 = vpop.f32.mrb[20].mxu1 }
 0x4e4   : > { %v4296_v7 = vadd.f32 %v4249_v31, %v6220_v10  ;;  %v3518_v56 = vpop.f32.mrb[21].mxu1 }
 0x4e5   : > { %v4297_v26 = vadd.f32 %v3518_v56, %v6222_v3 }
 0x4e7   : > { %3628 = vxpose.xlu0.b32.cont [10/16] (narrow) %v4286_v49, 8  ;;  %3652 = vxpose.xlu1.b32.cont [2/16] (narrow) %v4294_v23, 8  ;;  %v4252_v59 = vpop.f32.mrb[22].mxu1 }
 0x4e8   : > { %v4298_v45 = vadd.f32 %v4252_v59, %v6256_v30  ;;  %v3528_v18 = vpop.f32.mrb[23].mxu1 }
 0x4e9   : > { %v4299_v62 = vadd.f32 %v3528_v18, %v6261_v6 }
 0x4eb   : > { %3629 = vxpose.xlu0.b32.cont [11/16] (narrow) %v4289_v14, 8  ;;  %3653 = vxpose.xlu1.b32.cont [3/16] (narrow) %v4297_v26, 8  ;;  %v4255_v43 = vpop.f32.mrb[24].mxu1 }
 0x4ec   : > { %v4300_v36 = vadd.f32 %v4255_v43, %v6299_v39  ;;  %v3538_v13 = vpop.f32.mrb[25].mxu1 }
 0x4ed   : > { %v4301_v25 = vadd.f32 %v3538_v13, %v6301_v34 }
 0x4ef   : > { %3630 = vxpose.xlu0.b32.cont [12/16] (narrow) %v4288_v12, 8  ;;  %3654 = vxpose.xlu1.b32.cont [4/16] (narrow) %v4296_v7, 8  ;;  %v4258_v10 = vpop.f32.mrb[26].mxu1 }
 0x4f0   : > { %v4302_v3 = vadd.f32 %v4258_v10, %v6321_v29  ;;  %v3548_v46 = vpop.f32.mrb[27].mxu1 }
 0x4f1   : > { %v4303_v61 = vadd.f32 %v3548_v46, %v6323_v28 }
 0x4f3   : > { %3631 = vxpose.xlu0.b32.cont [13/16] (narrow) %v4291_v0, 8  ;;  %3655 = vxpose.xlu1.b32.cont [5/16] (narrow) %v4299_v62, 8  ;;  %v4261_v30 = vpop.f32.mrb[28].mxu1 }
 0x4f4   : > { %v4304_v6 = vadd.f32 %v4261_v30, %v6325_v22  ;;  %v3558_v44 = vpop.f32.mrb[29].mxu1  ;;  %v3687_v22 = vpop.permute.xlu1 %3686 }
 0x4f5   : > { %v4305_v24 = vadd.f32 %v3558_v44, %v6327_v57 }
 0x4f7   : > { %3632 = vxpose.xlu0.b32.cont [14/16] (narrow) %v4290_v35, 8  ;;  %3656 = vxpose.xlu1.b32.cont [6/16] (narrow) %v4298_v45, 8  ;;  %v4264_v39 = vpop.f32.mrb[30].mxu1 }
 0x4f8   : > { %v4306_v34 = vadd.f32 %v4264_v39, %v6329_v1  ;;  %v3568_v47 = vpop.f32.mrb[31].mxu1 }
 0x4f9   : > { %v4307_v15 = vadd.f32 %v3568_v47, %v6331_v32  ;;  %v3695_v32 = vpop.permute.xlu1 %3694 }
 0x4fb   : > { %3633 = vxpose.xlu0.b32.cont [15/16] (narrow) %v4293_v41, 8  ;;  %3657 = vxpose.xlu1.b32.cont [7/16] (narrow) %v4301_v25, 8  ;;  %v4267_v29 = vpop.f32.mrb[0].mxu1 }
 0x4fc   : > { %v3578_v28 = vpop.f32.mrb[1].mxu1 }
 0x4ff   : > { %3634 = vxpose.xlu0.b32.end [16/16] (narrow) %v4292_v51, 8  ;;  %3658 = vxpose.xlu1.b32.cont [8/16] (narrow) %v4300_v36, 8 }
 0x503   : > { %3659 = vxpose.xlu1.b32.cont [9/16] (narrow) %v4303_v61, 8 }
 0x507   : > { %3660 = vxpose.xlu1.b32.cont [10/16] (narrow) %v4302_v3, 8 }
 0x50b   : > { %3661 = vxpose.xlu1.b32.cont [11/16] (narrow) %v4305_v24, 8 }
 0x50f   : > { %3662 = vxpose.xlu1.b32.cont [12/16] (narrow) %v4304_v6, 8 }
 0x513   : > { %3663 = vxpose.xlu1.b32.cont [13/16] (narrow) %v4307_v15, 8 }
 0x517   : > { %3664 = vxpose.xlu1.b32.cont [14/16] (narrow) %v4306_v34, 8 }
 0x51b   : > { %3665 = vxpose.xlu1.b32.cont [15/16] (narrow) %v3578_v28, 8 }
 0x51f   : > { %3666 = vxpose.xlu1.b32.end [16/16] (narrow) %v4267_v29, 8 }
 0x528   : > { %4392 = vset.pattern.permute.xlu0 %v4468_v42 }
 0x543   : > { %v3635_v57 = vpop.trf.xlu0 }
 0x544   : > { %v3689_v1 = vmul.f32 %v3687_v22, %v3635_v57 }
 0x546   : > { %v3697_v33 = vadd.f32 %v3695_v32, %v3689_v1 }
 0x548   : > { %v3699_v16 = vmax.f32 %v3697_v33, 0.0 }
 0x54a   : > { %3701 = vst [vmem:[%s271_s20] sm:$0xff] %v3699_v16 }
 0x563   : > { %v3667_v2 = vpop.trf.xlu1 }
 0x564   : > { %v3690_v20 = vmul.f32 %v3687_v22, %v3667_v2 }
 0x566   : > { %v3698_v21 = vadd.f32 %v3695_v32, %v3690_v20 }
 0x568   : > { %v3700_v5 = vmax.f32 %v3698_v21, 0.0 }
 0x56a   : > { %3702 = vst [vmem:[%s271_s20 + $0x8] sm:$0xff] %v3700_v5 }
 0x56b   : > { %4408 = shalt.err (!%p4405_p3)
}
 0x56c   : > { %s4409_s16 = scalar_lea.hbm %s6369_s8, 256  ;;  %s4413_s19 = scalar_lea.hbm %s6418_s7, 512 }
 0x56d   : > { %p4410_p4 = scmp.ne.s32.totalorder %s6369_s8, %s4409_s16  ;;  %p4414_p9 = scmp.lt.u32.totalorder %s6369_s8, %s6418_s7 }
 0x56e   : > { %p4415_p10 = scmp.lt.u32.totalorder %s4413_s19, %s4409_s16  ;;  %p4417_p12 = scmp.lt.u32.totalorder %s4409_s16, %s6369_s8 }
 0x56f   : > { %p4411_p7 = pnand %p4410_p4, %p4548_p5 }
 0x570   : > { %p4416_p11 = por %p4415_p10, %p4414_p9 }
 0x571   : > { %p4412_p8 = pneg %p4411_p7 }
 0x572   : > { %p4418_p13 = por %p4417_p12, %p4416_p11 }
 0x574   : > { %p4419_p0 = pnand %p4418_p13, %p4412_p8 }
 0x576   : > { %4422 = shalt.err (!%p4419_p0)
}
 0x577   : > { %4342 = dma.vmem_to_hbm [thread:$0]  (%p4548_p5), %s6371_s22, 256, %s6369_s8, %s3704_s9  }
 0x578 PF: > { %p4348_p1 = scmp.ge.s32.totalorder %s4457_s27, 2  ;;  %s3730_s13 = sand.u32 1, %s4445_s24  }
 0x579   : > { %s3731_s29 = scalar_lea.sflag [#allocation5], %s3730_s13 }
 0x57a   : > { %p4345_p2 = pnand %p4348_p1, %p4552_p6 }
 0x57c   : > { %4440 = dma.done.wait (!%p4345_p2), %s3731_s29, 256  }
 0x57d   : > { %4442 = vsyncadd (!%p4345_p2), %s3731_s29, 4294967040  ;;  %p17_p3 = scmp.ge.s32.totalorder %s4535_s30, 4   ;;  %s6421_s24 = smov %s4449_s25 }
 0x57e   : > { %s6422_s25 = smov %s4453_s26  ;;  %s6423_s26 = smov %s4546_s10 }
 0x57f   : > { %s6424_s27 = smov %s4535_s30  ;;  %19 = sbr.rel (!%p17_p3) target bundleno = 3 (0x3), region = 89 }
 0x586   :  { %3736 = vsyncpa [#allocation5], 1 }
 0x587   :  { %3738 = vsyncpa [#allocation5 + $0x1], 1 }

</bundles_post_ra>
